<compile_context>
chip_gen: v6e
topology: v6e:2x2x1
jax: 0.10.0
libtpu: 0.0.40
codegen_flags: <defaults>
</compile_context>

<pallas_src>
import jax
import jax.numpy as jnp
import numpy as np
from jax.experimental import pallas as pl
from jax.experimental.pallas import tpu as pltpu  # noqa: F401  (TPU backend)

COUTS = (64, 32, 16, 8, 4, 1)   # ConvTranspose2d output channels
CINS = (128, 64, 32, 16, 8, 4)  # ConvTranspose2d input channels


def _round_up(x, m):
    return (x + m - 1) // m * m


# ---------------------------------------------------------------------------
# Pallas kernels
# ---------------------------------------------------------------------------
def _fc_tconv0_kernel(x_ref, wfc_ref, bfc_ref, w0_ref, b0_ref, o_ref):
    """o = relu((x @ Wfc + bfc) @ W0 + b0): tfc fused with the first tconv."""
    h = jnp.dot(x_ref[...], wfc_ref[...],
                preferred_element_type=jnp.float32) + bfc_ref[...]
    y = jnp.dot(h, w0_ref[...],
                preferred_element_type=jnp.float32) + b0_ref[...]
    o_ref[...] = jnp.maximum(y, 0.0)


def _linear_relu_kernel(x_ref, w_ref, b_ref, o_ref):
    y = jnp.dot(x_ref[...], w_ref[...],
                preferred_element_type=jnp.float32) + b_ref[...]
    o_ref[...] = jnp.maximum(y, 0.0)


def pallas_fc_tconv0(x, wfc, bfc, w0, b0):
    M, K = x.shape
    Kf, Nf = wfc.shape
    K0, N0 = w0.shape
    return pl.pallas_call(
        _fc_tconv0_kernel,
        out_shape=jax.ShapeDtypeStruct((M, N0), jnp.float32),
        grid=(1,),
        in_specs=[
            pl.BlockSpec((M, K), lambda i: (0, 0)),
            pl.BlockSpec((Kf, Nf), lambda i: (0, 0)),
            pl.BlockSpec((1, Nf), lambda i: (0, 0)),
            pl.BlockSpec((K0, N0), lambda i: (0, 0)),
            pl.BlockSpec((1, N0), lambda i: (0, 0)),
        ],
        out_specs=pl.BlockSpec((M, N0), lambda i: (0, 0)),
        cost_estimate=pl.CostEstimate(
            flops=2 * M * (K * Nf + Nf * N0),
            transcendentals=0,
            bytes_accessed=4 * (M * K + Kf * Nf + Nf + K0 * N0 + N0 + M * N0)),
    )(x, wfc, bfc, w0, b0)


def pallas_linear_relu(x, w, b):
    """y = relu(x @ w + b). x: (M, K) f32, w: (K, N) f32, b: (1, N) f32."""
    M, K = x.shape
    Kw, N = w.shape
    return pl.pallas_call(
        _linear_relu_kernel,
        out_shape=jax.ShapeDtypeStruct((M, N), jnp.float32),
        grid=(1,),
        in_specs=[
            pl.BlockSpec((M, K), lambda i: (0, 0)),
            pl.BlockSpec((Kw, N), lambda i: (0, 0)),
            pl.BlockSpec((1, N), lambda i: (0, 0)),
        ],
        out_specs=pl.BlockSpec((M, N), lambda i: (0, 0)),
        cost_estimate=pl.CostEstimate(
            flops=2 * M * K * N,
            transcendentals=0,
            bytes_accessed=4 * (M * K + K * N + N + M * N)),
    )(x, w, b)


# ---------------------------------------------------------------------------
# Parameter init (torch layout) and one-time weight preparation
# ---------------------------------------------------------------------------
def init_raw_params(key):
    keys = iter(jax.random.split(key, 32))

    def u(shape, scale=0.1):
        return jax.random.uniform(next(keys), shape, jnp.float32, -scale, scale)

    tfc = (u((128, 64)), u((128,)))  # torch nn.Linear(64, 128): W (out, in)
    # torch ConvTranspose2d weight layout: (Cin, Cout, kH, kW)
    tconvs = [(u((ci, co, 2, 2)), u((co,))) for ci, co in zip(CINS, COUTS)]
    return dict(tfc=tfc, tconvs=tconvs)


def prepare_params(raw):
    """Pre-transpose / pre-pad all weights once (lane-dense N, zero padding)."""
    wfc, bfc = raw["tfc"]
    prep = dict(
        fc_w=jnp.asarray(wfc.T, jnp.float32),               # (64, 128)
        fc_b=jnp.asarray(bfc, jnp.float32).reshape(1, -1),   # (1, 128)
        w=[], b=[])
    for w, b in raw["tconvs"]:
        ci, co = int(w.shape[0]), int(w.shape[1])
        n = 4 * co
        npad = _round_up(n, 128)
        # columns ordered (di, dj, cout) so the pixel-shuffle below is a
        # plain row-major reshape
        wm = jnp.transpose(w, (0, 2, 3, 1)).reshape(ci, n)
        bm = jnp.tile(b, 4)
        wp = jnp.zeros((ci, npad), jnp.float32).at[:, :n].set(wm)
        bp = jnp.zeros((1, npad), jnp.float32).at[0, :n].set(bm)
        prep["w"].append(wp)
        prep["b"].append(bp)
    return prep


# ---------------------------------------------------------------------------
# Forward pass (single jit; 6 pallas_calls total)
# ---------------------------------------------------------------------------
def _pixel_shuffle(y, B, H, W, cout):
    """y: (B*H*W, 4*cout) with cols (di, dj, cout) -> (B, 2H, 2W, cout)."""
    y = y.reshape(B, H, W, 2, 2, cout)
    y = y.transpose(0, 1, 3, 2, 4, 5)          # (B, H, 2, W, 2, cout)
    return y.reshape(B, 2 * H, 2 * W, cout)


@jax.jit
def decoder_forward(x, prep):
    B = x.shape[0]
    # tfc (Linear 64->128) fused with ConvTranspose2d(128, 64) on the 1x1 map.
    y = pallas_fc_tconv0(x, prep["fc_w"], prep["fc_b"],
                         prep["w"][0], prep["b"][0])        # (B, 256)
    img = _pixel_shuffle(y[:, :4 * COUTS[0]], B, 1, 1, COUTS[0])  # (B,2,2,64)
    H = W = 2
    for idx in range(1, 6):
        co = COUTS[idx]
        xin = img.reshape(B * H * W, img.shape[-1])
        y = pallas_linear_relu(xin, prep["w"][idx], prep["b"][idx])
        img = _pixel_shuffle(y[:, :4 * co], B, H, W, co)
        H, W = 2 * H, 2 * W
    return jnp.transpose(img, (0, 3, 1, 2))                 # NCHW (B,1,64,64)


# ---------------------------------------------------------------------------
# Pure-JAX reference (for in-script correctness check)
# ---------------------------------------------------------------------------
def decoder_reference(x, raw):
    hp = jax.lax.Precision.HIGHEST
    wfc, bfc = raw["tfc"]
    h = jnp.dot(x, wfc.T, precision=hp) + bfc                # (B, 128)
    img = h.reshape(-1, 1, 1, 128)                           # NHWC
    for w, b in raw["tconvs"]:
        B, H, W, _ = img.shape
        co = w.shape[1]
        # out[b,h,w,di,dj,co] = sum_ci img[b,h,w,ci] * w[ci,co,di,dj] + b[co]
        y = jnp.einsum("bhwi,iouv->bhwuvo", img, w, precision=hp) + b
        y = jnp.maximum(y, 0.0)
        img = y.transpose(0, 1, 3, 2, 4, 5).reshape(B, 2 * H, 2 * W, co)
    return img.transpose(0, 3, 1, 2)


if __name__ == "__main__":
    B = 2
    key = jax.random.PRNGKey(0)
    kp, kx = jax.random.split(key)

    raw = init_raw_params(kp)
    prep = prepare_params(raw)            # one-time weight prep (outside jit)
    x = jax.random.uniform(kx, (B, 64), jnp.float32, -1.0, 1.0)

    out = decoder_forward(x, prep)
    out = jax.block_until_ready(out)
    assert out.shape == (B, 1, 64, 64), out.shape
    assert out.dtype == jnp.float32

    ref = decoder_reference(x, raw)
    np.testing.assert_allclose(np.asarray(out), np.asarray(ref),
                               rtol=5e-3, atol=1e-5)
    print("KERNEL_OK")
</pallas_src>

<mosaic_0001>
module attributes {stable_mosaic.version = 11 : i64} {
  func.func @_fc_tconv0_kernel(%arg0: i32, %arg1: memref<2x64xf32, #tpu.memory_space<vmem>>, %arg2: memref<64x128xf32, #tpu.memory_space<vmem>>, %arg3: memref<1x128xf32, #tpu.memory_space<vmem>>, %arg4: memref<128x256xf32, #tpu.memory_space<vmem>>, %arg5: memref<1x256xf32, #tpu.memory_space<vmem>>, %arg6: memref<2x256xf32, #tpu.memory_space<vmem>>) attributes {dimension_semantics = [#tpu.dimension_semantics<arbitrary>], iteration_bounds = array<i64: 1>, scalar_prefetch = 0 : i64, scratch_operands = 0 : i64, tpu.core_type = #tpu.core_type<tc>, window_params = [{pipeline_mode = #tpu.pipeline_mode<synchronous>, transform_indices = @transform_0, window_bounds = array<i64: 2, 64>}, {pipeline_mode = #tpu.pipeline_mode<synchronous>, transform_indices = @transform_1, window_bounds = array<i64: 64, 128>}, {pipeline_mode = #tpu.pipeline_mode<synchronous>, transform_indices = @transform_2, window_bounds = array<i64: 1, 128>}, {pipeline_mode = #tpu.pipeline_mode<synchronous>, transform_indices = @transform_3, window_bounds = array<i64: 128, 256>}, {pipeline_mode = #tpu.pipeline_mode<synchronous>, transform_indices = @transform_4, window_bounds = array<i64: 1, 256>}, {pipeline_mode = #tpu.pipeline_mode<synchronous>, transform_indices = @transform_5, window_bounds = array<i64: 2, 256>}]} {
    %c0 = arith.constant 0 : index
    %c0_0 = arith.constant 0 : index
    %0 = vector.load %arg1[%c0, %c0_0] : memref<2x64xf32, #tpu.memory_space<vmem>>, vector<2x64xf32>
    %c0_1 = arith.constant 0 : index
    %c0_2 = arith.constant 0 : index
    %1 = vector.load %arg2[%c0_1, %c0_2] : memref<64x128xf32, #tpu.memory_space<vmem>>, vector<64x128xf32>
    %cst = arith.constant dense<0.000000e+00> : vector<2x128xf32>
    %2 = tpu.matmul %0, %1, %cst {dimension_numbers = #tpu.dot_dimension_numbers<[1], [0], [0], [1], [0, 0, 1, 1], [], []>} : vector<2x64xf32>, vector<64x128xf32>, vector<2x128xf32> -> vector<2x128xf32>
    %c0_3 = arith.constant 0 : index
    %c0_4 = arith.constant 0 : index
    %3 = vector.load %arg3[%c0_3, %c0_4] : memref<1x128xf32, #tpu.memory_space<vmem>>, vector<1x128xf32>
    %4 = vector.broadcast %3 : vector<1x128xf32> to vector<2x128xf32>
    %5 = arith.addf %2, %4 : vector<2x128xf32>
    %c0_5 = arith.constant 0 : index
    %c0_6 = arith.constant 0 : index
    %6 = vector.load %arg4[%c0_5, %c0_6] : memref<128x256xf32, #tpu.memory_space<vmem>>, vector<128x256xf32>
    %cst_7 = arith.constant dense<0.000000e+00> : vector<2x256xf32>
    %7 = tpu.matmul %5, %6, %cst_7 {dimension_numbers = #tpu.dot_dimension_numbers<[1], [0], [0], [1], [0, 0, 1, 1], [], []>} : vector<2x128xf32>, vector<128x256xf32>, vector<2x256xf32> -> vector<2x256xf32>
    %c0_8 = arith.constant 0 : index
    %c0_9 = arith.constant 0 : index
    %8 = vector.load %arg5[%c0_8, %c0_9] : memref<1x256xf32, #tpu.memory_space<vmem>>, vector<1x256xf32>
    %9 = vector.broadcast %8 : vector<1x256xf32> to vector<2x256xf32>
    %10 = arith.addf %7, %9 : vector<2x256xf32>
    %cst_10 = arith.constant 0.000000e+00 : f32
    %11 = vector.broadcast %cst_10 : f32 to vector<2x256xf32>
    %12 = arith.maximumf %10, %11 : vector<2x256xf32>
    %c0_11 = arith.constant 0 : index
    %c0_12 = arith.constant 0 : index
    %13 = vector.load %arg6[%c0_11, %c0_12] : memref<2x256xf32, #tpu.memory_space<vmem>>, vector<2x256xf32>
    tpu.vector_store %arg6[%c0_11, %c0_12], %12 {strides = array<i32>} : memref<2x256xf32, #tpu.memory_space<vmem>>, vector<2x256xf32>,
    return
  }
  func.func @transform_0(%arg0: i32) -> (i32, i32) {
    %c0_i32 = arith.constant 0 : i32
    %c0_i32_0 = arith.constant 0 : i32
    %c0_i32_1 = arith.constant 0 : i32
    return %c0_i32, %c0_i32_0 : i32, i32
  }
  func.func @transform_1(%arg0: i32) -> (i32, i32) {
    %c0_i32 = arith.constant 0 : i32
    %c0_i32_0 = arith.constant 0 : i32
    %c0_i32_1 = arith.constant 0 : i32
    return %c0_i32, %c0_i32_0 : i32, i32
  }
  func.func @transform_2(%arg0: i32) -> (i32, i32) {
    %c0_i32 = arith.constant 0 : i32
    %c0_i32_0 = arith.constant 0 : i32
    %c0_i32_1 = arith.constant 0 : i32
    return %c0_i32, %c0_i32_0 : i32, i32
  }
  func.func @transform_3(%arg0: i32) -> (i32, i32) {
    %c0_i32 = arith.constant 0 : i32
    %c0_i32_0 = arith.constant 0 : i32
    %c0_i32_1 = arith.constant 0 : i32
    return %c0_i32, %c0_i32_0 : i32, i32
  }
  func.func @transform_4(%arg0: i32) -> (i32, i32) {
    %c0_i32 = arith.constant 0 : i32
    %c0_i32_0 = arith.constant 0 : i32
    %c0_i32_1 = arith.constant 0 : i32
    return %c0_i32, %c0_i32_0 : i32, i32
  }
  func.func @transform_5(%arg0: i32) -> (i32, i32) {
    %c0_i32 = arith.constant 0 : i32
    %c0_i32_0 = arith.constant 0 : i32
    %c0_i32_1 = arith.constant 0 : i32
    return %c0_i32, %c0_i32_0 : i32, i32
  }
}

module attributes {stable_mosaic.version = 11 : i64} {
  func.func @_linear_relu_kernel(%arg0: i32, %arg1: memref<8x64xf32, #tpu.memory_space<vmem>>, %arg2: memref<64x128xf32, #tpu.memory_space<vmem>>, %arg3: memref<1x128xf32, #tpu.memory_space<vmem>>, %arg4: memref<8x128xf32, #tpu.memory_space<vmem>>) attributes {dimension_semantics = [#tpu.dimension_semantics<arbitrary>], iteration_bounds = array<i64: 1>, scalar_prefetch = 0 : i64, scratch_operands = 0 : i64, tpu.core_type = #tpu.core_type<tc>, window_params = [{pipeline_mode = #tpu.pipeline_mode<synchronous>, transform_indices = @transform_0, window_bounds = array<i64: 8, 64>}, {pipeline_mode = #tpu.pipeline_mode<synchronous>, transform_indices = @transform_1, window_bounds = array<i64: 64, 128>}, {pipeline_mode = #tpu.pipeline_mode<synchronous>, transform_indices = @transform_2, window_bounds = array<i64: 1, 128>}, {pipeline_mode = #tpu.pipeline_mode<synchronous>, transform_indices = @transform_3, window_bounds = array<i64: 8, 128>}]} {
    %c0 = arith.constant 0 : index
    %c0_0 = arith.constant 0 : index
    %0 = vector.load %arg1[%c0, %c0_0] : memref<8x64xf32, #tpu.memory_space<vmem>>, vector<8x64xf32>
    %c0_1 = arith.constant 0 : index
    %c0_2 = arith.constant 0 : index
    %1 = vector.load %arg2[%c0_1, %c0_2] : memref<64x128xf32, #tpu.memory_space<vmem>>, vector<64x128xf32>
    %cst = arith.constant dense<0.000000e+00> : vector<8x128xf32>
    %2 = tpu.matmul %0, %1, %cst {dimension_numbers = #tpu.dot_dimension_numbers<[1], [0], [0], [1], [0, 0, 1, 1], [], []>} : vector<8x64xf32>, vector<64x128xf32>, vector<8x128xf32> -> vector<8x128xf32>
    %c0_3 = arith.constant 0 : index
    %c0_4 = arith.constant 0 : index
    %3 = vector.load %arg3[%c0_3, %c0_4] : memref<1x128xf32, #tpu.memory_space<vmem>>, vector<1x128xf32>
    %4 = vector.broadcast %3 : vector<1x128xf32> to vector<8x128xf32>
    %5 = arith.addf %2, %4 : vector<8x128xf32>
    %cst_5 = arith.constant 0.000000e+00 : f32
    %6 = vector.broadcast %cst_5 : f32 to vector<8x128xf32>
    %7 = arith.maximumf %5, %6 : vector<8x128xf32>
    %c0_6 = arith.constant 0 : index
    %c0_7 = arith.constant 0 : index
    %8 = vector.load %arg4[%c0_6, %c0_7] : memref<8x128xf32, #tpu.memory_space<vmem>>, vector<8x128xf32>
    tpu.vector_store %arg4[%c0_6, %c0_7], %7 {strides = array<i32>} : memref<8x128xf32, #tpu.memory_space<vmem>>, vector<8x128xf32>,
    return
  }
  func.func @transform_0(%arg0: i32) -> (i32, i32) {
    %c0_i32 = arith.constant 0 : i32
    %c0_i32_0 = arith.constant 0 : i32
    %c0_i32_1 = arith.constant 0 : i32
    return %c0_i32, %c0_i32_0 : i32, i32
  }
  func.func @transform_1(%arg0: i32) -> (i32, i32) {
    %c0_i32 = arith.constant 0 : i32
    %c0_i32_0 = arith.constant 0 : i32
    %c0_i32_1 = arith.constant 0 : i32
    return %c0_i32, %c0_i32_0 : i32, i32
  }
  func.func @transform_2(%arg0: i32) -> (i32, i32) {
    %c0_i32 = arith.constant 0 : i32
    %c0_i32_0 = arith.constant 0 : i32
    %c0_i32_1 = arith.constant 0 : i32
    return %c0_i32, %c0_i32_0 : i32, i32
  }
  func.func @transform_3(%arg0: i32) -> (i32, i32) {
    %c0_i32 = arith.constant 0 : i32
    %c0_i32_0 = arith.constant 0 : i32
    %c0_i32_1 = arith.constant 0 : i32
    return %c0_i32, %c0_i32_0 : i32, i32
  }
}

module attributes {stable_mosaic.version = 11 : i64} {
  func.func @_linear_relu_kernel(%arg0: i32, %arg1: memref<32x32xf32, #tpu.memory_space<vmem>>, %arg2: memref<32x128xf32, #tpu.memory_space<vmem>>, %arg3: memref<1x128xf32, #tpu.memory_space<vmem>>, %arg4: memref<32x128xf32, #tpu.memory_space<vmem>>) attributes {dimension_semantics = [#tpu.dimension_semantics<arbitrary>], iteration_bounds = array<i64: 1>, scalar_prefetch = 0 : i64, scratch_operands = 0 : i64, tpu.core_type = #tpu.core_type<tc>, window_params = [{pipeline_mode = #tpu.pipeline_mode<synchronous>, transform_indices = @transform_0, window_bounds = array<i64: 32, 32>}, {pipeline_mode = #tpu.pipeline_mode<synchronous>, transform_indices = @transform_1, window_bounds = array<i64: 32, 128>}, {pipeline_mode = #tpu.pipeline_mode<synchronous>, transform_indices = @transform_2, window_bounds = array<i64: 1, 128>}, {pipeline_mode = #tpu.pipeline_mode<synchronous>, transform_indices = @transform_3, window_bounds = array<i64: 32, 128>}]} {
    %c0 = arith.constant 0 : index
    %c0_0 = arith.constant 0 : index
    %0 = vector.load %arg1[%c0, %c0_0] : memref<32x32xf32, #tpu.memory_space<vmem>>, vector<32x32xf32>
    %c0_1 = arith.constant 0 : index
    %c0_2 = arith.constant 0 : index
    %1 = vector.load %arg2[%c0_1, %c0_2] : memref<32x128xf32, #tpu.memory_space<vmem>>, vector<32x128xf32>
    %cst = arith.constant dense<0.000000e+00> : vector<32x128xf32>
    %2 = tpu.matmul %0, %1, %cst {dimension_numbers = #tpu.dot_dimension_numbers<[1], [0], [0], [1], [0, 0, 1, 1], [], []>} : vector<32x32xf32>, vector<32x128xf32>, vector<32x128xf32> -> vector<32x128xf32>
    %c0_3 = arith.constant 0 : index
    %c0_4 = arith.constant 0 : index
    %3 = vector.load %arg3[%c0_3, %c0_4] : memref<1x128xf32, #tpu.memory_space<vmem>>, vector<1x128xf32>
    %4 = vector.broadcast %3 : vector<1x128xf32> to vector<32x128xf32>
    %5 = arith.addf %2, %4 : vector<32x128xf32>
    %cst_5 = arith.constant 0.000000e+00 : f32
    %6 = vector.broadcast %cst_5 : f32 to vector<32x128xf32>
    %7 = arith.maximumf %5, %6 : vector<32x128xf32>
    %c0_6 = arith.constant 0 : index
    %c0_7 = arith.constant 0 : index
    %8 = vector.load %arg4[%c0_6, %c0_7] : memref<32x128xf32, #tpu.memory_space<vmem>>, vector<32x128xf32>
    tpu.vector_store %arg4[%c0_6, %c0_7], %7 {strides = array<i32>} : memref<32x128xf32, #tpu.memory_space<vmem>>, vector<32x128xf32>,
    return
  }
  func.func @transform_0(%arg0: i32) -> (i32, i32) {
    %c0_i32 = arith.constant 0 : i32
    %c0_i32_0 = arith.constant 0 : i32
    %c0_i32_1 = arith.constant 0 : i32
    return %c0_i32, %c0_i32_0 : i32, i32
  }
  func.func @transform_1(%arg0: i32) -> (i32, i32) {
    %c0_i32 = arith.constant 0 : i32
    %c0_i32_0 = arith.constant 0 : i32
    %c0_i32_1 = arith.constant 0 : i32
    return %c0_i32, %c0_i32_0 : i32, i32
  }
  func.func @transform_2(%arg0: i32) -> (i32, i32) {
    %c0_i32 = arith.constant 0 : i32
    %c0_i32_0 = arith.constant 0 : i32
    %c0_i32_1 = arith.constant 0 : i32
    return %c0_i32, %c0_i32_0 : i32, i32
  }
  func.func @transform_3(%arg0: i32) -> (i32, i32) {
    %c0_i32 = arith.constant 0 : i32
    %c0_i32_0 = arith.constant 0 : i32
    %c0_i32_1 = arith.constant 0 : i32
    return %c0_i32, %c0_i32_0 : i32, i32
  }
}

module attributes {stable_mosaic.version = 11 : i64} {
  func.func @_linear_relu_kernel(%arg0: i32, %arg1: memref<128x16xf32, #tpu.memory_space<vmem>>, %arg2: memref<16x128xf32, #tpu.memory_space<vmem>>, %arg3: memref<1x128xf32, #tpu.memory_space<vmem>>, %arg4: memref<128x128xf32, #tpu.memory_space<vmem>>) attributes {dimension_semantics = [#tpu.dimension_semantics<arbitrary>], iteration_bounds = array<i64: 1>, scalar_prefetch = 0 : i64, scratch_operands = 0 : i64, tpu.core_type = #tpu.core_type<tc>, window_params = [{pipeline_mode = #tpu.pipeline_mode<synchronous>, transform_indices = @transform_0, window_bounds = array<i64: 128, 16>}, {pipeline_mode = #tpu.pipeline_mode<synchronous>, transform_indices = @transform_1, window_bounds = array<i64: 16, 128>}, {pipeline_mode = #tpu.pipeline_mode<synchronous>, transform_indices = @transform_2, window_bounds = array<i64: 1, 128>}, {pipeline_mode = #tpu.pipeline_mode<synchronous>, transform_indices = @transform_3, window_bounds = array<i64: 128, 128>}]} {
    %c0 = arith.constant 0 : index
    %c0_0 = arith.constant 0 : index
    %0 = vector.load %arg1[%c0, %c0_0] : memref<128x16xf32, #tpu.memory_space<vmem>>, vector<128x16xf32>
    %c0_1 = arith.constant 0 : index
    %c0_2 = arith.constant 0 : index
    %1 = vector.load %arg2[%c0_1, %c0_2] : memref<16x128xf32, #tpu.memory_space<vmem>>, vector<16x128xf32>
    %cst = arith.constant dense<0.000000e+00> : vector<128x128xf32>
    %2 = tpu.matmul %0, %1, %cst {dimension_numbers = #tpu.dot_dimension_numbers<[1], [0], [0], [1], [0, 0, 1, 1], [], []>} : vector<128x16xf32>, vector<16x128xf32>, vector<128x128xf32> -> vector<128x128xf32>
    %c0_3 = arith.constant 0 : index
    %c0_4 = arith.constant 0 : index
    %3 = vector.load %arg3[%c0_3, %c0_4] : memref<1x128xf32, #tpu.memory_space<vmem>>, vector<1x128xf32>
    %4 = vector.broadcast %3 : vector<1x128xf32> to vector<128x128xf32>
    %5 = arith.addf %2, %4 : vector<128x128xf32>
    %cst_5 = arith.constant 0.000000e+00 : f32
    %6 = vector.broadcast %cst_5 : f32 to vector<128x128xf32>
    %7 = arith.maximumf %5, %6 : vector<128x128xf32>
    %c0_6 = arith.constant 0 : index
    %c0_7 = arith.constant 0 : index
    %8 = vector.load %arg4[%c0_6, %c0_7] : memref<128x128xf32, #tpu.memory_space<vmem>>, vector<128x128xf32>
    tpu.vector_store %arg4[%c0_6, %c0_7], %7 {strides = array<i32>} : memref<128x128xf32, #tpu.memory_space<vmem>>, vector<128x128xf32>,
    return
  }
  func.func @transform_0(%arg0: i32) -> (i32, i32) {
    %c0_i32 = arith.constant 0 : i32
    %c0_i32_0 = arith.constant 0 : i32
    %c0_i32_1 = arith.constant 0 : i32
    return %c0_i32, %c0_i32_0 : i32, i32
  }
  func.func @transform_1(%arg0: i32) -> (i32, i32) {
    %c0_i32 = arith.constant 0 : i32
    %c0_i32_0 = arith.constant 0 : i32
    %c0_i32_1 = arith.constant 0 : i32
    return %c0_i32, %c0_i32_0 : i32, i32
  }
  func.func @transform_2(%arg0: i32) -> (i32, i32) {
    %c0_i32 = arith.constant 0 : i32
    %c0_i32_0 = arith.constant 0 : i32
    %c0_i32_1 = arith.constant 0 : i32
    return %c0_i32, %c0_i32_0 : i32, i32
  }
  func.func @transform_3(%arg0: i32) -> (i32, i32) {
    %c0_i32 = arith.constant 0 : i32
    %c0_i32_0 = arith.constant 0 : i32
    %c0_i32_1 = arith.constant 0 : i32
    return %c0_i32, %c0_i32_0 : i32, i32
  }
}

module attributes {stable_mosaic.version = 11 : i64} {
  func.func @_linear_relu_kernel(%arg0: i32, %arg1: memref<512x8xf32, #tpu.memory_space<vmem>>, %arg2: memref<8x128xf32, #tpu.memory_space<vmem>>, %arg3: memref<1x128xf32, #tpu.memory_space<vmem>>, %arg4: memref<512x128xf32, #tpu.memory_space<vmem>>) attributes {dimension_semantics = [#tpu.dimension_semantics<arbitrary>], iteration_bounds = array<i64: 1>, scalar_prefetch = 0 : i64, scratch_operands = 0 : i64, tpu.core_type = #tpu.core_type<tc>, window_params = [{pipeline_mode = #tpu.pipeline_mode<synchronous>, transform_indices = @transform_0, window_bounds = array<i64: 512, 8>}, {pipeline_mode = #tpu.pipeline_mode<synchronous>, transform_indices = @transform_1, window_bounds = array<i64: 8, 128>}, {pipeline_mode = #tpu.pipeline_mode<synchronous>, transform_indices = @transform_2, window_bounds = array<i64: 1, 128>}, {pipeline_mode = #tpu.pipeline_mode<synchronous>, transform_indices = @transform_3, window_bounds = array<i64: 512, 128>}]} {
    %c0 = arith.constant 0 : index
    %c0_0 = arith.constant 0 : index
    %0 = vector.load %arg1[%c0, %c0_0] : memref<512x8xf32, #tpu.memory_space<vmem>>, vector<512x8xf32>
    %c0_1 = arith.constant 0 : index
    %c0_2 = arith.constant 0 : index
    %1 = vector.load %arg2[%c0_1, %c0_2] : memref<8x128xf32, #tpu.memory_space<vmem>>, vector<8x128xf32>
    %cst = arith.constant dense<0.000000e+00> : vector<512x128xf32>
    %2 = tpu.matmul %0, %1, %cst {dimension_numbers = #tpu.dot_dimension_numbers<[1], [0], [0], [1], [0, 0, 1, 1], [], []>} : vector<512x8xf32>, vector<8x128xf32>, vector<512x128xf32> -> vector<512x128xf32>
    %c0_3 = arith.constant 0 : index
    %c0_4 = arith.constant 0 : index
    %3 = vector.load %arg3[%c0_3, %c0_4] : memref<1x128xf32, #tpu.memory_space<vmem>>, vector<1x128xf32>
    %4 = vector.broadcast %3 : vector<1x128xf32> to vector<512x128xf32>
    %5 = arith.addf %2, %4 : vector<512x128xf32>
    %cst_5 = arith.constant 0.000000e+00 : f32
    %6 = vector.broadcast %cst_5 : f32 to vector<512x128xf32>
    %7 = arith.maximumf %5, %6 : vector<512x128xf32>
    %c0_6 = arith.constant 0 : index
    %c0_7 = arith.constant 0 : index
    %8 = vector.load %arg4[%c0_6, %c0_7] : memref<512x128xf32, #tpu.memory_space<vmem>>, vector<512x128xf32>
    tpu.vector_store %arg4[%c0_6, %c0_7], %7 {strides = array<i32>} : memref<512x128xf32, #tpu.memory_space<vmem>>, vector<512x128xf32>,
    return
  }
  func.func @transform_0(%arg0: i32) -> (i32, i32) {
    %c0_i32 = arith.constant 0 : i32
    %c0_i32_0 = arith.constant 0 : i32
    %c0_i32_1 = arith.constant 0 : i32
    return %c0_i32, %c0_i32_0 : i32, i32
  }
  func.func @transform_1(%arg0: i32) -> (i32, i32) {
    %c0_i32 = arith.constant 0 : i32
    %c0_i32_0 = arith.constant 0 : i32
    %c0_i32_1 = arith.constant 0 : i32
    return %c0_i32, %c0_i32_0 : i32, i32
  }
  func.func @transform_2(%arg0: i32) -> (i32, i32) {
    %c0_i32 = arith.constant 0 : i32
    %c0_i32_0 = arith.constant 0 : i32
    %c0_i32_1 = arith.constant 0 : i32
    return %c0_i32, %c0_i32_0 : i32, i32
  }
  func.func @transform_3(%arg0: i32) -> (i32, i32) {
    %c0_i32 = arith.constant 0 : i32
    %c0_i32_0 = arith.constant 0 : i32
    %c0_i32_1 = arith.constant 0 : i32
    return %c0_i32, %c0_i32_0 : i32, i32
  }
}

module attributes {stable_mosaic.version = 11 : i64} {
  func.func @_linear_relu_kernel(%arg0: i32, %arg1: memref<2048x4xf32, #tpu.memory_space<vmem>>, %arg2: memref<4x128xf32, #tpu.memory_space<vmem>>, %arg3: memref<1x128xf32, #tpu.memory_space<vmem>>, %arg4: memref<2048x128xf32, #tpu.memory_space<vmem>>) attributes {dimension_semantics = [#tpu.dimension_semantics<arbitrary>], iteration_bounds = array<i64: 1>, scalar_prefetch = 0 : i64, scratch_operands = 0 : i64, tpu.core_type = #tpu.core_type<tc>, window_params = [{pipeline_mode = #tpu.pipeline_mode<synchronous>, transform_indices = @transform_0, window_bounds = array<i64: 2048, 4>}, {pipeline_mode = #tpu.pipeline_mode<synchronous>, transform_indices = @transform_1, window_bounds = array<i64: 4, 128>}, {pipeline_mode = #tpu.pipeline_mode<synchronous>, transform_indices = @transform_2, window_bounds = array<i64: 1, 128>}, {pipeline_mode = #tpu.pipeline_mode<synchronous>, transform_indices = @transform_3, window_bounds = array<i64: 2048, 128>}]} {
    %c0 = arith.constant 0 : index
    %c0_0 = arith.constant 0 : index
    %0 = vector.load %arg1[%c0, %c0_0] : memref<2048x4xf32, #tpu.memory_space<vmem>>, vector<2048x4xf32>
    %c0_1 = arith.constant 0 : index
    %c0_2 = arith.constant 0 : index
    %1 = vector.load %arg2[%c0_1, %c0_2] : memref<4x128xf32, #tpu.memory_space<vmem>>, vector<4x128xf32>
    %cst = arith.constant dense<0.000000e+00> : vector<2048x128xf32>
    %2 = tpu.matmul %0, %1, %cst {dimension_numbers = #tpu.dot_dimension_numbers<[1], [0], [0], [1], [0, 0, 1, 1], [], []>} : vector<2048x4xf32>, vector<4x128xf32>, vector<2048x128xf32> -> vector<2048x128xf32>
    %c0_3 = arith.constant 0 : index
    %c0_4 = arith.constant 0 : index
    %3 = vector.load %arg3[%c0_3, %c0_4] : memref<1x128xf32, #tpu.memory_space<vmem>>, vector<1x128xf32>
    %4 = vector.broadcast %3 : vector<1x128xf32> to vector<2048x128xf32>
    %5 = arith.addf %2, %4 : vector<2048x128xf32>
    %cst_5 = arith.constant 0.000000e+00 : f32
    %6 = vector.broadcast %cst_5 : f32 to vector<2048x128xf32>
    %7 = arith.maximumf %5, %6 : vector<2048x128xf32>
    %c0_6 = arith.constant 0 : index
    %c0_7 = arith.constant 0 : index
    %8 = vector.load %arg4[%c0_6, %c0_7] : memref<2048x128xf32, #tpu.memory_space<vmem>>, vector<2048x128xf32>
    tpu.vector_store %arg4[%c0_6, %c0_7], %7 {strides = array<i32>} : memref<2048x128xf32, #tpu.memory_space<vmem>>, vector<2048x128xf32>,
    return
  }
  func.func @transform_0(%arg0: i32) -> (i32, i32) {
    %c0_i32 = arith.constant 0 : i32
    %c0_i32_0 = arith.constant 0 : i32
    %c0_i32_1 = arith.constant 0 : i32
    return %c0_i32, %c0_i32_0 : i32, i32
  }
  func.func @transform_1(%arg0: i32) -> (i32, i32) {
    %c0_i32 = arith.constant 0 : i32
    %c0_i32_0 = arith.constant 0 : i32
    %c0_i32_1 = arith.constant 0 : i32
    return %c0_i32, %c0_i32_0 : i32, i32
  }
  func.func @transform_2(%arg0: i32) -> (i32, i32) {
    %c0_i32 = arith.constant 0 : i32
    %c0_i32_0 = arith.constant 0 : i32
    %c0_i32_1 = arith.constant 0 : i32
    return %c0_i32, %c0_i32_0 : i32, i32
  }
  func.func @transform_3(%arg0: i32) -> (i32, i32) {
    %c0_i32 = arith.constant 0 : i32
    %c0_i32_0 = arith.constant 0 : i32
    %c0_i32_1 = arith.constant 0 : i32
    return %c0_i32, %c0_i32_0 : i32, i32
  }
}

</mosaic_0001>

<bundles_post_ra>
// kernel: decoder_forward.6
= control target key start
LH: loop header
LB: loop body
LE: loop exit
PB: predicated region body
PF: predicated region fallthrough
CT: control target
= control target key end

     0   :  { %10 = vsyncpa [#allocation3], 0  ;;  %s515_s0 = inlined_call_operand.hbm [shape: f32[2,64], index: 0, kind: input, shape index: {}]   ;;  %s516_s1 = inlined_call_operand.hbm [shape: f32[64,128], index: 1, kind: input, shape index: {}]   ;;  %s517_s2 = inlined_call_operand.hbm [shape: f32[1,128], index: 2, kind: input, shape index: {}]   ;;  %s518_s3 = inlined_call_operand.hbm [shape: f32[128,256], index: 3, kind: input, shape index: {}]   ;;  %s519_s4 = inlined_call_operand.hbm [shape: f32[1,256], index: 4, kind: input, shape index: {}]   ;;  %s520_s5 = inlined_call_operand.vmem [shape: f32[2,256], index: 5, kind: output, shape index: {}]  }
   0x1   :  { %11 = vsyncpa [#allocation5], 0 }
   0x2   :  { %12 = vsyncpa [#allocation8], 0  ;;  %s456_s18 = smov [#allocation4]  }
   0x3   :  { %s28_s19 = sshll.u32 %s456_s18, 4  ;;  %s29_s19 = int_to_ptr.vmem [resolvable:$true] %s28_s19 }
   0x4   :  { %s358_s20 = scalar_lea.vmem %s29_s19, 1024  ;;  %p363_p1 = scmp.lt.s32.totalorder %s29_s19, %s29_s19 }
   0x5   :  { %p359_p0 = scmp.ne.s32.totalorder %s29_s19, %s358_s20  ;;  %p364_p2 = scmp.lt.s32.totalorder %s358_s20, %s358_s20 }
   0x7   :  { %p365_p3 = por %p364_p2, %p363_p1 }
   0x9   :  { %p366_p4 = pnand %p365_p3, %p359_p0 }
   0xb   :  { %369 = shalt.err (!%p366_p4)
}
   0xc   :  { %s457_s21 = smov 128   ;;  %s458_s22 = smov 8  }
   0xd   :  { %34 = dma.hbm_to_vmem [thread:$0]  %s516_s1, 1024, %s29_s19, [#allocation5], %s457_s21, %s457_s21, %s458_s22  }
   0xe   :  { %s459_s25 = smov [#allocation7]  }
   0xf   :  { %s50_s26 = sshll.u32 %s459_s25, 4  ;;  %s51_s26 = int_to_ptr.vmem [resolvable:$true] %s50_s26 }
  0x10   :  { %s378_s27 = scalar_lea.vmem %s51_s26, 4096  ;;  %p383_p6 = scmp.lt.s32.totalorder %s51_s26, %s51_s26 }
  0x11   :  { %p379_p5 = scmp.ne.s32.totalorder %s51_s26, %s378_s27  ;;  %p384_p7 = scmp.lt.s32.totalorder %s378_s27, %s378_s27 }
  0x13   :  { %p385_p8 = por %p384_p7, %p383_p6 }
  0x15   :  { %p386_p9 = pnand %p385_p8, %p379_p5 }
  0x17   :  { %389 = shalt.err (!%p386_p9)
}
  0x18   :  { %s460_s28 = smov 256   ;;  %s461_s29 = smov 16  }
  0x19   :  { %56 = dma.hbm_to_vmem [thread:$0]  %s518_s3, 4096, %s51_s26, [#allocation8], %s460_s28, %s460_s28, %s461_s29  }
  0x1a   :  { %s462_s7 = smov [#allocation2]   ;;  %s463_s9 = smov [#allocation6]  }
  0x1b   :  { %s19_s8 = sshll.u32 %s462_s7, 4  ;;  %s41_s1 = sshll.u32 %s463_s9, 4  ;;  %s20_s8 = int_to_ptr.vmem [resolvable:$true] %s19_s8  ;;  %s42_s1 = int_to_ptr.vmem [resolvable:$true] %s41_s1 }
  0x1c   :  { %s398_s10 = scalar_lea.vmem %s20_s8, 32  ;;  %p403_p11 = scmp.lt.s32.totalorder %s20_s8, %s20_s8 }
  0x1d   :  { %p399_p10 = scmp.ne.s32.totalorder %s20_s8, %s398_s10  ;;  %p404_p12 = scmp.lt.s32.totalorder %s398_s10, %s398_s10 }
  0x1f   :  { %p405_p13 = por %p404_p12, %p403_p11 }
  0x21   :  { %p406_p0 = pnand %p405_p13, %p399_p10 }
  0x23   :  { %409 = shalt.err (!%p406_p0)
}
  0x24   :  { %22 = dma.hbm_to_vmem [thread:$0]  %s515_s0, 32, %s20_s8, [#allocation3]  }
  0x25   :  { %s418_s13 = scalar_lea.vmem %s42_s1, 16  ;;  %s422_s3 = scalar_lea.vmem %s42_s1, 32 }
  0x26   :  { %p419_p1 = scmp.ne.s32.totalorder %s42_s1, %s418_s13  ;;  %p423_p2 = scmp.lt.s32.totalorder %s42_s1, %s42_s1 }
  0x27   :  { %p424_p3 = scmp.lt.s32.totalorder %s422_s3, %s418_s13 }
  0x29   :  { %p425_p4 = por %p424_p3, %p423_p2 }
  0x2b   :  { %p426_p5 = pnand %p425_p4, %p419_p1 }
  0x2d   :  { %429 = shalt.err (!%p426_p5)
}
  0x2e   :  { %44 = dma.hbm_to_vmem [thread:$0]  %s517_s2, 16, %s42_s1, [#allocation5]  }
  0x2f   :  { %s464_s16 = smov [#allocation9]  }
  0x30   :  { %s63_s17 = sshll.u32 %s464_s16, 4  ;;  %s64_s17 = int_to_ptr.vmem [resolvable:$true] %s63_s17 }
  0x31   :  { %s438_s18 = scalar_lea.vmem %s64_s17, 32  ;;  %p443_p7 = scmp.lt.s32.totalorder %s64_s17, %s64_s17 }
  0x32   :  { %p439_p6 = scmp.ne.s32.totalorder %s64_s17, %s438_s18  ;;  %p444_p8 = scmp.lt.s32.totalorder %s438_s18, %s438_s18 }
  0x34   :  { %p445_p9 = por %p444_p8, %p443_p7 }
  0x36   :  { %p446_p10 = pnand %p445_p9, %p439_p6 }
  0x38   :  { %449 = shalt.err (!%p446_p10)
}
  0x39   :  { %66 = dma.hbm_to_vmem [thread:$0]  %s519_s4, 32, %s64_s17, [#allocation8]  }
  0x3a   :  { %450 = dma.done.wait [#allocation3], 32  }
  0x3b   :  { %451 = vsyncadd [#allocation3], 4294967264 }
  0x3c   :  { %452 = dma.done.wait [#allocation5], 1040  }
  0x3d   :  { %453 = vsyncadd [#allocation5], 4294966256 }
  0x3e   :  { %454 = dma.done.wait [#allocation8], 4128  }
  0x3f   :  { %455 = vsyncadd [#allocation8], 4294963168  ;;  %v465_v0 = vmov 0.0   ;;  %vm466_vm0 = vmmov 0   ;;  %v90_v1 = vld [vmem:[#allocation4 + $0x38] sm:$0xff]  ;;  %v89_v2 = vld [vmem:[#allocation4 + $0x30] sm:$0xff]  ;;  %v206_v46 = vlaneseq }
  0x40   :  { %320 = vmatprep.subr.mxu0 %v465_v0  ;;  %336 = vmatprep.mubr.msk.f32.mxu0 %vm466_vm0, %v465_v0  ;;  %v88_v3 = vld [vmem:[#allocation4 + $0x28] sm:$0xff]  ;;  %v203_v4 = vld [vmem:[#allocation7 + $0xf8] sm:$0xff]  ;;  %v202_v5 = vld [vmem:[#allocation7 + $0xf0] sm:$0xff]  ;;  %vm98_vm1 = vcmask 523264  }
  0x41   :  { %280 = vmatprep.mubr.f32.mxu1 %v465_v0  ;;  %321 = vmatpush3.msra.mxu0 %v90_v1  ;;  %v201_v6 = vld [vmem:[#allocation7 + $0xe8] sm:$0xff]  ;;  %v87_v7 = vld [vmem:[#allocation4 + $0x20] sm:$0xff]  ;;  %v86_v10 = vld [vmem:[#allocation4 + $0x18] sm:$0xff]  ;;  %v207_v47 = vshrl.u32 %v206_v46, 7 }
  0x42   :  { %322 = vmatprep.subr.mxu0 %v465_v0  ;;  %216 = vmatprep.subr.mxu1 %v203_v4  ;;  %v200_v8 = vld [vmem:[#allocation7 + $0xe0] sm:$0xff]  ;;  %v199_v9 = vld [vmem:[#allocation7 + $0xd8] sm:$0xff]  ;;  %v198_v11 = vld [vmem:[#allocation7 + $0xd0] sm:$0xff] }
  0x43   :  { %323 = vmatpush3.msra.mxu0 %v89_v2  ;;  %217 = vmatpush1.msra.mxu1 %v202_v5  ;;  %v197_v12 = vld [vmem:[#allocation7 + $0xc8] sm:$0xff]  ;;  %v196_v14 = vld [vmem:[#allocation7 + $0xc0] sm:$0xff]  ;;  %v195_v15 = vld [vmem:[#allocation7 + $0xb8] sm:$0xff]  ;;  %v208_v48 = vsub.s32 0, %v207_v47  ;;  %v212_v50 = vsub.s32 1, %v207_v47 }
  0x44   :  { %324 = vmatprep.subr.mxu0 %v465_v0  ;;  %218 = vmatprep.subr.mxu1 %v201_v6  ;;  %v85_v13 = vld [vmem:[#allocation4 + $0x10] sm:$0xff]  ;;  %v84_v16 = vld [vmem:[#allocation4 + $0x8] sm:$0xff]  ;;  %v83_v19 = vld [vmem:[#allocation4] sm:$0xff] }
  0x45   :  { %325 = vmatpush3.msra.mxu0 %v88_v3  ;;  %219 = vmatpush1.msra.mxu1 %v200_v8  ;;  %v194_v17 = vld [vmem:[#allocation7 + $0xb0] sm:$0xff]  ;;  %v193_v18 = vld [vmem:[#allocation7 + $0xa8] sm:$0xff]  ;;  %v192_v20 = vld [vmem:[#allocation7 + $0xa0] sm:$0xff] }
  0x46   :  { %326 = vmatprep.subr.mxu0 %v465_v0  ;;  %220 = vmatprep.subr.mxu1 %v199_v9  ;;  %v82_v21 = vld [vmem:[#allocation2] sm:$0x3]  ;;  %v190_v23 = vld [vmem:[#allocation7 + $0x90] sm:$0xff]  ;;  %v189_v24 = vld [vmem:[#allocation7 + $0x88] sm:$0xff] }
  0x47   :  { %327 = vmatpush3.msra.mxu0 %v87_v7  ;;  %221 = vmatpush1.msra.mxu1 %v198_v11  ;;  %v191_v22 = vld [vmem:[#allocation7 + $0x98] sm:$0xff]  ;;  %v188_v25 = vld [vmem:[#allocation7 + $0x80] sm:$0xff]  ;;  %v186_v27 = vld [vmem:[#allocation7 + $0x70] sm:$0xff] }
  0x48   :  { %328 = vmatprep.subr.mxu0 %v465_v0  ;;  %222 = vmatprep.subr.mxu1 %v197_v12  ;;  %v187_v26 = vld [vmem:[#allocation7 + $0x78] sm:$0xff]  ;;  %v185_v28 = vld [vmem:[#allocation7 + $0x68] sm:$0xff]  ;;  %v184_v29 = vld [vmem:[#allocation7 + $0x60] sm:$0xff] }
  0x49   :  { %329 = vmatpush3.msra.mxu0 %v86_v10  ;;  %223 = vmatpush1.msra.mxu1 %v196_v14  ;;  %v183_v30 = vld [vmem:[#allocation7 + $0x58] sm:$0xff]  ;;  %v182_v31 = vld [vmem:[#allocation7 + $0x50] sm:$0xff]  ;;  %v181_v32 = vld [vmem:[#allocation7 + $0x48] sm:$0xff] }
  0x4a   :  { %330 = vmatprep.subr.mxu0 %v465_v0  ;;  %224 = vmatprep.subr.mxu1 %v195_v15  ;;  %v180_v33 = vld [vmem:[#allocation7 + $0x40] sm:$0xff]  ;;  %v179_v34 = vld [vmem:[#allocation7 + $0x38] sm:$0xff]  ;;  %v178_v35 = vld [vmem:[#allocation7 + $0x30] sm:$0xff] }
  0x4b   :  { %331 = vmatpush3.msra.mxu0 %v85_v13  ;;  %225 = vmatpush1.msra.mxu1 %v194_v17  ;;  %v177_v36 = vld [vmem:[#allocation7 + $0x28] sm:$0xff]  ;;  %v176_v37 = vld [vmem:[#allocation7 + $0x20] sm:$0xff]  ;;  %v175_v38 = vld [vmem:[#allocation7 + $0x18] sm:$0xff] }
  0x4c   :  { %332 = vmatprep.subr.mxu0 %v465_v0  ;;  %226 = vmatprep.subr.mxu1 %v193_v18  ;;  %v174_v39 = vld [vmem:[#allocation7 + $0x10] sm:$0xff]  ;;  %v173_v40 = vld [vmem:[#allocation7 + $0x8] sm:$0xff]  ;;  %v172_v41 = vld [vmem:[#allocation7] sm:$0xff] }
  0x4d   :  { %333 = vmatpush3.msra.mxu0 %v84_v16  ;;  %227 = vmatpush1.msra.mxu1 %v192_v20  ;;  %v308_v42 = vld [vmem:[#allocation6] ss:$0 sm:$0xff]  ;;  %v204_v49 = vld [vmem:[#allocation9] sm:$0x3] }
  0x4e   :  { %334 = vmatprep.subr.mxu0 %v465_v0  ;;  %228 = vmatprep.subr.mxu1 %v191_v22  ;;  %v209_v51 = vrot.slane %v204_v49, %v208_v48  ;;  %v213_v52 = vrot.slane %v204_v49, %v212_v50 }
  0x4f   :  { %335 = vmatpush3.msra.mxu0 %v83_v19  ;;  %229 = vmatpush1.msra.mxu1 %v190_v23 }
  0x50   :  { %337 = vmatmul.mubr.msk.f32.vlgmr.msra.gmra.mxu0 %vm98_vm1, %v82_v21  ;;  %230 = vmatprep.subr.mxu1 %v189_v24 }
  0x51   :  { %231 = vmatpush1.msra.mxu1 %v188_v25 }
  0x52   :  { %232 = vmatprep.subr.mxu1 %v187_v26 }
  0x53   :  { %233 = vmatpush1.msra.mxu1 %v186_v27 }
  0x54   :  { %234 = vmatprep.subr.mxu1 %v185_v28 }
  0x55   :  { %235 = vmatpush1.msra.mxu1 %v184_v29 }
  0x56   :  { %236 = vmatprep.subr.mxu1 %v183_v30 }
  0x57   :  { %237 = vmatpush1.msra.mxu1 %v182_v31 }
  0x58   :  { %238 = vmatprep.subr.mxu1 %v181_v32 }
  0x59   :  { %239 = vmatpush1.msra.mxu1 %v180_v33 }
  0x5a   :  { %240 = vmatprep.subr.mxu1 %v179_v34 }
  0x5b   :  { %241 = vmatpush1.msra.mxu1 %v178_v35 }
  0x5c   :  { %242 = vmatprep.subr.mxu1 %v177_v36 }
  0x5d   :  { %243 = vmatpush1.msra.mxu1 %v176_v37 }
  0x5e   :  { %244 = vmatprep.subr.mxu1 %v175_v38 }
  0x5f   :  { %245 = vmatpush1.msra.mxu1 %v174_v39 }
  0x60   :  { %246 = vmatprep.subr.mxu1 %v173_v40 }
  0x61   :  { %247 = vmatpush1.msra.mxu1 %v172_v41 }
 0x110   :  { %v168_v43 = vpop.f32.mrf.mxu0 }
 0x111   :  { %v169_v44 = vadd.f32 %v308_v42, %v168_v43 }
 0x112   :  { %v338_v45 = vpop.f32.mrf.mxu0 }
 0x113   :  { %281 = vmatmul.mubr.f32.vlgmr.msra.gmra.mxu1 %v169_v44 }
 0x1d3   :  { %v282_v53 = vpop.f32.mrf.mxu1 }
 0x1d4   :  { %v283_v54 = vadd.f32 %v282_v53, %v209_v51 }
 0x1d5   :  { %v284_v55 = vpop.f32.mrf.mxu1 }
 0x1d6   :  { %v285_v56 = vadd.f32 %v284_v55, %v213_v52  ;;  %v287_v57 = vmax.f32 %v283_v54, 0.0 }
 0x1d8   :  { %v288_v58 = vmax.f32 %v285_v56, 0.0 }
 0x1da   :  { %v291_v59 = vcombine.low %v287_v57, %v288_v58 }
 0x1dc   :  { %310 = vst.sshfl [vmem:[%s520_s5] sm:$0x33 pattern:$0x76325410] %v291_v59 }
 0x1dd   :  { %305 = vsyncpa [#allocation3], 1 }
 0x1de   :  { %306 = vsyncpa [#allocation5], 1 }
 0x1df   :  { %307 = vsyncpa [#allocation8], 1 }

// kernel: decoder_forward.8
= control target key start
LH: loop header
LB: loop body
LE: loop exit
PB: predicated region body
PF: predicated region fallthrough
CT: control target
= control target key end

     0   :  { %8 = vsyncpa [#allocation3], 0  ;;  %s304_s0 = inlined_call_operand.vmem [shape: f32[32,32], index: 0, kind: input, shape index: {}]   ;;  %s305_s1 = inlined_call_operand.hbm [shape: f32[32,128], index: 1, kind: input, shape index: {}]   ;;  %s306_s2 = inlined_call_operand.hbm [shape: f32[1,128], index: 2, kind: input, shape index: {}]   ;;  %s307_s3 = inlined_call_operand.vmem [shape: f32[32,128], index: 3, kind: output, shape index: {}]  }
   0x1   :  { %9 = vsyncpa [#allocation5], 0  ;;  %s250_s12 = smov [#allocation2]  }
   0x2   :  { %s17_s13 = sshll.u32 %s250_s12, 4  ;;  %s18_s13 = int_to_ptr.vmem [resolvable:$true] %s17_s13 }
   0x3   :  { %s214_s14 = scalar_lea.vmem %s18_s13, 512  ;;  %p219_p1 = scmp.lt.s32.totalorder %s18_s13, %s18_s13 }
   0x4   :  { %p215_p0 = scmp.ne.s32.totalorder %s18_s13, %s214_s14  ;;  %p220_p2 = scmp.lt.s32.totalorder %s214_s14, %s214_s14 }
   0x6   :  { %p221_p3 = por %p220_p2, %p219_p1 }
   0x8   :  { %p222_p4 = pnand %p221_p3, %p215_p0 }
   0xa   :  { %225 = shalt.err (!%p222_p4)
}
   0xb   :  { %s251_s15 = smov 128   ;;  %s252_s16 = smov 8  }
   0xc   :  { %23 = dma.hbm_to_vmem [thread:$0]  %s305_s1, 512, %s18_s13, [#allocation3], %s251_s15, %s251_s15, %s252_s16  }
   0xd   :  { %s253_s19 = smov [#allocation4]  }
   0xe   :  { %s30_s20 = sshll.u32 %s253_s19, 4  ;;  %s31_s20 = int_to_ptr.vmem [resolvable:$true] %s30_s20 }
   0xf   :  { %s234_s21 = scalar_lea.vmem %s31_s20, 16  ;;  %s238_s22 = scalar_lea.vmem %s31_s20, 32 }
  0x10   :  { %p235_p5 = scmp.ne.s32.totalorder %s31_s20, %s234_s21  ;;  %p239_p6 = scmp.lt.s32.totalorder %s31_s20, %s31_s20 }
  0x11   :  { %p240_p7 = scmp.lt.s32.totalorder %s238_s22, %s234_s21 }
  0x13   :  { %p241_p8 = por %p240_p7, %p239_p6 }
  0x15   :  { %p242_p9 = pnand %p241_p8, %p235_p5 }
  0x17   :  { %245 = shalt.err (!%p242_p9)
}
  0x18   :  { %33 = dma.hbm_to_vmem [thread:$0]  %s306_s2, 16, %s31_s20, [#allocation5]  }
  0x19   :  { %246 = dma.done.wait [#allocation3], 512  }
  0x1a   :  { %247 = vsyncadd [#allocation3], 4294966784 }
  0x1b   :  { %248 = dma.done.wait [#allocation5], 16  }
  0x1c   :  { %249 = vsyncadd [#allocation5], 4294967280  ;;  %v47_v0 = vld [vmem:[#allocation2 + $0x18] sm:$0xff]  ;;  %v46_v1 = vld [vmem:[#allocation2 + $0x10] sm:$0xff]  ;;  %vm55_vm0 = vcmask 261120  }
  0x1d   :  { %180 = vmatprep.subr.mxu0 %v47_v0  ;;  %194 = vmatprep.subr.mxu1 %v47_v0  ;;  %v45_v2 = vld [vmem:[#allocation2 + $0x8] sm:$0xff]  ;;  %v44_v3 = vld [vmem:[#allocation2] sm:$0xff]  ;;  %v42_v5 = vld [vmem:[%s304_s0 + $0x10] sm:$0xff] }
  0x1e   :  { %181 = vmatpush3.msra.mxu0 %v47_v0  ;;  %198 = vmatpush3.msra.mxu1 %v47_v0  ;;  %v40_v4 = vld [vmem:[%s304_s0] sm:$0xff]  ;;  %v41_v6 = vld [vmem:[%s304_s0 + $0x8] sm:$0xff]  ;;  %v43_v7 = vld [vmem:[%s304_s0 + $0x18] sm:$0xff] }
  0x1f   :  { %182 = vmatprep.subr.mxu0 %v46_v1  ;;  %195 = vmatprep.subr.mxu1 %v46_v1  ;;  %v167_v8 = vld [vmem:[#allocation4] ss:$0 sm:$0xff] }
  0x20   :  { %183 = vmatpush3.msra.mxu0 %v46_v1  ;;  %199 = vmatpush3.msra.mxu1 %v46_v1 }
  0x21   :  { %184 = vmatprep.subr.mxu0 %v45_v2  ;;  %196 = vmatprep.subr.mxu1 %v45_v2 }
  0x22   :  { %185 = vmatpush3.msra.mxu0 %v45_v2  ;;  %200 = vmatpush3.msra.mxu1 %v45_v2 }
  0x23   :  { %186 = vmatprep.subr.mxu0 %v44_v3  ;;  %197 = vmatprep.subr.mxu1 %v44_v3 }
  0x24   :  { %187 = vmatpush3.msra.mxu0 %v44_v3  ;;  %201 = vmatpush3.msra.mxu1 %v44_v3 }
  0x25   :  { %188 = vmatprep.mubr.msk.f32.mxu0 %vm55_vm0, %v40_v4  ;;  %191 = vmatprep.mubr.msk.f32.mxu1 %vm55_vm0, %v42_v5 }
  0x26   :  { %189 = vmatmul.mubr.msk.f32.vlgmr.msra.gmra.mxu0 %vm55_vm0, %v41_v6  ;;  %192 = vmatmul.mubr.msk.f32.vlgmr.msra.gmra.mxu1 %vm55_vm0, %v43_v7 }
  0xe6   :  { %v190_v9 = vpop.f32.mrf.mxu0  ;;  %v193_v10 = vpop.f32.mrf.mxu1 }
  0xe7   :  { %v140_v11 = vadd.f32 %v190_v9, %v167_v8  ;;  %v150_v12 = vadd.f32 %v193_v10, %v167_v8 }
  0xe8   :  { %v134_v13 = vpop.f32.mrf.mxu0  ;;  %v144_v14 = vpop.f32.mrf.mxu1 }
  0xe9   :  { %v154_v15 = vmax.f32 %v140_v11, 0.0  ;;  %v156_v16 = vmax.f32 %v150_v12, 0.0  ;;  %v135_v17 = vadd.f32 %v167_v8, %v134_v13  ;;  %v145_v18 = vadd.f32 %v167_v8, %v144_v14 }
  0xeb   :  { %158 = vst [vmem:[%s307_s3 + $0x8] sm:$0xff] %v154_v15  ;;  %160 = vst [vmem:[%s307_s3 + $0x18] sm:$0xff] %v156_v16  ;;  %v153_v19 = vmax.f32 %v135_v17, 0.0  ;;  %v155_v20 = vmax.f32 %v145_v18, 0.0 }
  0xed   :  { %157 = vst [vmem:[%s307_s3] sm:$0xff] %v153_v19  ;;  %159 = vst [vmem:[%s307_s3 + $0x10] sm:$0xff] %v155_v20 }
  0xee   :  { %165 = vsyncpa [#allocation3], 1 }
  0xef   :  { %166 = vsyncpa [#allocation5], 1 }

// kernel: decoder_forward.7
= control target key start
LH: loop header
LB: loop body
LE: loop exit
PB: predicated region body
PF: predicated region fallthrough
CT: control target
= control target key end

     0   :  { %8 = vsyncpa [#allocation3], 0  ;;  %s256_s0 = inlined_call_operand.vmem [shape: f32[8,64], index: 0, kind: input, shape index: {}]   ;;  %s257_s1 = inlined_call_operand.hbm [shape: f32[64,128], index: 1, kind: input, shape index: {}]   ;;  %s258_s2 = inlined_call_operand.hbm [shape: f32[1,128], index: 2, kind: input, shape index: {}]   ;;  %s259_s3 = inlined_call_operand.vmem [shape: f32[8,128], index: 3, kind: output, shape index: {}]  }
   0x1   :  { %9 = vsyncpa [#allocation5], 0  ;;  %s218_s12 = smov [#allocation2]  }
   0x2   :  { %s17_s13 = sshll.u32 %s218_s12, 4  ;;  %s18_s13 = int_to_ptr.vmem [resolvable:$true] %s17_s13 }
   0x3   :  { %s182_s14 = scalar_lea.vmem %s18_s13, 1024  ;;  %p187_p1 = scmp.lt.s32.totalorder %s18_s13, %s18_s13 }
   0x4   :  { %p183_p0 = scmp.ne.s32.totalorder %s18_s13, %s182_s14  ;;  %p188_p2 = scmp.lt.s32.totalorder %s182_s14, %s182_s14 }
   0x6   :  { %p189_p3 = por %p188_p2, %p187_p1 }
   0x8   :  { %p190_p4 = pnand %p189_p3, %p183_p0 }
   0xa   :  { %193 = shalt.err (!%p190_p4)
}
   0xb   :  { %s219_s15 = smov 128   ;;  %s220_s16 = smov 8  }
   0xc   :  { %23 = dma.hbm_to_vmem [thread:$0]  %s257_s1, 1024, %s18_s13, [#allocation3], %s219_s15, %s219_s15, %s220_s16  }
   0xd   :  { %s221_s19 = smov [#allocation4]  }
   0xe   :  { %s30_s20 = sshll.u32 %s221_s19, 4  ;;  %s31_s20 = int_to_ptr.vmem [resolvable:$true] %s30_s20 }
   0xf   :  { %s202_s21 = scalar_lea.vmem %s31_s20, 16  ;;  %s206_s22 = scalar_lea.vmem %s31_s20, 32 }
  0x10   :  { %p203_p5 = scmp.ne.s32.totalorder %s31_s20, %s202_s21  ;;  %p207_p6 = scmp.lt.s32.totalorder %s31_s20, %s31_s20 }
  0x11   :  { %p208_p7 = scmp.lt.s32.totalorder %s206_s22, %s202_s21 }
  0x13   :  { %p209_p8 = por %p208_p7, %p207_p6 }
  0x15   :  { %p210_p9 = pnand %p209_p8, %p203_p5 }
  0x17   :  { %213 = shalt.err (!%p210_p9)
}
  0x18   :  { %33 = dma.hbm_to_vmem [thread:$0]  %s258_s2, 16, %s31_s20, [#allocation5]  }
  0x19   :  { %214 = dma.done.wait [#allocation3], 1024  }
  0x1a   :  { %215 = vsyncadd [#allocation3], 4294966272 }
  0x1b   :  { %216 = dma.done.wait [#allocation5], 16  }
  0x1c   :  { %217 = vsyncadd [#allocation5], 4294967280  ;;  %v222_v0 = vmov 0.0   ;;  %vm223_vm0 = vmmov 0   ;;  %v48_v1 = vld [vmem:[#allocation2 + $0x38] sm:$0xff]  ;;  %v47_v2 = vld [vmem:[#allocation2 + $0x30] sm:$0xff] }
  0x1d   :  { %149 = vmatprep.subr.mxu0 %v222_v0  ;;  %165 = vmatprep.mubr.msk.f32.mxu0 %vm223_vm0, %v222_v0  ;;  %v46_v3 = vld [vmem:[#allocation2 + $0x28] sm:$0xff]  ;;  %v45_v4 = vld [vmem:[#allocation2 + $0x20] sm:$0xff]  ;;  %v44_v5 = vld [vmem:[#allocation2 + $0x18] sm:$0xff]  ;;  %vm56_vm1 = vcmask 523264  }
  0x1e   :  { %150 = vmatpush3.msra.mxu0 %v48_v1  ;;  %v43_v6 = vld [vmem:[#allocation2 + $0x10] sm:$0xff]  ;;  %v42_v7 = vld [vmem:[#allocation2 + $0x8] sm:$0xff]  ;;  %v41_v8 = vld [vmem:[#allocation2] sm:$0xff] }
  0x1f   :  { %151 = vmatprep.subr.mxu0 %v222_v0  ;;  %v40_v9 = vld [vmem:[%s256_s0] sm:$0xff] }
  0x20   :  { %152 = vmatpush3.msra.mxu0 %v47_v2  ;;  %v138_v10 = vld [vmem:[#allocation4] ss:$0 sm:$0xff] }
  0x21   :  { %153 = vmatprep.subr.mxu0 %v222_v0 }
  0x22   :  { %154 = vmatpush3.msra.mxu0 %v46_v3 }
  0x23   :  { %155 = vmatprep.subr.mxu0 %v222_v0 }
  0x24   :  { %156 = vmatpush3.msra.mxu0 %v45_v4 }
  0x25   :  { %157 = vmatprep.subr.mxu0 %v222_v0 }
  0x26   :  { %158 = vmatpush3.msra.mxu0 %v44_v5 }
  0x27   :  { %159 = vmatprep.subr.mxu0 %v222_v0 }
  0x28   :  { %160 = vmatpush3.msra.mxu0 %v43_v6 }
  0x29   :  { %161 = vmatprep.subr.mxu0 %v222_v0 }
  0x2a   :  { %162 = vmatpush3.msra.mxu0 %v42_v7 }
  0x2b   :  { %163 = vmatprep.subr.mxu0 %v222_v0 }
  0x2c   :  { %164 = vmatpush3.msra.mxu0 %v41_v8 }
  0x2d   :  { %166 = vmatmul.mubr.msk.f32.vlgmr.msra.gmra.mxu0 %vm56_vm1, %v40_v9 }
  0xed   :  { %v126_v11 = vpop.f32.mrf.mxu0 }
  0xee   :  { %v127_v12 = vadd.f32 %v138_v10, %v126_v11 }
  0xef   :  { %v167_v13 = vpop.f32.mrf.mxu0 }
  0xf0   :  { %v130_v14 = vmax.f32 %v127_v12, 0.0 }
  0xf2   :  { %131 = vst [vmem:[%s259_s3] sm:$0xff] %v130_v14 }
  0xf3   :  { %136 = vsyncpa [#allocation3], 1 }
  0xf4   :  { %137 = vsyncpa [#allocation5], 1 }

// kernel: decoder_forward.9
= control target key start
LH: loop header
LB: loop body
LE: loop exit
PB: predicated region body
PF: predicated region fallthrough
CT: control target
= control target key end

     0   :  { %8 = vsyncpa [#allocation3], 0  ;;  %s554_s0 = inlined_call_operand.vmem [shape: f32[128,16], index: 0, kind: input, shape index: {}]   ;;  %s555_s1 = inlined_call_operand.hbm [shape: f32[16,128], index: 1, kind: input, shape index: {}]   ;;  %s556_s2 = inlined_call_operand.hbm [shape: f32[1,128], index: 2, kind: input, shape index: {}]   ;;  %s557_s3 = inlined_call_operand.vmem [shape: f32[128,128], index: 3, kind: output, shape index: {}]  }
   0x1   :  { %9 = vsyncpa [#allocation5], 0  ;;  %s412_s12 = smov [#allocation2]  }
   0x2   :  { %s17_s13 = sshll.u32 %s412_s12, 4  ;;  %s18_s13 = int_to_ptr.vmem [resolvable:$true] %s17_s13 }
   0x3   :  { %s376_s14 = scalar_lea.vmem %s18_s13, 256  ;;  %p381_p1 = scmp.lt.s32.totalorder %s18_s13, %s18_s13 }
   0x4   :  { %p377_p0 = scmp.ne.s32.totalorder %s18_s13, %s376_s14  ;;  %p382_p2 = scmp.lt.s32.totalorder %s376_s14, %s376_s14 }
   0x6   :  { %p383_p3 = por %p382_p2, %p381_p1 }
   0x8   :  { %p384_p4 = pnand %p383_p3, %p377_p0 }
   0xa   :  { %387 = shalt.err (!%p384_p4)
}
   0xb   :  { %s413_s15 = smov 128   ;;  %s414_s16 = smov 8  }
   0xc   :  { %23 = dma.hbm_to_vmem [thread:$0]  %s555_s1, 256, %s18_s13, [#allocation3], %s413_s15, %s413_s15, %s414_s16  }
   0xd   :  { %s415_s19 = smov [#allocation4]  }
   0xe   :  { %s30_s20 = sshll.u32 %s415_s19, 4  ;;  %s31_s20 = int_to_ptr.vmem [resolvable:$true] %s30_s20 }
   0xf   :  { %s396_s21 = scalar_lea.vmem %s31_s20, 16  ;;  %s400_s22 = scalar_lea.vmem %s31_s20, 32 }
  0x10   :  { %p397_p5 = scmp.ne.s32.totalorder %s31_s20, %s396_s21  ;;  %p401_p6 = scmp.lt.s32.totalorder %s31_s20, %s31_s20 }
  0x11   :  { %p402_p7 = scmp.lt.s32.totalorder %s400_s22, %s396_s21 }
  0x13   :  { %p403_p8 = por %p402_p7, %p401_p6 }
  0x15   :  { %p404_p9 = pnand %p403_p8, %p397_p5 }
  0x17   :  { %407 = shalt.err (!%p404_p9)
}
  0x18   :  { %33 = dma.hbm_to_vmem [thread:$0]  %s556_s2, 16, %s31_s20, [#allocation5]  }
  0x19   :  { %408 = dma.done.wait [#allocation3], 256  }
  0x1a   :  { %409 = vsyncadd [#allocation3], 4294967040 }
  0x1b   :  { %410 = dma.done.wait [#allocation5], 16  }
  0x1c   :  { %411 = vsyncadd [#allocation5], 4294967280  ;;  %v57_v0 = vld [vmem:[#allocation2 + $0x8] sm:$0xff]  ;;  %v56_v1 = vld [vmem:[#allocation2] sm:$0xff]  ;;  %vm65_vm0 = vcmask 130048  }
  0x1d   :  { %332 = vmatprep.subr.mxu0 %v57_v0  ;;  %360 = vmatprep.subr.mxu1 %v57_v0  ;;  %v40_v2 = vld [vmem:[%s554_s0] sm:$0xff]  ;;  %v41_v4 = vld [vmem:[%s554_s0 + $0x8] sm:$0xff]  ;;  %v42_v6 = vld [vmem:[%s554_s0 + $0x10] sm:$0xff] }
  0x1e   :  { %333 = vmatpush3.msra.mxu0 %v57_v0  ;;  %362 = vmatpush3.msra.mxu1 %v57_v0  ;;  %v48_v3 = vld [vmem:[%s554_s0 + $0x40] sm:$0xff]  ;;  %v49_v5 = vld [vmem:[%s554_s0 + $0x48] sm:$0xff]  ;;  %v50_v7 = vld [vmem:[%s554_s0 + $0x50] sm:$0xff] }
  0x1f   :  { %334 = vmatprep.subr.mxu0 %v56_v1  ;;  %361 = vmatprep.subr.mxu1 %v56_v1  ;;  %v43_v8 = vld [vmem:[%s554_s0 + $0x18] sm:$0xff]  ;;  %v44_v10 = vld [vmem:[%s554_s0 + $0x20] sm:$0xff]  ;;  %v45_v12 = vld [vmem:[%s554_s0 + $0x28] sm:$0xff] }
  0x20   :  { %335 = vmatpush3.msra.mxu0 %v56_v1  ;;  %363 = vmatpush3.msra.mxu1 %v56_v1  ;;  %v51_v9 = vld [vmem:[%s554_s0 + $0x58] sm:$0xff]  ;;  %v52_v11 = vld [vmem:[%s554_s0 + $0x60] sm:$0xff]  ;;  %v53_v13 = vld [vmem:[%s554_s0 + $0x68] sm:$0xff] }
  0x21   :  { %336 = vmatprep.mubr.msk.f32.mxu0 %vm65_vm0, %v40_v2  ;;  %348 = vmatprep.mubr.msk.f32.mxu1 %vm65_vm0, %v48_v3  ;;  %v46_v14 = vld [vmem:[%s554_s0 + $0x30] sm:$0xff]  ;;  %v47_v16 = vld [vmem:[%s554_s0 + $0x38] sm:$0xff] }
  0x22   :  { %337 = vmatmul.mubr.msk.f32.vlgmr.msra.gmra.mxu0 %vm65_vm0, %v41_v4  ;;  %349 = vmatmul.mubr.msk.f32.vlgmr.msra.gmra.mxu1 %vm65_vm0, %v49_v5  ;;  %v54_v15 = vld [vmem:[%s554_s0 + $0x70] sm:$0xff]  ;;  %v55_v17 = vld [vmem:[%s554_s0 + $0x78] sm:$0xff] }
  0x23   :  { %339 = vmatprep.mubr.msk.f32.mxu0 %vm65_vm0, %v42_v6  ;;  %351 = vmatprep.mubr.msk.f32.mxu1 %vm65_vm0, %v50_v7  ;;  %v297_v18 = vld [vmem:[#allocation4] ss:$0 sm:$0xff] }
  0x26   :  { %340 = vmatmul.mubr.msk.f32.gmra.mxu0 %vm65_vm0, %v43_v8  ;;  %352 = vmatmul.mubr.msk.f32.gmra.mxu1 %vm65_vm0, %v51_v9 }
  0x27   :  { %342 = vmatprep.mubr.msk.f32.mxu0 %vm65_vm0, %v44_v10  ;;  %354 = vmatprep.mubr.msk.f32.mxu1 %vm65_vm0, %v52_v11 }
  0x2a   :  { %343 = vmatmul.mubr.msk.f32.gmra.mxu0 %vm65_vm0, %v45_v12  ;;  %355 = vmatmul.mubr.msk.f32.gmra.mxu1 %vm65_vm0, %v53_v13 }
  0x2b   :  { %345 = vmatprep.mubr.msk.f32.mxu0 %vm65_vm0, %v46_v14  ;;  %357 = vmatprep.mubr.msk.f32.mxu1 %vm65_vm0, %v54_v15 }
  0x2e   :  { %346 = vmatmul.mubr.msk.f32.gmra.mxu0 %vm65_vm0, %v47_v16  ;;  %358 = vmatmul.mubr.msk.f32.gmra.mxu1 %vm65_vm0, %v55_v17 }
  0xe2   :  { %v338_v19 = vpop.f32.mrf.mxu0  ;;  %v350_v20 = vpop.f32.mrf.mxu1 }
  0xe3   :  { %v186_v21 = vadd.f32 %v338_v19, %v297_v18  ;;  %v226_v22 = vadd.f32 %v350_v20, %v297_v18 }
  0xe4   :  { %v180_v23 = vpop.f32.mrf.mxu0  ;;  %v220_v24 = vpop.f32.mrf.mxu1 }
  0xe5   :  { %v260_v25 = vmax.f32 %v186_v21, 0.0  ;;  %v268_v26 = vmax.f32 %v226_v22, 0.0  ;;  %v181_v27 = vadd.f32 %v297_v18, %v180_v23  ;;  %v221_v28 = vadd.f32 %v297_v18, %v220_v24 }
  0xe6   :  { %v341_v29 = vpop.f32.mrf.mxu0  ;;  %v353_v30 = vpop.f32.mrf.mxu1 }
  0xe7   :  { %276 = vst [vmem:[%s557_s3 + $0x8] sm:$0xff] %v260_v25  ;;  %284 = vst [vmem:[%s557_s3 + $0x48] sm:$0xff] %v268_v26  ;;  %v259_v31 = vmax.f32 %v181_v27, 0.0  ;;  %v267_v32 = vmax.f32 %v221_v28, 0.0  ;;  %v196_v33 = vadd.f32 %v341_v29, %v297_v18  ;;  %v236_v34 = vadd.f32 %v353_v30, %v297_v18 }
  0xe8   :  { %v190_v35 = vpop.f32.mrf.mxu0  ;;  %v230_v36 = vpop.f32.mrf.mxu1 }
  0xe9   :  { %275 = vst [vmem:[%s557_s3] sm:$0xff] %v259_v31  ;;  %283 = vst [vmem:[%s557_s3 + $0x40] sm:$0xff] %v267_v32  ;;  %v262_v37 = vmax.f32 %v196_v33, 0.0  ;;  %v270_v38 = vmax.f32 %v236_v34, 0.0  ;;  %v191_v39 = vadd.f32 %v297_v18, %v190_v35  ;;  %v231_v40 = vadd.f32 %v297_v18, %v230_v36 }
  0xea   :  { %v344_v41 = vpop.f32.mrf.mxu0  ;;  %v356_v42 = vpop.f32.mrf.mxu1 }
  0xeb   :  { %278 = vst [vmem:[%s557_s3 + $0x18] sm:$0xff] %v262_v37  ;;  %286 = vst [vmem:[%s557_s3 + $0x58] sm:$0xff] %v270_v38  ;;  %v261_v43 = vmax.f32 %v191_v39, 0.0  ;;  %v269_v44 = vmax.f32 %v231_v40, 0.0  ;;  %v206_v45 = vadd.f32 %v344_v41, %v297_v18  ;;  %v246_v46 = vadd.f32 %v356_v42, %v297_v18 }
  0xec   :  { %v200_v47 = vpop.f32.mrf.mxu0  ;;  %v240_v48 = vpop.f32.mrf.mxu1 }
  0xed   :  { %277 = vst [vmem:[%s557_s3 + $0x10] sm:$0xff] %v261_v43  ;;  %285 = vst [vmem:[%s557_s3 + $0x50] sm:$0xff] %v269_v44  ;;  %v264_v49 = vmax.f32 %v206_v45, 0.0  ;;  %v272_v50 = vmax.f32 %v246_v46, 0.0  ;;  %v201_v51 = vadd.f32 %v297_v18, %v200_v47  ;;  %v241_v52 = vadd.f32 %v297_v18, %v240_v48 }
  0xee   :  { %v347_v53 = vpop.f32.mrf.mxu0  ;;  %v359_v54 = vpop.f32.mrf.mxu1 }
  0xef   :  { %280 = vst [vmem:[%s557_s3 + $0x28] sm:$0xff] %v264_v49  ;;  %288 = vst [vmem:[%s557_s3 + $0x68] sm:$0xff] %v272_v50  ;;  %v263_v55 = vmax.f32 %v201_v51, 0.0  ;;  %v271_v56 = vmax.f32 %v241_v52, 0.0  ;;  %v216_v57 = vadd.f32 %v347_v53, %v297_v18  ;;  %v256_v58 = vadd.f32 %v359_v54, %v297_v18 }
  0xf0   :  { %v210_v59 = vpop.f32.mrf.mxu0  ;;  %v250_v60 = vpop.f32.mrf.mxu1 }
  0xf1   :  { %279 = vst [vmem:[%s557_s3 + $0x20] sm:$0xff] %v263_v55  ;;  %287 = vst [vmem:[%s557_s3 + $0x60] sm:$0xff] %v271_v56  ;;  %v266_v61 = vmax.f32 %v216_v57, 0.0  ;;  %v274_v62 = vmax.f32 %v256_v58, 0.0  ;;  %v211_v63 = vadd.f32 %v297_v18, %v210_v59  ;;  %v251_v0 = vadd.f32 %v297_v18, %v250_v60 }
  0xf3   :  { %282 = vst [vmem:[%s557_s3 + $0x38] sm:$0xff] %v266_v61  ;;  %290 = vst [vmem:[%s557_s3 + $0x78] sm:$0xff] %v274_v62  ;;  %v265_v1 = vmax.f32 %v211_v63, 0.0  ;;  %v273_v2 = vmax.f32 %v251_v0, 0.0 }
  0xf5   :  { %281 = vst [vmem:[%s557_s3 + $0x30] sm:$0xff] %v265_v1  ;;  %289 = vst [vmem:[%s557_s3 + $0x70] sm:$0xff] %v273_v2 }
  0xf6   :  { %295 = vsyncpa [#allocation3], 1 }
  0xf7   :  { %296 = vsyncpa [#allocation5], 1 }

// kernel: decoder_forward.10
= control target key start
LH: loop header
LB: loop body
LE: loop exit
PB: predicated region body
PF: predicated region fallthrough
CT: control target
= control target key end

     0   :  { %8 = vsyncpa [#allocation3], 0  ;;  %s1640_s0 = inlined_call_operand.vmem [shape: f32[512,8], index: 0, kind: input, shape index: {}]   ;;  %s1641_s1 = inlined_call_operand.hbm [shape: f32[8,128], index: 1, kind: input, shape index: {}]   ;;  %s1642_s2 = inlined_call_operand.hbm [shape: f32[1,128], index: 2, kind: input, shape index: {}]   ;;  %s1643_s3 = inlined_call_operand.vmem [shape: f32[512,128], index: 3, kind: output, shape index: {}]  }
   0x1   :  { %9 = vsyncpa [#allocation5], 0  ;;  %s1098_s12 = smov [#allocation2]   ;;  %s1099_s14 = smov [#allocation4]  }
   0x2   :  { %s18_s13 = sshll.u32 %s1098_s12, 4  ;;  %s28_s15 = sshll.u32 %s1099_s14, 4  ;;  %s19_s13 = int_to_ptr.vmem [resolvable:$true] %s18_s13  ;;  %s29_s15 = int_to_ptr.vmem [resolvable:$true] %s28_s15 }
   0x3   :  { %s1062_s16 = scalar_lea.vmem %s19_s13, 128  ;;  %p1067_p1 = scmp.lt.s32.totalorder %s19_s13, %s19_s13 }
   0x4   :  { %p1063_p0 = scmp.ne.s32.totalorder %s19_s13, %s1062_s16  ;;  %p1068_p2 = scmp.lt.s32.totalorder %s1062_s16, %s1062_s16 }
   0x6   :  { %p1069_p3 = por %p1068_p2, %p1067_p1 }
   0x8   :  { %p1070_p4 = pnand %p1069_p3, %p1063_p0 }
   0xa   :  { %1073 = shalt.err (!%p1070_p4)
}
   0xb   :  { %21 = dma.hbm_to_vmem [thread:$0]  %s1641_s1, 128, %s19_s13, [#allocation3]  }
   0xc   :  { %s1082_s19 = scalar_lea.vmem %s29_s15, 16  ;;  %s1086_s20 = scalar_lea.vmem %s29_s15, 32 }
   0xd   :  { %p1083_p5 = scmp.ne.s32.totalorder %s29_s15, %s1082_s19  ;;  %p1087_p6 = scmp.lt.s32.totalorder %s29_s15, %s29_s15 }
   0xe   :  { %p1088_p7 = scmp.lt.s32.totalorder %s1086_s20, %s1082_s19 }
  0x10   :  { %p1089_p8 = por %p1088_p7, %p1087_p6 }
  0x12   :  { %p1090_p9 = pnand %p1089_p8, %p1083_p5 }
  0x14   :  { %1093 = shalt.err (!%p1090_p9)
}
  0x15   :  { %31 = dma.hbm_to_vmem [thread:$0]  %s1642_s2, 16, %s29_s15, [#allocation5]  }
  0x16   :  { %1094 = dma.done.wait [#allocation3], 128  }
  0x17   :  { %1095 = vsyncadd [#allocation3], 4294967168 }
  0x18   :  { %1096 = dma.done.wait [#allocation5], 16  }
  0x19   :  { %1097 = vsyncadd [#allocation5], 4294967280  ;;  %v102_v0 = vld [vmem:[#allocation2] sm:$0xff]  ;;  %vm110_vm0 = vcmask 64512   ;;  %v39_v3 = vld [vmem:[%s1640_s0 + $0x8] sm:$0xff] }
  0x1a   :  { %v38_v1 = vld [vmem:[%s1640_s0] sm:$0xff]  ;;  %952 = vmatprep.subr.mxu0 %v102_v0  ;;  %1050 = vmatprep.subr.mxu1 %v102_v0  ;;  %v71_v4 = vld [vmem:[%s1640_s0 + $0x108] sm:$0xff]  ;;  %v40_v5 = vld [vmem:[%s1640_s0 + $0x10] sm:$0xff] }
  0x1b   :  { %v70_v2 = vld [vmem:[%s1640_s0 + $0x100] sm:$0xff]  ;;  %953 = vmatpush3.msra.mxu0 %v102_v0  ;;  %1051 = vmatpush3.msra.mxu1 %v102_v0  ;;  %v72_v6 = vld [vmem:[%s1640_s0 + $0x110] sm:$0xff]  ;;  %v41_v7 = vld [vmem:[%s1640_s0 + $0x18] sm:$0xff] }
  0x1c   :  { %954 = vmatprep.mubr.msk.f32.mxu0 %vm110_vm0, %v38_v1  ;;  %1002 = vmatprep.mubr.msk.f32.mxu1 %vm110_vm0, %v70_v2  ;;  %v73_v8 = vld [vmem:[%s1640_s0 + $0x118] sm:$0xff]  ;;  %v42_v9 = vld [vmem:[%s1640_s0 + $0x20] sm:$0xff]  ;;  %v43_v11 = vld [vmem:[%s1640_s0 + $0x28] sm:$0xff] }
  0x1d   :  { %955 = vmatmul.mubr.msk.f32.vlgmr.msra.gmra.mxu0 %vm110_vm0, %v39_v3  ;;  %1003 = vmatmul.mubr.msk.f32.vlgmr.msra.gmra.mxu1 %vm110_vm0, %v71_v4  ;;  %v74_v10 = vld [vmem:[%s1640_s0 + $0x120] sm:$0xff]  ;;  %v75_v12 = vld [vmem:[%s1640_s0 + $0x128] sm:$0xff]  ;;  %v44_v13 = vld [vmem:[%s1640_s0 + $0x30] sm:$0xff] }
  0x1e   :  { %957 = vmatprep.mubr.msk.f32.mxu0 %vm110_vm0, %v40_v5  ;;  %1005 = vmatprep.mubr.msk.f32.mxu1 %vm110_vm0, %v72_v6  ;;  %v76_v14 = vld [vmem:[%s1640_s0 + $0x130] sm:$0xff]  ;;  %v45_v15 = vld [vmem:[%s1640_s0 + $0x38] sm:$0xff]  ;;  %v46_v17 = vld [vmem:[%s1640_s0 + $0x40] sm:$0xff] }
  0x1f   :  { %v77_v16 = vld [vmem:[%s1640_s0 + $0x138] sm:$0xff]  ;;  %v78_v18 = vld [vmem:[%s1640_s0 + $0x140] sm:$0xff]  ;;  %v47_v19 = vld [vmem:[%s1640_s0 + $0x48] sm:$0xff] }
  0x20   :  { %v79_v20 = vld [vmem:[%s1640_s0 + $0x148] sm:$0xff]  ;;  %v48_v21 = vld [vmem:[%s1640_s0 + $0x50] sm:$0xff]  ;;  %v49_v23 = vld [vmem:[%s1640_s0 + $0x58] sm:$0xff] }
  0x21   :  { %958 = vmatmul.mubr.msk.f32.gmra.mxu0 %vm110_vm0, %v41_v7  ;;  %1006 = vmatmul.mubr.msk.f32.gmra.mxu1 %vm110_vm0, %v73_v8  ;;  %v80_v22 = vld [vmem:[%s1640_s0 + $0x150] sm:$0xff]  ;;  %v81_v24 = vld [vmem:[%s1640_s0 + $0x158] sm:$0xff]  ;;  %v50_v25 = vld [vmem:[%s1640_s0 + $0x60] sm:$0xff] }
  0x22   :  { %960 = vmatprep.mubr.msk.f32.mxu0 %vm110_vm0, %v42_v9  ;;  %1008 = vmatprep.mubr.msk.f32.mxu1 %vm110_vm0, %v74_v10  ;;  %v82_v26 = vld [vmem:[%s1640_s0 + $0x160] sm:$0xff]  ;;  %v51_v27 = vld [vmem:[%s1640_s0 + $0x68] sm:$0xff]  ;;  %v52_v29 = vld [vmem:[%s1640_s0 + $0x70] sm:$0xff] }
  0x23   :  { %v83_v28 = vld [vmem:[%s1640_s0 + $0x168] sm:$0xff]  ;;  %v84_v30 = vld [vmem:[%s1640_s0 + $0x170] sm:$0xff]  ;;  %v53_v31 = vld [vmem:[%s1640_s0 + $0x78] sm:$0xff] }
  0x24   :  { %v85_v32 = vld [vmem:[%s1640_s0 + $0x178] sm:$0xff]  ;;  %v54_v33 = vld [vmem:[%s1640_s0 + $0x80] sm:$0xff]  ;;  %v55_v35 = vld [vmem:[%s1640_s0 + $0x88] sm:$0xff] }
  0x25   :  { %961 = vmatmul.mubr.msk.f32.gmra.mxu0 %vm110_vm0, %v43_v11  ;;  %1009 = vmatmul.mubr.msk.f32.gmra.mxu1 %vm110_vm0, %v75_v12  ;;  %v86_v34 = vld [vmem:[%s1640_s0 + $0x180] sm:$0xff]  ;;  %v87_v36 = vld [vmem:[%s1640_s0 + $0x188] sm:$0xff]  ;;  %v56_v37 = vld [vmem:[%s1640_s0 + $0x90] sm:$0xff] }
  0x26   :  { %963 = vmatprep.mubr.msk.f32.mxu0 %vm110_vm0, %v44_v13  ;;  %1011 = vmatprep.mubr.msk.f32.mxu1 %vm110_vm0, %v76_v14  ;;  %v88_v38 = vld [vmem:[%s1640_s0 + $0x190] sm:$0xff]  ;;  %v57_v39 = vld [vmem:[%s1640_s0 + $0x98] sm:$0xff]  ;;  %v58_v41 = vld [vmem:[%s1640_s0 + $0xa0] sm:$0xff] }
  0x27   :  { %v89_v40 = vld [vmem:[%s1640_s0 + $0x198] sm:$0xff]  ;;  %v90_v42 = vld [vmem:[%s1640_s0 + $0x1a0] sm:$0xff]  ;;  %v59_v43 = vld [vmem:[%s1640_s0 + $0xa8] sm:$0xff] }
  0x28   :  { %v91_v44 = vld [vmem:[%s1640_s0 + $0x1a8] sm:$0xff]  ;;  %v60_v45 = vld [vmem:[%s1640_s0 + $0xb0] sm:$0xff]  ;;  %v61_v47 = vld [vmem:[%s1640_s0 + $0xb8] sm:$0xff] }
  0x29   :  { %964 = vmatmul.mubr.msk.f32.gmra.mxu0 %vm110_vm0, %v45_v15  ;;  %1012 = vmatmul.mubr.msk.f32.gmra.mxu1 %vm110_vm0, %v77_v16  ;;  %v92_v46 = vld [vmem:[%s1640_s0 + $0x1b0] sm:$0xff]  ;;  %v93_v48 = vld [vmem:[%s1640_s0 + $0x1b8] sm:$0xff]  ;;  %v62_v49 = vld [vmem:[%s1640_s0 + $0xc0] sm:$0xff] }
  0x2a   :  { %966 = vmatprep.mubr.msk.f32.mxu0 %vm110_vm0, %v46_v17  ;;  %1014 = vmatprep.mubr.msk.f32.mxu1 %vm110_vm0, %v78_v18  ;;  %v94_v50 = vld [vmem:[%s1640_s0 + $0x1c0] sm:$0xff]  ;;  %v63_v51 = vld [vmem:[%s1640_s0 + $0xc8] sm:$0xff]  ;;  %v64_v53 = vld [vmem:[%s1640_s0 + $0xd0] sm:$0xff] }
  0x2b   :  { %v95_v52 = vld [vmem:[%s1640_s0 + $0x1c8] sm:$0xff]  ;;  %v96_v54 = vld [vmem:[%s1640_s0 + $0x1d0] sm:$0xff]  ;;  %v65_v55 = vld [vmem:[%s1640_s0 + $0xd8] sm:$0xff] }
  0x2c   :  { %v97_v56 = vld [vmem:[%s1640_s0 + $0x1d8] sm:$0xff]  ;;  %v66_v57 = vld [vmem:[%s1640_s0 + $0xe0] sm:$0xff]  ;;  %v67_v59 = vld [vmem:[%s1640_s0 + $0xe8] sm:$0xff] }
  0x2d   :  { %967 = vmatmul.mubr.msk.f32.gmra.mxu0 %vm110_vm0, %v47_v19  ;;  %1015 = vmatmul.mubr.msk.f32.gmra.mxu1 %vm110_vm0, %v79_v20  ;;  %v98_v58 = vld [vmem:[%s1640_s0 + $0x1e0] sm:$0xff]  ;;  %v99_v60 = vld [vmem:[%s1640_s0 + $0x1e8] sm:$0xff]  ;;  %v68_v61 = vld [vmem:[%s1640_s0 + $0xf0] sm:$0xff] }
  0x2e   :  { %969 = vmatprep.mubr.msk.f32.mxu0 %vm110_vm0, %v48_v21  ;;  %1017 = vmatprep.mubr.msk.f32.mxu1 %vm110_vm0, %v80_v22  ;;  %v100_v62 = vld [vmem:[%s1640_s0 + $0x1f0] sm:$0xff]  ;;  %v69_v63 = vld [vmem:[%s1640_s0 + $0xf8] sm:$0xff]  ;;  %v1382_v1 = vld [vmem:[#allocation4] ss:$0 sm:$0xff] }
  0x2f   :  { %v101_v0 = vld [vmem:[%s1640_s0 + $0x1f8] sm:$0xff] }
  0x31   :  { %970 = vmatmul.mubr.msk.f32.gmra.mxu0 %vm110_vm0, %v49_v23  ;;  %1018 = vmatmul.mubr.msk.f32.gmra.mxu1 %vm110_vm0, %v81_v24 }
  0x32   :  { %972 = vmatprep.mubr.msk.f32.mxu0 %vm110_vm0, %v50_v25  ;;  %1020 = vmatprep.mubr.msk.f32.mxu1 %vm110_vm0, %v82_v26 }
  0x35   :  { %973 = vmatmul.mubr.msk.f32.gmra.mxu0 %vm110_vm0, %v51_v27  ;;  %1021 = vmatmul.mubr.msk.f32.gmra.mxu1 %vm110_vm0, %v83_v28 }
  0x36   :  { %975 = vmatprep.mubr.msk.f32.mxu0 %vm110_vm0, %v52_v29  ;;  %1023 = vmatprep.mubr.msk.f32.mxu1 %vm110_vm0, %v84_v30 }
  0x39   :  { %976 = vmatmul.mubr.msk.f32.gmra.mxu0 %vm110_vm0, %v53_v31  ;;  %1024 = vmatmul.mubr.msk.f32.gmra.mxu1 %vm110_vm0, %v85_v32 }
  0x3a   :  { %978 = vmatprep.mubr.msk.f32.mxu0 %vm110_vm0, %v54_v33  ;;  %1026 = vmatprep.mubr.msk.f32.mxu1 %vm110_vm0, %v86_v34 }
  0x3d   :  { %979 = vmatmul.mubr.msk.f32.gmra.mxu0 %vm110_vm0, %v55_v35  ;;  %1027 = vmatmul.mubr.msk.f32.gmra.mxu1 %vm110_vm0, %v87_v36 }
  0x3e   :  { %981 = vmatprep.mubr.msk.f32.mxu0 %vm110_vm0, %v56_v37  ;;  %1029 = vmatprep.mubr.msk.f32.mxu1 %vm110_vm0, %v88_v38 }
  0x41   :  { %982 = vmatmul.mubr.msk.f32.gmra.mxu0 %vm110_vm0, %v57_v39  ;;  %1030 = vmatmul.mubr.msk.f32.gmra.mxu1 %vm110_vm0, %v89_v40 }
  0x42   :  { %984 = vmatprep.mubr.msk.f32.mxu0 %vm110_vm0, %v58_v41  ;;  %1032 = vmatprep.mubr.msk.f32.mxu1 %vm110_vm0, %v90_v42 }
  0x45   :  { %985 = vmatmul.mubr.msk.f32.gmra.mxu0 %vm110_vm0, %v59_v43  ;;  %1033 = vmatmul.mubr.msk.f32.gmra.mxu1 %vm110_vm0, %v91_v44 }
  0x46   :  { %987 = vmatprep.mubr.msk.f32.mxu0 %vm110_vm0, %v60_v45  ;;  %1035 = vmatprep.mubr.msk.f32.mxu1 %vm110_vm0, %v92_v46 }
  0x49   :  { %988 = vmatmul.mubr.msk.f32.gmra.mxu0 %vm110_vm0, %v61_v47  ;;  %1036 = vmatmul.mubr.msk.f32.gmra.mxu1 %vm110_vm0, %v93_v48 }
  0x4a   :  { %990 = vmatprep.mubr.msk.f32.mxu0 %vm110_vm0, %v62_v49  ;;  %1038 = vmatprep.mubr.msk.f32.mxu1 %vm110_vm0, %v94_v50 }
  0x4d   :  { %991 = vmatmul.mubr.msk.f32.gmra.mxu0 %vm110_vm0, %v63_v51  ;;  %1039 = vmatmul.mubr.msk.f32.gmra.mxu1 %vm110_vm0, %v95_v52 }
  0x4e   :  { %993 = vmatprep.mubr.msk.f32.mxu0 %vm110_vm0, %v64_v53  ;;  %1041 = vmatprep.mubr.msk.f32.mxu1 %vm110_vm0, %v96_v54 }
  0x51   :  { %994 = vmatmul.mubr.msk.f32.gmra.mxu0 %vm110_vm0, %v65_v55  ;;  %1042 = vmatmul.mubr.msk.f32.gmra.mxu1 %vm110_vm0, %v97_v56 }
  0x52   :  { %996 = vmatprep.mubr.msk.f32.mxu0 %vm110_vm0, %v66_v57  ;;  %1044 = vmatprep.mubr.msk.f32.mxu1 %vm110_vm0, %v98_v58 }
  0x55   :  { %997 = vmatmul.mubr.msk.f32.gmra.mxu0 %vm110_vm0, %v67_v59  ;;  %1045 = vmatmul.mubr.msk.f32.gmra.mxu1 %vm110_vm0, %v99_v60 }
  0x56   :  { %999 = vmatprep.mubr.msk.f32.mxu0 %vm110_vm0, %v68_v61  ;;  %1047 = vmatprep.mubr.msk.f32.mxu1 %vm110_vm0, %v100_v62 }
  0x59   :  { %1000 = vmatmul.mubr.msk.f32.gmra.mxu0 %vm110_vm0, %v69_v63  ;;  %1048 = vmatmul.mubr.msk.f32.gmra.mxu1 %vm110_vm0, %v101_v0 }
  0xdd   :  { %v956_v2 = vpop.f32.mrf.mxu0  ;;  %v1004_v3 = vpop.f32.mrf.mxu1 }
  0xde   :  { %v375_v4 = vadd.f32 %v956_v2, %v1382_v1  ;;  %v535_v5 = vadd.f32 %v1004_v3, %v1382_v1 }
  0xdf   :  { %v369_v6 = vpop.f32.mrf.mxu0  ;;  %v529_v7 = vpop.f32.mrf.mxu1 }
  0xe0   :  { %v689_v8 = vmax.f32 %v375_v4, 0.0  ;;  %v721_v9 = vmax.f32 %v535_v5, 0.0  ;;  %v370_v10 = vadd.f32 %v1382_v1, %v369_v6  ;;  %v530_v11 = vadd.f32 %v1382_v1, %v529_v7 }
  0xe1   :  { %v959_v12 = vpop.f32.mrf.mxu0  ;;  %v1007_v13 = vpop.f32.mrf.mxu1 }
  0xe2   :  { %753 = vst [vmem:[%s1643_s3 + $0x8] sm:$0xff] %v689_v8  ;;  %785 = vst [vmem:[%s1643_s3 + $0x108] sm:$0xff] %v721_v9  ;;  %v688_v14 = vmax.f32 %v370_v10, 0.0  ;;  %v720_v15 = vmax.f32 %v530_v11, 0.0  ;;  %v385_v16 = vadd.f32 %v959_v12, %v1382_v1  ;;  %v545_v17 = vadd.f32 %v1007_v13, %v1382_v1 }
  0xe3   :  { %v379_v18 = vpop.f32.mrf.mxu0  ;;  %v539_v19 = vpop.f32.mrf.mxu1 }
  0xe4   :  { %752 = vst [vmem:[%s1643_s3] sm:$0xff] %v688_v14  ;;  %784 = vst [vmem:[%s1643_s3 + $0x100] sm:$0xff] %v720_v15  ;;  %v691_v20 = vmax.f32 %v385_v16, 0.0  ;;  %v723_v21 = vmax.f32 %v545_v17, 0.0  ;;  %v380_v22 = vadd.f32 %v1382_v1, %v379_v18  ;;  %v540_v23 = vadd.f32 %v1382_v1, %v539_v19 }
  0xe5   :  { %v962_v24 = vpop.f32.mrf.mxu0  ;;  %v1010_v25 = vpop.f32.mrf.mxu1 }
  0xe6   :  { %755 = vst [vmem:[%s1643_s3 + $0x18] sm:$0xff] %v691_v20  ;;  %787 = vst [vmem:[%s1643_s3 + $0x118] sm:$0xff] %v723_v21  ;;  %v690_v26 = vmax.f32 %v380_v22, 0.0  ;;  %v722_v27 = vmax.f32 %v540_v23, 0.0  ;;  %v395_v28 = vadd.f32 %v962_v24, %v1382_v1  ;;  %v555_v29 = vadd.f32 %v1010_v25, %v1382_v1 }
  0xe7   :  { %v389_v30 = vpop.f32.mrf.mxu0  ;;  %v549_v31 = vpop.f32.mrf.mxu1 }
  0xe8   :  { %754 = vst [vmem:[%s1643_s3 + $0x10] sm:$0xff] %v690_v26  ;;  %786 = vst [vmem:[%s1643_s3 + $0x110] sm:$0xff] %v722_v27  ;;  %v693_v32 = vmax.f32 %v395_v28, 0.0  ;;  %v725_v33 = vmax.f32 %v555_v29, 0.0  ;;  %v390_v34 = vadd.f32 %v1382_v1, %v389_v30  ;;  %v550_v35 = vadd.f32 %v1382_v1, %v549_v31 }
  0xe9   :  { %v965_v36 = vpop.f32.mrf.mxu0  ;;  %v1013_v37 = vpop.f32.mrf.mxu1 }
  0xea   :  { %757 = vst [vmem:[%s1643_s3 + $0x28] sm:$0xff] %v693_v32  ;;  %789 = vst [vmem:[%s1643_s3 + $0x128] sm:$0xff] %v725_v33  ;;  %v692_v38 = vmax.f32 %v390_v34, 0.0  ;;  %v724_v39 = vmax.f32 %v550_v35, 0.0  ;;  %v405_v40 = vadd.f32 %v965_v36, %v1382_v1  ;;  %v565_v41 = vadd.f32 %v1013_v37, %v1382_v1 }
  0xeb   :  { %v399_v42 = vpop.f32.mrf.mxu0  ;;  %v559_v43 = vpop.f32.mrf.mxu1 }
  0xec   :  { %756 = vst [vmem:[%s1643_s3 + $0x20] sm:$0xff] %v692_v38  ;;  %788 = vst [vmem:[%s1643_s3 + $0x120] sm:$0xff] %v724_v39  ;;  %v695_v44 = vmax.f32 %v405_v40, 0.0  ;;  %v727_v45 = vmax.f32 %v565_v41, 0.0  ;;  %v400_v46 = vadd.f32 %v1382_v1, %v399_v42  ;;  %v560_v47 = vadd.f32 %v1382_v1, %v559_v43 }
  0xed   :  { %v968_v48 = vpop.f32.mrf.mxu0  ;;  %v1016_v49 = vpop.f32.mrf.mxu1 }
  0xee   :  { %759 = vst [vmem:[%s1643_s3 + $0x38] sm:$0xff] %v695_v44  ;;  %791 = vst [vmem:[%s1643_s3 + $0x138] sm:$0xff] %v727_v45  ;;  %v694_v50 = vmax.f32 %v400_v46, 0.0  ;;  %v726_v51 = vmax.f32 %v560_v47, 0.0  ;;  %v415_v52 = vadd.f32 %v968_v48, %v1382_v1  ;;  %v575_v53 = vadd.f32 %v1016_v49, %v1382_v1 }
  0xef   :  { %v409_v54 = vpop.f32.mrf.mxu0  ;;  %v569_v55 = vpop.f32.mrf.mxu1 }
  0xf0   :  { %758 = vst [vmem:[%s1643_s3 + $0x30] sm:$0xff] %v694_v50  ;;  %790 = vst [vmem:[%s1643_s3 + $0x130] sm:$0xff] %v726_v51  ;;  %v697_v56 = vmax.f32 %v415_v52, 0.0  ;;  %v729_v57 = vmax.f32 %v575_v53, 0.0  ;;  %v410_v58 = vadd.f32 %v1382_v1, %v409_v54  ;;  %v570_v59 = vadd.f32 %v1382_v1, %v569_v55 }
  0xf1   :  { %v971_v60 = vpop.f32.mrf.mxu0  ;;  %v1019_v61 = vpop.f32.mrf.mxu1 }
  0xf2   :  { %761 = vst [vmem:[%s1643_s3 + $0x48] sm:$0xff] %v697_v56  ;;  %793 = vst [vmem:[%s1643_s3 + $0x148] sm:$0xff] %v729_v57  ;;  %v696_v62 = vmax.f32 %v410_v58, 0.0  ;;  %v728_v63 = vmax.f32 %v570_v59, 0.0  ;;  %v425_v0 = vadd.f32 %v971_v60, %v1382_v1  ;;  %v585_v2 = vadd.f32 %v1019_v61, %v1382_v1 }
  0xf3   :  { %v419_v3 = vpop.f32.mrf.mxu0  ;;  %v579_v4 = vpop.f32.mrf.mxu1 }
  0xf4   :  { %760 = vst [vmem:[%s1643_s3 + $0x40] sm:$0xff] %v696_v62  ;;  %792 = vst [vmem:[%s1643_s3 + $0x140] sm:$0xff] %v728_v63  ;;  %v699_v5 = vmax.f32 %v425_v0, 0.0  ;;  %v731_v6 = vmax.f32 %v585_v2, 0.0  ;;  %v420_v7 = vadd.f32 %v1382_v1, %v419_v3  ;;  %v580_v8 = vadd.f32 %v1382_v1, %v579_v4 }
  0xf5   :  { %v974_v9 = vpop.f32.mrf.mxu0  ;;  %v1022_v10 = vpop.f32.mrf.mxu1 }
  0xf6   :  { %763 = vst [vmem:[%s1643_s3 + $0x58] sm:$0xff] %v699_v5  ;;  %795 = vst [vmem:[%s1643_s3 + $0x158] sm:$0xff] %v731_v6  ;;  %v698_v11 = vmax.f32 %v420_v7, 0.0  ;;  %v730_v12 = vmax.f32 %v580_v8, 0.0  ;;  %v435_v13 = vadd.f32 %v974_v9, %v1382_v1  ;;  %v595_v14 = vadd.f32 %v1022_v10, %v1382_v1 }
  0xf7   :  { %v429_v15 = vpop.f32.mrf.mxu0  ;;  %v589_v16 = vpop.f32.mrf.mxu1 }
  0xf8   :  { %762 = vst [vmem:[%s1643_s3 + $0x50] sm:$0xff] %v698_v11  ;;  %794 = vst [vmem:[%s1643_s3 + $0x150] sm:$0xff] %v730_v12  ;;  %v701_v17 = vmax.f32 %v435_v13, 0.0  ;;  %v733_v18 = vmax.f32 %v595_v14, 0.0  ;;  %v430_v19 = vadd.f32 %v1382_v1, %v429_v15  ;;  %v590_v20 = vadd.f32 %v1382_v1, %v589_v16 }
  0xf9   :  { %v977_v21 = vpop.f32.mrf.mxu0  ;;  %v1025_v22 = vpop.f32.mrf.mxu1 }
  0xfa   :  { %765 = vst [vmem:[%s1643_s3 + $0x68] sm:$0xff] %v701_v17  ;;  %797 = vst [vmem:[%s1643_s3 + $0x168] sm:$0xff] %v733_v18  ;;  %v700_v23 = vmax.f32 %v430_v19, 0.0  ;;  %v732_v24 = vmax.f32 %v590_v20, 0.0  ;;  %v445_v25 = vadd.f32 %v977_v21, %v1382_v1  ;;  %v605_v26 = vadd.f32 %v1025_v22, %v1382_v1 }
  0xfb   :  { %v439_v27 = vpop.f32.mrf.mxu0  ;;  %v599_v28 = vpop.f32.mrf.mxu1 }
  0xfc   :  { %764 = vst [vmem:[%s1643_s3 + $0x60] sm:$0xff] %v700_v23  ;;  %796 = vst [vmem:[%s1643_s3 + $0x160] sm:$0xff] %v732_v24  ;;  %v703_v29 = vmax.f32 %v445_v25, 0.0  ;;  %v735_v30 = vmax.f32 %v605_v26, 0.0  ;;  %v440_v31 = vadd.f32 %v1382_v1, %v439_v27  ;;  %v600_v32 = vadd.f32 %v1382_v1, %v599_v28 }
  0xfd   :  { %v980_v33 = vpop.f32.mrf.mxu0  ;;  %v1028_v34 = vpop.f32.mrf.mxu1 }
  0xfe   :  { %767 = vst [vmem:[%s1643_s3 + $0x78] sm:$0xff] %v703_v29  ;;  %799 = vst [vmem:[%s1643_s3 + $0x178] sm:$0xff] %v735_v30  ;;  %v702_v35 = vmax.f32 %v440_v31, 0.0  ;;  %v734_v36 = vmax.f32 %v600_v32, 0.0  ;;  %v455_v37 = vadd.f32 %v980_v33, %v1382_v1  ;;  %v615_v38 = vadd.f32 %v1028_v34, %v1382_v1 }
  0xff   :  { %v449_v39 = vpop.f32.mrf.mxu0  ;;  %v609_v40 = vpop.f32.mrf.mxu1 }
 0x100   :  { %766 = vst [vmem:[%s1643_s3 + $0x70] sm:$0xff] %v702_v35  ;;  %798 = vst [vmem:[%s1643_s3 + $0x170] sm:$0xff] %v734_v36  ;;  %v705_v41 = vmax.f32 %v455_v37, 0.0  ;;  %v737_v42 = vmax.f32 %v615_v38, 0.0  ;;  %v450_v43 = vadd.f32 %v1382_v1, %v449_v39  ;;  %v610_v44 = vadd.f32 %v1382_v1, %v609_v40 }
 0x101   :  { %v983_v45 = vpop.f32.mrf.mxu0  ;;  %v1031_v46 = vpop.f32.mrf.mxu1 }
 0x102   :  { %769 = vst [vmem:[%s1643_s3 + $0x88] sm:$0xff] %v705_v41  ;;  %801 = vst [vmem:[%s1643_s3 + $0x188] sm:$0xff] %v737_v42  ;;  %v704_v47 = vmax.f32 %v450_v43, 0.0  ;;  %v736_v48 = vmax.f32 %v610_v44, 0.0  ;;  %v465_v49 = vadd.f32 %v983_v45, %v1382_v1  ;;  %v625_v50 = vadd.f32 %v1031_v46, %v1382_v1 }
 0x103   :  { %v459_v51 = vpop.f32.mrf.mxu0  ;;  %v619_v52 = vpop.f32.mrf.mxu1 }
 0x104   :  { %768 = vst [vmem:[%s1643_s3 + $0x80] sm:$0xff] %v704_v47  ;;  %800 = vst [vmem:[%s1643_s3 + $0x180] sm:$0xff] %v736_v48  ;;  %v707_v53 = vmax.f32 %v465_v49, 0.0  ;;  %v739_v54 = vmax.f32 %v625_v50, 0.0  ;;  %v460_v55 = vadd.f32 %v1382_v1, %v459_v51  ;;  %v620_v56 = vadd.f32 %v1382_v1, %v619_v52 }
 0x105   :  { %v986_v57 = vpop.f32.mrf.mxu0  ;;  %v1034_v58 = vpop.f32.mrf.mxu1 }
 0x106   :  { %771 = vst [vmem:[%s1643_s3 + $0x98] sm:$0xff] %v707_v53  ;;  %803 = vst [vmem:[%s1643_s3 + $0x198] sm:$0xff] %v739_v54  ;;  %v706_v59 = vmax.f32 %v460_v55, 0.0  ;;  %v738_v60 = vmax.f32 %v620_v56, 0.0  ;;  %v475_v61 = vadd.f32 %v986_v57, %v1382_v1  ;;  %v635_v62 = vadd.f32 %v1034_v58, %v1382_v1 }
 0x107   :  { %v469_v63 = vpop.f32.mrf.mxu0  ;;  %v629_v0 = vpop.f32.mrf.mxu1 }
 0x108   :  { %770 = vst [vmem:[%s1643_s3 + $0x90] sm:$0xff] %v706_v59  ;;  %802 = vst [vmem:[%s1643_s3 + $0x190] sm:$0xff] %v738_v60  ;;  %v709_v2 = vmax.f32 %v475_v61, 0.0  ;;  %v741_v3 = vmax.f32 %v635_v62, 0.0  ;;  %v470_v4 = vadd.f32 %v1382_v1, %v469_v63  ;;  %v630_v5 = vadd.f32 %v1382_v1, %v629_v0 }
 0x109   :  { %v989_v6 = vpop.f32.mrf.mxu0  ;;  %v1037_v7 = vpop.f32.mrf.mxu1 }
 0x10a   :  { %773 = vst [vmem:[%s1643_s3 + $0xa8] sm:$0xff] %v709_v2  ;;  %805 = vst [vmem:[%s1643_s3 + $0x1a8] sm:$0xff] %v741_v3  ;;  %v708_v8 = vmax.f32 %v470_v4, 0.0  ;;  %v740_v9 = vmax.f32 %v630_v5, 0.0  ;;  %v485_v10 = vadd.f32 %v989_v6, %v1382_v1  ;;  %v645_v11 = vadd.f32 %v1037_v7, %v1382_v1 }
 0x10b   :  { %v479_v12 = vpop.f32.mrf.mxu0  ;;  %v639_v13 = vpop.f32.mrf.mxu1 }
 0x10c   :  { %772 = vst [vmem:[%s1643_s3 + $0xa0] sm:$0xff] %v708_v8  ;;  %804 = vst [vmem:[%s1643_s3 + $0x1a0] sm:$0xff] %v740_v9  ;;  %v711_v14 = vmax.f32 %v485_v10, 0.0  ;;  %v743_v15 = vmax.f32 %v645_v11, 0.0  ;;  %v480_v16 = vadd.f32 %v1382_v1, %v479_v12  ;;  %v640_v17 = vadd.f32 %v1382_v1, %v639_v13 }
 0x10d   :  { %v992_v18 = vpop.f32.mrf.mxu0  ;;  %v1040_v19 = vpop.f32.mrf.mxu1 }
 0x10e   :  { %775 = vst [vmem:[%s1643_s3 + $0xb8] sm:$0xff] %v711_v14  ;;  %807 = vst [vmem:[%s1643_s3 + $0x1b8] sm:$0xff] %v743_v15  ;;  %v710_v20 = vmax.f32 %v480_v16, 0.0  ;;  %v742_v21 = vmax.f32 %v640_v17, 0.0  ;;  %v495_v22 = vadd.f32 %v992_v18, %v1382_v1  ;;  %v655_v23 = vadd.f32 %v1040_v19, %v1382_v1 }
 0x10f   :  { %v489_v24 = vpop.f32.mrf.mxu0  ;;  %v649_v25 = vpop.f32.mrf.mxu1 }
 0x110   :  { %774 = vst [vmem:[%s1643_s3 + $0xb0] sm:$0xff] %v710_v20  ;;  %806 = vst [vmem:[%s1643_s3 + $0x1b0] sm:$0xff] %v742_v21  ;;  %v713_v26 = vmax.f32 %v495_v22, 0.0  ;;  %v745_v27 = vmax.f32 %v655_v23, 0.0  ;;  %v490_v28 = vadd.f32 %v1382_v1, %v489_v24  ;;  %v650_v29 = vadd.f32 %v1382_v1, %v649_v25 }
 0x111   :  { %v995_v30 = vpop.f32.mrf.mxu0  ;;  %v1043_v31 = vpop.f32.mrf.mxu1 }
 0x112   :  { %777 = vst [vmem:[%s1643_s3 + $0xc8] sm:$0xff] %v713_v26  ;;  %809 = vst [vmem:[%s1643_s3 + $0x1c8] sm:$0xff] %v745_v27  ;;  %v712_v32 = vmax.f32 %v490_v28, 0.0  ;;  %v744_v33 = vmax.f32 %v650_v29, 0.0  ;;  %v505_v34 = vadd.f32 %v995_v30, %v1382_v1  ;;  %v665_v35 = vadd.f32 %v1043_v31, %v1382_v1 }
 0x113   :  { %v499_v36 = vpop.f32.mrf.mxu0  ;;  %v659_v37 = vpop.f32.mrf.mxu1 }
 0x114   :  { %776 = vst [vmem:[%s1643_s3 + $0xc0] sm:$0xff] %v712_v32  ;;  %808 = vst [vmem:[%s1643_s3 + $0x1c0] sm:$0xff] %v744_v33  ;;  %v715_v38 = vmax.f32 %v505_v34, 0.0  ;;  %v747_v39 = vmax.f32 %v665_v35, 0.0  ;;  %v500_v40 = vadd.f32 %v1382_v1, %v499_v36  ;;  %v660_v41 = vadd.f32 %v1382_v1, %v659_v37 }
 0x115   :  { %v998_v42 = vpop.f32.mrf.mxu0  ;;  %v1046_v43 = vpop.f32.mrf.mxu1 }
 0x116   :  { %779 = vst [vmem:[%s1643_s3 + $0xd8] sm:$0xff] %v715_v38  ;;  %811 = vst [vmem:[%s1643_s3 + $0x1d8] sm:$0xff] %v747_v39  ;;  %v714_v44 = vmax.f32 %v500_v40, 0.0  ;;  %v746_v45 = vmax.f32 %v660_v41, 0.0  ;;  %v515_v46 = vadd.f32 %v998_v42, %v1382_v1  ;;  %v675_v47 = vadd.f32 %v1046_v43, %v1382_v1 }
 0x117   :  { %v509_v48 = vpop.f32.mrf.mxu0  ;;  %v669_v49 = vpop.f32.mrf.mxu1 }
 0x118   :  { %778 = vst [vmem:[%s1643_s3 + $0xd0] sm:$0xff] %v714_v44  ;;  %810 = vst [vmem:[%s1643_s3 + $0x1d0] sm:$0xff] %v746_v45  ;;  %v717_v50 = vmax.f32 %v515_v46, 0.0  ;;  %v749_v51 = vmax.f32 %v675_v47, 0.0  ;;  %v510_v52 = vadd.f32 %v1382_v1, %v509_v48  ;;  %v670_v53 = vadd.f32 %v1382_v1, %v669_v49 }
 0x119   :  { %v1001_v54 = vpop.f32.mrf.mxu0  ;;  %v1049_v55 = vpop.f32.mrf.mxu1 }
 0x11a   :  { %781 = vst [vmem:[%s1643_s3 + $0xe8] sm:$0xff] %v717_v50  ;;  %813 = vst [vmem:[%s1643_s3 + $0x1e8] sm:$0xff] %v749_v51  ;;  %v716_v56 = vmax.f32 %v510_v52, 0.0  ;;  %v748_v57 = vmax.f32 %v670_v53, 0.0  ;;  %v525_v58 = vadd.f32 %v1001_v54, %v1382_v1  ;;  %v685_v59 = vadd.f32 %v1049_v55, %v1382_v1 }
 0x11b   :  { %v519_v60 = vpop.f32.mrf.mxu0  ;;  %v679_v61 = vpop.f32.mrf.mxu1 }
 0x11c   :  { %780 = vst [vmem:[%s1643_s3 + $0xe0] sm:$0xff] %v716_v56  ;;  %812 = vst [vmem:[%s1643_s3 + $0x1e0] sm:$0xff] %v748_v57  ;;  %v719_v62 = vmax.f32 %v525_v58, 0.0  ;;  %v751_v63 = vmax.f32 %v685_v59, 0.0  ;;  %v520_v0 = vadd.f32 %v1382_v1, %v519_v60  ;;  %v680_v2 = vadd.f32 %v1382_v1, %v679_v61 }
 0x11e   :  { %783 = vst [vmem:[%s1643_s3 + $0xf8] sm:$0xff] %v719_v62  ;;  %815 = vst [vmem:[%s1643_s3 + $0x1f8] sm:$0xff] %v751_v63  ;;  %v718_v3 = vmax.f32 %v520_v0, 0.0  ;;  %v750_v4 = vmax.f32 %v680_v2, 0.0 }
 0x120   :  { %782 = vst [vmem:[%s1643_s3 + $0xf0] sm:$0xff] %v718_v3  ;;  %814 = vst [vmem:[%s1643_s3 + $0x1f0] sm:$0xff] %v750_v4 }
 0x121   :  { %820 = vsyncpa [#allocation3], 1 }
 0x122   :  { %821 = vsyncpa [#allocation5], 1 }

// kernel: decoder_forward.11
= control target key start
LH: loop header
LB: loop body
LE: loop exit
PB: predicated region body
PF: predicated region fallthrough
CT: control target
= control target key end

     0   :  { %vm1047_vm0 = vcmask 1043456   ;;  %vm278_vm1 = vcmask 31744   ;;  %s5903_s1 = inlined_call_operand.vmem [shape: f32[4,128], index: 1, kind: input, shape index: {}]   ;;  %s5904_s0 = inlined_call_operand.vmem [shape: f32[2048,4], index: 0, kind: input, shape index: {}]   ;;  %s5905_s2 = inlined_call_operand.vmem [shape: f32[1,128], index: 2, kind: input, shape index: {}]   ;;  %s5906_s3 = inlined_call_operand.vmem [shape: f32[2048,128], index: 3, kind: output, shape index: {}]  }
   0x1   :  { %v270_v0 = vld [vmem:[%s5903_s1] sm:$0xf]  ;;  %v15_v3 = vld [vmem:[%s5904_s0 + $0x8] sm:$0xff]  ;;  %v16_v5 = vld [vmem:[%s5904_s0 + $0x10] sm:$0xff] }
   0x2   :  { %v14_v1 = vld [vmem:[%s5904_s0] sm:$0xff]  ;;  %3427 = vmatprep.subr.msk.mxu0 %vm1047_vm0, %v270_v0  ;;  %3813 = vmatprep.subr.msk.mxu1 %vm1047_vm0, %v270_v0  ;;  %v143_v4 = vld [vmem:[%s5904_s0 + $0x408] sm:$0xff]  ;;  %v144_v6 = vld [vmem:[%s5904_s0 + $0x410] sm:$0xff] }
   0x3   :  { %v142_v2 = vld [vmem:[%s5904_s0 + $0x400] sm:$0xff]  ;;  %3428 = vmatpush3.msk.msra.mxu0 %vm1047_vm0, %v270_v0  ;;  %3814 = vmatpush3.msk.msra.mxu1 %vm1047_vm0, %v270_v0  ;;  %v17_v7 = vld [vmem:[%s5904_s0 + $0x18] sm:$0xff]  ;;  %v19_v11 = vld [vmem:[%s5904_s0 + $0x28] sm:$0xff] }
   0x4   :  { %3429 = vmatprep.mubr.msk.f32.mxu0 %vm278_vm1, %v14_v1  ;;  %3621 = vmatprep.mubr.msk.f32.mxu1 %vm278_vm1, %v142_v2  ;;  %v145_v8 = vld [vmem:[%s5904_s0 + $0x418] sm:$0xff]  ;;  %v18_v9 = vld [vmem:[%s5904_s0 + $0x20] sm:$0xff]  ;;  %v147_v12 = vld [vmem:[%s5904_s0 + $0x428] sm:$0xff] }
   0x5   :  { %3430 = vmatmul.mubr.msk.f32.vlgmr.msra.gmra.mxu0 %vm278_vm1, %v15_v3  ;;  %3622 = vmatmul.mubr.msk.f32.vlgmr.msra.gmra.mxu1 %vm278_vm1, %v143_v4  ;;  %v146_v10 = vld [vmem:[%s5904_s0 + $0x420] sm:$0xff]  ;;  %v20_v13 = vld [vmem:[%s5904_s0 + $0x30] sm:$0xff]  ;;  %v21_v15 = vld [vmem:[%s5904_s0 + $0x38] sm:$0xff] }
   0x6   :  { %3432 = vmatprep.mubr.msk.f32.mxu0 %vm278_vm1, %v16_v5  ;;  %3624 = vmatprep.mubr.msk.f32.mxu1 %vm278_vm1, %v144_v6  ;;  %v148_v14 = vld [vmem:[%s5904_s0 + $0x430] sm:$0xff]  ;;  %v149_v16 = vld [vmem:[%s5904_s0 + $0x438] sm:$0xff]  ;;  %v22_v17 = vld [vmem:[%s5904_s0 + $0x40] sm:$0xff] }
   0x7   :  { %v150_v18 = vld [vmem:[%s5904_s0 + $0x440] sm:$0xff]  ;;  %v23_v19 = vld [vmem:[%s5904_s0 + $0x48] sm:$0xff]  ;;  %v24_v21 = vld [vmem:[%s5904_s0 + $0x50] sm:$0xff] }
   0x8   :  { %v151_v20 = vld [vmem:[%s5904_s0 + $0x448] sm:$0xff]  ;;  %v152_v22 = vld [vmem:[%s5904_s0 + $0x450] sm:$0xff]  ;;  %v25_v23 = vld [vmem:[%s5904_s0 + $0x58] sm:$0xff] }
   0x9   :  { %3433 = vmatmul.mubr.msk.f32.gmra.mxu0 %vm278_vm1, %v17_v7  ;;  %3625 = vmatmul.mubr.msk.f32.gmra.mxu1 %vm278_vm1, %v145_v8  ;;  %v153_v24 = vld [vmem:[%s5904_s0 + $0x458] sm:$0xff]  ;;  %v26_v25 = vld [vmem:[%s5904_s0 + $0x60] sm:$0xff]  ;;  %v27_v27 = vld [vmem:[%s5904_s0 + $0x68] sm:$0xff] }
   0xa   :  { %3435 = vmatprep.mubr.msk.f32.mxu0 %vm278_vm1, %v18_v9  ;;  %3627 = vmatprep.mubr.msk.f32.mxu1 %vm278_vm1, %v146_v10  ;;  %v154_v26 = vld [vmem:[%s5904_s0 + $0x460] sm:$0xff]  ;;  %v155_v28 = vld [vmem:[%s5904_s0 + $0x468] sm:$0xff]  ;;  %v28_v29 = vld [vmem:[%s5904_s0 + $0x70] sm:$0xff] }
   0xb   :  { %v156_v30 = vld [vmem:[%s5904_s0 + $0x470] sm:$0xff]  ;;  %v29_v31 = vld [vmem:[%s5904_s0 + $0x78] sm:$0xff]  ;;  %v30_v33 = vld [vmem:[%s5904_s0 + $0x80] sm:$0xff] }
   0xc   :  { %v157_v32 = vld [vmem:[%s5904_s0 + $0x478] sm:$0xff]  ;;  %v158_v34 = vld [vmem:[%s5904_s0 + $0x480] sm:$0xff]  ;;  %v31_v35 = vld [vmem:[%s5904_s0 + $0x88] sm:$0xff] }
   0xd   :  { %3436 = vmatmul.mubr.msk.f32.gmra.mxu0 %vm278_vm1, %v19_v11  ;;  %3628 = vmatmul.mubr.msk.f32.gmra.mxu1 %vm278_vm1, %v147_v12  ;;  %v159_v36 = vld [vmem:[%s5904_s0 + $0x488] sm:$0xff]  ;;  %v32_v37 = vld [vmem:[%s5904_s0 + $0x90] sm:$0xff]  ;;  %v33_v39 = vld [vmem:[%s5904_s0 + $0x98] sm:$0xff] }
   0xe   :  { %3438 = vmatprep.mubr.msk.f32.mxu0 %vm278_vm1, %v20_v13  ;;  %3630 = vmatprep.mubr.msk.f32.mxu1 %vm278_vm1, %v148_v14  ;;  %v160_v38 = vld [vmem:[%s5904_s0 + $0x490] sm:$0xff]  ;;  %v161_v40 = vld [vmem:[%s5904_s0 + $0x498] sm:$0xff]  ;;  %v34_v41 = vld [vmem:[%s5904_s0 + $0xa0] sm:$0xff] }
   0xf   :  { %v162_v42 = vld [vmem:[%s5904_s0 + $0x4a0] sm:$0xff]  ;;  %v35_v43 = vld [vmem:[%s5904_s0 + $0xa8] sm:$0xff]  ;;  %v36_v45 = vld [vmem:[%s5904_s0 + $0xb0] sm:$0xff] }
  0x10   :  { %v163_v44 = vld [vmem:[%s5904_s0 + $0x4a8] sm:$0xff]  ;;  %v164_v46 = vld [vmem:[%s5904_s0 + $0x4b0] sm:$0xff]  ;;  %v37_v47 = vld [vmem:[%s5904_s0 + $0xb8] sm:$0xff] }
  0x11   :  { %3439 = vmatmul.mubr.msk.f32.gmra.mxu0 %vm278_vm1, %v21_v15  ;;  %3631 = vmatmul.mubr.msk.f32.gmra.mxu1 %vm278_vm1, %v149_v16  ;;  %v165_v48 = vld [vmem:[%s5904_s0 + $0x4b8] sm:$0xff]  ;;  %v38_v49 = vld [vmem:[%s5904_s0 + $0xc0] sm:$0xff]  ;;  %v39_v51 = vld [vmem:[%s5904_s0 + $0xc8] sm:$0xff] }
  0x12   :  { %3441 = vmatprep.mubr.msk.f32.mxu0 %vm278_vm1, %v22_v17  ;;  %3633 = vmatprep.mubr.msk.f32.mxu1 %vm278_vm1, %v150_v18  ;;  %v166_v50 = vld [vmem:[%s5904_s0 + $0x4c0] sm:$0xff]  ;;  %v167_v52 = vld [vmem:[%s5904_s0 + $0x4c8] sm:$0xff]  ;;  %v40_v53 = vld [vmem:[%s5904_s0 + $0xd0] sm:$0xff] }
  0x13   :  { %v168_v54 = vld [vmem:[%s5904_s0 + $0x4d0] sm:$0xff]  ;;  %v41_v55 = vld [vmem:[%s5904_s0 + $0xd8] sm:$0xff]  ;;  %v42_v57 = vld [vmem:[%s5904_s0 + $0xe0] sm:$0xff] }
  0x14   :  { %v169_v56 = vld [vmem:[%s5904_s0 + $0x4d8] sm:$0xff]  ;;  %v170_v58 = vld [vmem:[%s5904_s0 + $0x4e0] sm:$0xff]  ;;  %v43_v59 = vld [vmem:[%s5904_s0 + $0xe8] sm:$0xff] }
  0x15   :  { %3442 = vmatmul.mubr.msk.f32.gmra.mxu0 %vm278_vm1, %v23_v19  ;;  %3634 = vmatmul.mubr.msk.f32.gmra.mxu1 %vm278_vm1, %v151_v20  ;;  %v171_v60 = vld [vmem:[%s5904_s0 + $0x4e8] sm:$0xff]  ;;  %v44_v61 = vld [vmem:[%s5904_s0 + $0xf0] sm:$0xff]  ;;  %v45_v63 = vld [vmem:[%s5904_s0 + $0xf8] sm:$0xff] }
  0x16   :  { %3444 = vmatprep.mubr.msk.f32.mxu0 %vm278_vm1, %v24_v21  ;;  %3636 = vmatprep.mubr.msk.f32.mxu1 %vm278_vm1, %v152_v22  ;;  %v172_v62 = vld [vmem:[%s5904_s0 + $0x4f0] sm:$0xff]  ;;  %v173_v0 = vld [vmem:[%s5904_s0 + $0x4f8] sm:$0xff]  ;;  %v46_v1 = vld [vmem:[%s5904_s0 + $0x100] sm:$0xff] }
  0x17   :  { %v174_v2 = vld [vmem:[%s5904_s0 + $0x500] sm:$0xff]  ;;  %v47_v3 = vld [vmem:[%s5904_s0 + $0x108] sm:$0xff]  ;;  %v48_v5 = vld [vmem:[%s5904_s0 + $0x110] sm:$0xff] }
  0x18   :  { %v175_v4 = vld [vmem:[%s5904_s0 + $0x508] sm:$0xff]  ;;  %v176_v6 = vld [vmem:[%s5904_s0 + $0x510] sm:$0xff]  ;;  %v49_v7 = vld [vmem:[%s5904_s0 + $0x118] sm:$0xff] }
  0x19   :  { %3445 = vmatmul.mubr.msk.f32.gmra.mxu0 %vm278_vm1, %v25_v23  ;;  %3637 = vmatmul.mubr.msk.f32.gmra.mxu1 %vm278_vm1, %v153_v24  ;;  %v177_v8 = vld [vmem:[%s5904_s0 + $0x518] sm:$0xff]  ;;  %v50_v9 = vld [vmem:[%s5904_s0 + $0x120] sm:$0xff]  ;;  %v51_v11 = vld [vmem:[%s5904_s0 + $0x128] sm:$0xff] }
  0x1a   :  { %3447 = vmatprep.mubr.msk.f32.mxu0 %vm278_vm1, %v26_v25  ;;  %3639 = vmatprep.mubr.msk.f32.mxu1 %vm278_vm1, %v154_v26  ;;  %v178_v10 = vld [vmem:[%s5904_s0 + $0x520] sm:$0xff]  ;;  %v179_v12 = vld [vmem:[%s5904_s0 + $0x528] sm:$0xff]  ;;  %v52_v13 = vld [vmem:[%s5904_s0 + $0x130] sm:$0xff] }
  0x1b   :  { %v180_v14 = vld [vmem:[%s5904_s0 + $0x530] sm:$0xff]  ;;  %v53_v15 = vld [vmem:[%s5904_s0 + $0x138] sm:$0xff]  ;;  %v54_v17 = vld [vmem:[%s5904_s0 + $0x140] sm:$0xff] }
  0x1c   :  { %v181_v16 = vld [vmem:[%s5904_s0 + $0x538] sm:$0xff]  ;;  %v182_v18 = vld [vmem:[%s5904_s0 + $0x540] sm:$0xff]  ;;  %v55_v19 = vld [vmem:[%s5904_s0 + $0x148] sm:$0xff] }
  0x1d   :  { %3448 = vmatmul.mubr.msk.f32.gmra.mxu0 %vm278_vm1, %v27_v27  ;;  %3640 = vmatmul.mubr.msk.f32.gmra.mxu1 %vm278_vm1, %v155_v28  ;;  %v183_v20 = vld [vmem:[%s5904_s0 + $0x548] sm:$0xff]  ;;  %v56_v21 = vld [vmem:[%s5904_s0 + $0x150] sm:$0xff]  ;;  %v57_v23 = vld [vmem:[%s5904_s0 + $0x158] sm:$0xff] }
  0x1e   :  { %3450 = vmatprep.mubr.msk.f32.mxu0 %vm278_vm1, %v28_v29  ;;  %3642 = vmatprep.mubr.msk.f32.mxu1 %vm278_vm1, %v156_v30  ;;  %v184_v22 = vld [vmem:[%s5904_s0 + $0x550] sm:$0xff]  ;;  %v185_v24 = vld [vmem:[%s5904_s0 + $0x558] sm:$0xff]  ;;  %v58_v25 = vld [vmem:[%s5904_s0 + $0x160] sm:$0xff] }
  0x1f   :  { %v186_v26 = vld [vmem:[%s5904_s0 + $0x560] sm:$0xff]  ;;  %v59_v27 = vld [vmem:[%s5904_s0 + $0x168] sm:$0xff]  ;;  %v60_v29 = vld [vmem:[%s5904_s0 + $0x170] sm:$0xff] }
  0x20   :  { %v187_v28 = vld [vmem:[%s5904_s0 + $0x568] sm:$0xff]  ;;  %v188_v30 = vld [vmem:[%s5904_s0 + $0x570] sm:$0xff] }
  0x21   :  { %3451 = vmatmul.mubr.msk.f32.gmra.mxu0 %vm278_vm1, %v29_v31  ;;  %3643 = vmatmul.mubr.msk.f32.gmra.mxu1 %vm278_vm1, %v157_v32  ;;  %v61_v31 = vld [vmem:[%s5904_s0 + $0x178] sm:$0xff] }
  0x22   :  { %3453 = vmatprep.mubr.msk.f32.mxu0 %vm278_vm1, %v30_v33  ;;  %3645 = vmatprep.mubr.msk.f32.mxu1 %vm278_vm1, %v158_v34  ;;  %v189_v32 = vld [vmem:[%s5904_s0 + $0x578] sm:$0xff]  ;;  %v62_v33 = vld [vmem:[%s5904_s0 + $0x180] sm:$0xff] }
  0x23   :  { %v190_v34 = vld [vmem:[%s5904_s0 + $0x580] sm:$0xff] }
  0x25   :  { %3454 = vmatmul.mubr.msk.f32.gmra.mxu0 %vm278_vm1, %v31_v35  ;;  %3646 = vmatmul.mubr.msk.f32.gmra.mxu1 %vm278_vm1, %v159_v36  ;;  %v63_v35 = vld [vmem:[%s5904_s0 + $0x188] sm:$0xff] }
  0x26   :  { %3456 = vmatprep.mubr.msk.f32.mxu0 %vm278_vm1, %v32_v37  ;;  %3648 = vmatprep.mubr.msk.f32.mxu1 %vm278_vm1, %v160_v38  ;;  %v191_v36 = vld [vmem:[%s5904_s0 + $0x588] sm:$0xff]  ;;  %v64_v37 = vld [vmem:[%s5904_s0 + $0x190] sm:$0xff] }
  0x27   :  { %v192_v38 = vld [vmem:[%s5904_s0 + $0x590] sm:$0xff] }
  0x29   :  { %3457 = vmatmul.mubr.msk.f32.gmra.mxu0 %vm278_vm1, %v33_v39  ;;  %3649 = vmatmul.mubr.msk.f32.gmra.mxu1 %vm278_vm1, %v161_v40  ;;  %v65_v39 = vld [vmem:[%s5904_s0 + $0x198] sm:$0xff] }
  0x2a   :  { %3459 = vmatprep.mubr.msk.f32.mxu0 %vm278_vm1, %v34_v41  ;;  %3651 = vmatprep.mubr.msk.f32.mxu1 %vm278_vm1, %v162_v42  ;;  %v193_v40 = vld [vmem:[%s5904_s0 + $0x598] sm:$0xff]  ;;  %v66_v41 = vld [vmem:[%s5904_s0 + $0x1a0] sm:$0xff] }
  0x2b   :  { %v194_v42 = vld [vmem:[%s5904_s0 + $0x5a0] sm:$0xff] }
  0x2d   :  { %3460 = vmatmul.mubr.msk.f32.gmra.mxu0 %vm278_vm1, %v35_v43  ;;  %3652 = vmatmul.mubr.msk.f32.gmra.mxu1 %vm278_vm1, %v163_v44  ;;  %v67_v43 = vld [vmem:[%s5904_s0 + $0x1a8] sm:$0xff] }
  0x2e   :  { %3462 = vmatprep.mubr.msk.f32.mxu0 %vm278_vm1, %v36_v45  ;;  %3654 = vmatprep.mubr.msk.f32.mxu1 %vm278_vm1, %v164_v46  ;;  %v195_v44 = vld [vmem:[%s5904_s0 + $0x5a8] sm:$0xff]  ;;  %v68_v45 = vld [vmem:[%s5904_s0 + $0x1b0] sm:$0xff] }
  0x2f   :  { %v196_v46 = vld [vmem:[%s5904_s0 + $0x5b0] sm:$0xff] }
  0x31   :  { %3463 = vmatmul.mubr.msk.f32.gmra.mxu0 %vm278_vm1, %v37_v47  ;;  %3655 = vmatmul.mubr.msk.f32.gmra.mxu1 %vm278_vm1, %v165_v48  ;;  %v69_v47 = vld [vmem:[%s5904_s0 + $0x1b8] sm:$0xff] }
  0x32   :  { %3465 = vmatprep.mubr.msk.f32.mxu0 %vm278_vm1, %v38_v49  ;;  %3657 = vmatprep.mubr.msk.f32.mxu1 %vm278_vm1, %v166_v50  ;;  %v197_v48 = vld [vmem:[%s5904_s0 + $0x5b8] sm:$0xff]  ;;  %v70_v49 = vld [vmem:[%s5904_s0 + $0x1c0] sm:$0xff] }
  0x33   :  { %v198_v50 = vld [vmem:[%s5904_s0 + $0x5c0] sm:$0xff] }
  0x35   :  { %3466 = vmatmul.mubr.msk.f32.gmra.mxu0 %vm278_vm1, %v39_v51  ;;  %3658 = vmatmul.mubr.msk.f32.gmra.mxu1 %vm278_vm1, %v167_v52  ;;  %v71_v51 = vld [vmem:[%s5904_s0 + $0x1c8] sm:$0xff] }
  0x36   :  { %3468 = vmatprep.mubr.msk.f32.mxu0 %vm278_vm1, %v40_v53  ;;  %3660 = vmatprep.mubr.msk.f32.mxu1 %vm278_vm1, %v168_v54  ;;  %v199_v52 = vld [vmem:[%s5904_s0 + $0x5c8] sm:$0xff]  ;;  %v72_v53 = vld [vmem:[%s5904_s0 + $0x1d0] sm:$0xff] }
  0x37   :  { %v200_v54 = vld [vmem:[%s5904_s0 + $0x5d0] sm:$0xff] }
  0x39   :  { %3469 = vmatmul.mubr.msk.f32.gmra.mxu0 %vm278_vm1, %v41_v55  ;;  %3661 = vmatmul.mubr.msk.f32.gmra.mxu1 %vm278_vm1, %v169_v56  ;;  %v73_v55 = vld [vmem:[%s5904_s0 + $0x1d8] sm:$0xff] }
  0x3a   :  { %3471 = vmatprep.mubr.msk.f32.mxu0 %vm278_vm1, %v42_v57  ;;  %3663 = vmatprep.mubr.msk.f32.mxu1 %vm278_vm1, %v170_v58  ;;  %v201_v56 = vld [vmem:[%s5904_s0 + $0x5d8] sm:$0xff]  ;;  %v74_v57 = vld [vmem:[%s5904_s0 + $0x1e0] sm:$0xff] }
  0x3b   :  { %v202_v58 = vld [vmem:[%s5904_s0 + $0x5e0] sm:$0xff] }
  0x3d   :  { %3472 = vmatmul.mubr.msk.f32.gmra.mxu0 %vm278_vm1, %v43_v59  ;;  %3664 = vmatmul.mubr.msk.f32.gmra.mxu1 %vm278_vm1, %v171_v60  ;;  %v75_v59 = vld [vmem:[%s5904_s0 + $0x1e8] sm:$0xff] }
  0x3e   :  { %3474 = vmatprep.mubr.msk.f32.mxu0 %vm278_vm1, %v44_v61  ;;  %3666 = vmatprep.mubr.msk.f32.mxu1 %vm278_vm1, %v172_v62  ;;  %v203_v60 = vld [vmem:[%s5904_s0 + $0x5e8] sm:$0xff]  ;;  %v76_v61 = vld [vmem:[%s5904_s0 + $0x1f0] sm:$0xff] }
  0x3f   :  { %v204_v62 = vld [vmem:[%s5904_s0 + $0x5f0] sm:$0xff] }
  0x41   :  { %3475 = vmatmul.mubr.msk.f32.gmra.mxu0 %vm278_vm1, %v45_v63  ;;  %3667 = vmatmul.mubr.msk.f32.gmra.mxu1 %vm278_vm1, %v173_v0  ;;  %v77_v63 = vld [vmem:[%s5904_s0 + $0x1f8] sm:$0xff] }
  0x42   :  { %3477 = vmatprep.mubr.msk.f32.mxu0 %vm278_vm1, %v46_v1  ;;  %3669 = vmatprep.mubr.msk.f32.mxu1 %vm278_vm1, %v174_v2  ;;  %v205_v0 = vld [vmem:[%s5904_s0 + $0x5f8] sm:$0xff]  ;;  %v78_v1 = vld [vmem:[%s5904_s0 + $0x200] sm:$0xff] }
  0x43   :  { %v206_v2 = vld [vmem:[%s5904_s0 + $0x600] sm:$0xff] }
  0x45   :  { %3478 = vmatmul.mubr.msk.f32.gmra.mxu0 %vm278_vm1, %v47_v3  ;;  %3670 = vmatmul.mubr.msk.f32.gmra.mxu1 %vm278_vm1, %v175_v4  ;;  %v79_v3 = vld [vmem:[%s5904_s0 + $0x208] sm:$0xff] }
  0x46   :  { %3480 = vmatprep.mubr.msk.f32.mxu0 %vm278_vm1, %v48_v5  ;;  %3672 = vmatprep.mubr.msk.f32.mxu1 %vm278_vm1, %v176_v6  ;;  %v207_v4 = vld [vmem:[%s5904_s0 + $0x608] sm:$0xff]  ;;  %v80_v5 = vld [vmem:[%s5904_s0 + $0x210] sm:$0xff] }
  0x47   :  { %v208_v6 = vld [vmem:[%s5904_s0 + $0x610] sm:$0xff] }
  0x49   :  { %3481 = vmatmul.mubr.msk.f32.gmra.mxu0 %vm278_vm1, %v49_v7  ;;  %3673 = vmatmul.mubr.msk.f32.gmra.mxu1 %vm278_vm1, %v177_v8  ;;  %v81_v7 = vld [vmem:[%s5904_s0 + $0x218] sm:$0xff] }
  0x4a   :  { %3483 = vmatprep.mubr.msk.f32.mxu0 %vm278_vm1, %v50_v9  ;;  %3675 = vmatprep.mubr.msk.f32.mxu1 %vm278_vm1, %v178_v10  ;;  %v209_v8 = vld [vmem:[%s5904_s0 + $0x618] sm:$0xff]  ;;  %v82_v9 = vld [vmem:[%s5904_s0 + $0x220] sm:$0xff] }
  0x4b   :  { %v210_v10 = vld [vmem:[%s5904_s0 + $0x620] sm:$0xff] }
  0x4d   :  { %3484 = vmatmul.mubr.msk.f32.gmra.mxu0 %vm278_vm1, %v51_v11  ;;  %3676 = vmatmul.mubr.msk.f32.gmra.mxu1 %vm278_vm1, %v179_v12  ;;  %v83_v11 = vld [vmem:[%s5904_s0 + $0x228] sm:$0xff] }
  0x4e   :  { %3486 = vmatprep.mubr.msk.f32.mxu0 %vm278_vm1, %v52_v13  ;;  %3678 = vmatprep.mubr.msk.f32.mxu1 %vm278_vm1, %v180_v14  ;;  %v211_v12 = vld [vmem:[%s5904_s0 + $0x628] sm:$0xff]  ;;  %v84_v13 = vld [vmem:[%s5904_s0 + $0x230] sm:$0xff] }
  0x4f   :  { %v212_v14 = vld [vmem:[%s5904_s0 + $0x630] sm:$0xff] }
  0x51   :  { %3487 = vmatmul.mubr.msk.f32.gmra.mxu0 %vm278_vm1, %v53_v15  ;;  %3679 = vmatmul.mubr.msk.f32.gmra.mxu1 %vm278_vm1, %v181_v16  ;;  %v85_v15 = vld [vmem:[%s5904_s0 + $0x238] sm:$0xff] }
  0x52   :  { %3489 = vmatprep.mubr.msk.f32.mxu0 %vm278_vm1, %v54_v17  ;;  %3681 = vmatprep.mubr.msk.f32.mxu1 %vm278_vm1, %v182_v18  ;;  %v213_v16 = vld [vmem:[%s5904_s0 + $0x638] sm:$0xff]  ;;  %v86_v17 = vld [vmem:[%s5904_s0 + $0x240] sm:$0xff] }
  0x53   :  { %v214_v18 = vld [vmem:[%s5904_s0 + $0x640] sm:$0xff] }
  0x55   :  { %3490 = vmatmul.mubr.msk.f32.gmra.mxu0 %vm278_vm1, %v55_v19  ;;  %3682 = vmatmul.mubr.msk.f32.gmra.mxu1 %vm278_vm1, %v183_v20  ;;  %v87_v19 = vld [vmem:[%s5904_s0 + $0x248] sm:$0xff] }
  0x56   :  { %3492 = vmatprep.mubr.msk.f32.mxu0 %vm278_vm1, %v56_v21  ;;  %3684 = vmatprep.mubr.msk.f32.mxu1 %vm278_vm1, %v184_v22  ;;  %v215_v20 = vld [vmem:[%s5904_s0 + $0x648] sm:$0xff]  ;;  %v88_v21 = vld [vmem:[%s5904_s0 + $0x250] sm:$0xff] }
  0x57   :  { %v216_v22 = vld [vmem:[%s5904_s0 + $0x650] sm:$0xff] }
  0x59   :  { %3493 = vmatmul.mubr.msk.f32.gmra.mxu0 %vm278_vm1, %v57_v23  ;;  %3685 = vmatmul.mubr.msk.f32.gmra.mxu1 %vm278_vm1, %v185_v24  ;;  %v89_v23 = vld [vmem:[%s5904_s0 + $0x258] sm:$0xff] }
  0x5a   :  { %3495 = vmatprep.mubr.msk.f32.mxu0 %vm278_vm1, %v58_v25  ;;  %3687 = vmatprep.mubr.msk.f32.mxu1 %vm278_vm1, %v186_v26  ;;  %v217_v24 = vld [vmem:[%s5904_s0 + $0x658] sm:$0xff]  ;;  %v90_v25 = vld [vmem:[%s5904_s0 + $0x260] sm:$0xff] }
  0x5b   :  { %v218_v26 = vld [vmem:[%s5904_s0 + $0x660] sm:$0xff] }
  0x5d   :  { %3496 = vmatmul.mubr.msk.f32.gmra.mxu0 %vm278_vm1, %v59_v27  ;;  %3688 = vmatmul.mubr.msk.f32.gmra.mxu1 %vm278_vm1, %v187_v28  ;;  %v91_v27 = vld [vmem:[%s5904_s0 + $0x268] sm:$0xff] }
  0x5e   :  { %3498 = vmatprep.mubr.msk.f32.mxu0 %vm278_vm1, %v60_v29  ;;  %3690 = vmatprep.mubr.msk.f32.mxu1 %vm278_vm1, %v188_v30  ;;  %v219_v28 = vld [vmem:[%s5904_s0 + $0x668] sm:$0xff]  ;;  %v92_v29 = vld [vmem:[%s5904_s0 + $0x270] sm:$0xff] }
  0x5f   :  { %v220_v30 = vld [vmem:[%s5904_s0 + $0x670] sm:$0xff] }
  0x61   :  { %3499 = vmatmul.mubr.msk.f32.gmra.mxu0 %vm278_vm1, %v61_v31  ;;  %3691 = vmatmul.mubr.msk.f32.gmra.mxu1 %vm278_vm1, %v189_v32  ;;  %v93_v31 = vld [vmem:[%s5904_s0 + $0x278] sm:$0xff] }
  0x62   :  { %3501 = vmatprep.mubr.msk.f32.mxu0 %vm278_vm1, %v62_v33  ;;  %3693 = vmatprep.mubr.msk.f32.mxu1 %vm278_vm1, %v190_v34  ;;  %v221_v32 = vld [vmem:[%s5904_s0 + $0x678] sm:$0xff]  ;;  %v94_v33 = vld [vmem:[%s5904_s0 + $0x280] sm:$0xff] }
  0x63   :  { %v222_v34 = vld [vmem:[%s5904_s0 + $0x680] sm:$0xff] }
  0x65   :  { %3502 = vmatmul.mubr.msk.f32.gmra.mxu0 %vm278_vm1, %v63_v35  ;;  %3694 = vmatmul.mubr.msk.f32.gmra.mxu1 %vm278_vm1, %v191_v36  ;;  %v95_v35 = vld [vmem:[%s5904_s0 + $0x288] sm:$0xff] }
  0x66   :  { %3504 = vmatprep.mubr.msk.f32.mxu0 %vm278_vm1, %v64_v37  ;;  %3696 = vmatprep.mubr.msk.f32.mxu1 %vm278_vm1, %v192_v38  ;;  %v223_v36 = vld [vmem:[%s5904_s0 + $0x688] sm:$0xff]  ;;  %v96_v37 = vld [vmem:[%s5904_s0 + $0x290] sm:$0xff] }
  0x67   :  { %v224_v38 = vld [vmem:[%s5904_s0 + $0x690] sm:$0xff] }
  0x69   :  { %3505 = vmatmul.mubr.msk.f32.gmra.mxu0 %vm278_vm1, %v65_v39  ;;  %3697 = vmatmul.mubr.msk.f32.gmra.mxu1 %vm278_vm1, %v193_v40  ;;  %v97_v39 = vld [vmem:[%s5904_s0 + $0x298] sm:$0xff] }
  0x6a   :  { %3507 = vmatprep.mubr.msk.f32.mxu0 %vm278_vm1, %v66_v41  ;;  %3699 = vmatprep.mubr.msk.f32.mxu1 %vm278_vm1, %v194_v42  ;;  %v225_v40 = vld [vmem:[%s5904_s0 + $0x698] sm:$0xff]  ;;  %v98_v41 = vld [vmem:[%s5904_s0 + $0x2a0] sm:$0xff] }
  0x6b   :  { %v226_v42 = vld [vmem:[%s5904_s0 + $0x6a0] sm:$0xff] }
  0x6d   :  { %3508 = vmatmul.mubr.msk.f32.gmra.mxu0 %vm278_vm1, %v67_v43  ;;  %3700 = vmatmul.mubr.msk.f32.gmra.mxu1 %vm278_vm1, %v195_v44  ;;  %v99_v43 = vld [vmem:[%s5904_s0 + $0x2a8] sm:$0xff] }
  0x6e   :  { %3510 = vmatprep.mubr.msk.f32.mxu0 %vm278_vm1, %v68_v45  ;;  %3702 = vmatprep.mubr.msk.f32.mxu1 %vm278_vm1, %v196_v46  ;;  %v227_v44 = vld [vmem:[%s5904_s0 + $0x6a8] sm:$0xff]  ;;  %v100_v45 = vld [vmem:[%s5904_s0 + $0x2b0] sm:$0xff] }
  0x6f   :  { %v228_v46 = vld [vmem:[%s5904_s0 + $0x6b0] sm:$0xff] }
  0x71   :  { %3511 = vmatmul.mubr.msk.f32.gmra.mxu0 %vm278_vm1, %v69_v47  ;;  %3703 = vmatmul.mubr.msk.f32.gmra.mxu1 %vm278_vm1, %v197_v48  ;;  %v101_v47 = vld [vmem:[%s5904_s0 + $0x2b8] sm:$0xff] }
  0x72   :  { %3513 = vmatprep.mubr.msk.f32.mxu0 %vm278_vm1, %v70_v49  ;;  %3705 = vmatprep.mubr.msk.f32.mxu1 %vm278_vm1, %v198_v50  ;;  %v229_v48 = vld [vmem:[%s5904_s0 + $0x6b8] sm:$0xff]  ;;  %v102_v49 = vld [vmem:[%s5904_s0 + $0x2c0] sm:$0xff] }
  0x73   :  { %v230_v50 = vld [vmem:[%s5904_s0 + $0x6c0] sm:$0xff] }
  0x75   :  { %3514 = vmatmul.mubr.msk.f32.gmra.mxu0 %vm278_vm1, %v71_v51  ;;  %3706 = vmatmul.mubr.msk.f32.gmra.mxu1 %vm278_vm1, %v199_v52  ;;  %v103_v51 = vld [vmem:[%s5904_s0 + $0x2c8] sm:$0xff] }
  0x76   :  { %3516 = vmatprep.mubr.msk.f32.mxu0 %vm278_vm1, %v72_v53  ;;  %3708 = vmatprep.mubr.msk.f32.mxu1 %vm278_vm1, %v200_v54  ;;  %v231_v52 = vld [vmem:[%s5904_s0 + $0x6c8] sm:$0xff]  ;;  %v104_v53 = vld [vmem:[%s5904_s0 + $0x2d0] sm:$0xff] }
  0x77   :  { %v232_v54 = vld [vmem:[%s5904_s0 + $0x6d0] sm:$0xff] }
  0x79   :  { %3517 = vmatmul.mubr.msk.f32.gmra.mxu0 %vm278_vm1, %v73_v55  ;;  %3709 = vmatmul.mubr.msk.f32.gmra.mxu1 %vm278_vm1, %v201_v56  ;;  %v105_v55 = vld [vmem:[%s5904_s0 + $0x2d8] sm:$0xff] }
  0x7a   :  { %3519 = vmatprep.mubr.msk.f32.mxu0 %vm278_vm1, %v74_v57  ;;  %3711 = vmatprep.mubr.msk.f32.mxu1 %vm278_vm1, %v202_v58  ;;  %v233_v56 = vld [vmem:[%s5904_s0 + $0x6d8] sm:$0xff]  ;;  %v106_v57 = vld [vmem:[%s5904_s0 + $0x2e0] sm:$0xff] }
  0x7b   :  { %v234_v58 = vld [vmem:[%s5904_s0 + $0x6e0] sm:$0xff] }
  0x7d   :  { %3520 = vmatmul.mubr.msk.f32.gmra.mxu0 %vm278_vm1, %v75_v59  ;;  %3712 = vmatmul.mubr.msk.f32.gmra.mxu1 %vm278_vm1, %v203_v60  ;;  %v107_v59 = vld [vmem:[%s5904_s0 + $0x2e8] sm:$0xff] }
  0x7e   :  { %3522 = vmatprep.mubr.msk.f32.mxu0 %vm278_vm1, %v76_v61  ;;  %3714 = vmatprep.mubr.msk.f32.mxu1 %vm278_vm1, %v204_v62  ;;  %v235_v60 = vld [vmem:[%s5904_s0 + $0x6e8] sm:$0xff]  ;;  %v108_v61 = vld [vmem:[%s5904_s0 + $0x2f0] sm:$0xff] }
  0x7f   :  { %v236_v62 = vld [vmem:[%s5904_s0 + $0x6f0] sm:$0xff] }
  0x81   :  { %3523 = vmatmul.mubr.msk.f32.gmra.mxu0 %vm278_vm1, %v77_v63  ;;  %3715 = vmatmul.mubr.msk.f32.gmra.mxu1 %vm278_vm1, %v205_v0  ;;  %v109_v63 = vld [vmem:[%s5904_s0 + $0x2f8] sm:$0xff] }
  0x82   :  { %3525 = vmatprep.mubr.msk.f32.mxu0 %vm278_vm1, %v78_v1  ;;  %3717 = vmatprep.mubr.msk.f32.mxu1 %vm278_vm1, %v206_v2  ;;  %v237_v0 = vld [vmem:[%s5904_s0 + $0x6f8] sm:$0xff]  ;;  %v110_v1 = vld [vmem:[%s5904_s0 + $0x300] sm:$0xff] }
  0x83   :  { %v238_v2 = vld [vmem:[%s5904_s0 + $0x700] sm:$0xff] }
  0x85   :  { %3526 = vmatmul.mubr.msk.f32.gmra.mxu0 %vm278_vm1, %v79_v3  ;;  %3718 = vmatmul.mubr.msk.f32.gmra.mxu1 %vm278_vm1, %v207_v4  ;;  %v111_v3 = vld [vmem:[%s5904_s0 + $0x308] sm:$0xff] }
  0x86   :  { %3528 = vmatprep.mubr.msk.f32.mxu0 %vm278_vm1, %v80_v5  ;;  %3720 = vmatprep.mubr.msk.f32.mxu1 %vm278_vm1, %v208_v6  ;;  %v239_v4 = vld [vmem:[%s5904_s0 + $0x708] sm:$0xff]  ;;  %v4625_v5 = vld [vmem:[%s5905_s2] ss:$0 sm:$0xff]  ;;  %v112_v6 = vld [vmem:[%s5904_s0 + $0x310] sm:$0xff] }
  0x89   :  { %3529 = vmatmul.mubr.msk.f32.gmra.mxu0 %vm278_vm1, %v81_v7  ;;  %3721 = vmatmul.mubr.msk.f32.gmra.mxu1 %vm278_vm1, %v209_v8  ;;  %v240_v7 = vld [vmem:[%s5904_s0 + $0x710] sm:$0xff] }
  0x8a   :  { %3531 = vmatprep.mubr.msk.f32.mxu0 %vm278_vm1, %v82_v9  ;;  %3723 = vmatprep.mubr.msk.f32.mxu1 %vm278_vm1, %v210_v10 }
  0x8d   :  { %3532 = vmatmul.mubr.msk.f32.gmra.mxu0 %vm278_vm1, %v83_v11  ;;  %3724 = vmatmul.mubr.msk.f32.gmra.mxu1 %vm278_vm1, %v211_v12  ;;  %v113_v12 = vld [vmem:[%s5904_s0 + $0x318] sm:$0xff] }
  0x8e   :  { %3534 = vmatprep.mubr.msk.f32.mxu0 %vm278_vm1, %v84_v13  ;;  %3726 = vmatprep.mubr.msk.f32.mxu1 %vm278_vm1, %v212_v14  ;;  %v241_v13 = vld [vmem:[%s5904_s0 + $0x718] sm:$0xff] }
  0x91   :  { %3535 = vmatmul.mubr.msk.f32.gmra.mxu0 %vm278_vm1, %v85_v15  ;;  %3727 = vmatmul.mubr.msk.f32.gmra.mxu1 %vm278_vm1, %v213_v16  ;;  %v114_v16 = vld [vmem:[%s5904_s0 + $0x320] sm:$0xff] }
  0x92   :  { %3537 = vmatprep.mubr.msk.f32.mxu0 %vm278_vm1, %v86_v17  ;;  %3729 = vmatprep.mubr.msk.f32.mxu1 %vm278_vm1, %v214_v18  ;;  %v242_v17 = vld [vmem:[%s5904_s0 + $0x720] sm:$0xff] }
  0x95   :  { %3538 = vmatmul.mubr.msk.f32.gmra.mxu0 %vm278_vm1, %v87_v19  ;;  %3730 = vmatmul.mubr.msk.f32.gmra.mxu1 %vm278_vm1, %v215_v20 }
  0x96   :  { %3540 = vmatprep.mubr.msk.f32.mxu0 %vm278_vm1, %v88_v21  ;;  %3732 = vmatprep.mubr.msk.f32.mxu1 %vm278_vm1, %v216_v22 }
  0x99   :  { %3541 = vmatmul.mubr.msk.f32.gmra.mxu0 %vm278_vm1, %v89_v23  ;;  %3733 = vmatmul.mubr.msk.f32.gmra.mxu1 %vm278_vm1, %v217_v24 }
  0x9a   :  { %3543 = vmatprep.mubr.msk.f32.mxu0 %vm278_vm1, %v90_v25  ;;  %3735 = vmatprep.mubr.msk.f32.mxu1 %vm278_vm1, %v218_v26 }
  0x9d   :  { %3544 = vmatmul.mubr.msk.f32.gmra.mxu0 %vm278_vm1, %v91_v27  ;;  %3736 = vmatmul.mubr.msk.f32.gmra.mxu1 %vm278_vm1, %v219_v28  ;;  %v115_v28 = vld [vmem:[%s5904_s0 + $0x328] sm:$0xff] }
  0x9e   :  { %3546 = vmatprep.mubr.msk.f32.mxu0 %vm278_vm1, %v92_v29  ;;  %3738 = vmatprep.mubr.msk.f32.mxu1 %vm278_vm1, %v220_v30  ;;  %v243_v29 = vld [vmem:[%s5904_s0 + $0x728] sm:$0xff] }
  0xa1   :  { %3547 = vmatmul.mubr.msk.f32.gmra.mxu0 %vm278_vm1, %v93_v31  ;;  %3739 = vmatmul.mubr.msk.f32.gmra.mxu1 %vm278_vm1, %v221_v32  ;;  %v116_v32 = vld [vmem:[%s5904_s0 + $0x330] sm:$0xff] }
  0xa2   :  { %3549 = vmatprep.mubr.msk.f32.mxu0 %vm278_vm1, %v94_v33  ;;  %3741 = vmatprep.mubr.msk.f32.mxu1 %vm278_vm1, %v222_v34  ;;  %v244_v33 = vld [vmem:[%s5904_s0 + $0x730] sm:$0xff] }
  0xa5   :  { %3550 = vmatmul.mubr.msk.f32.gmra.mxu0 %vm278_vm1, %v95_v35  ;;  %3742 = vmatmul.mubr.msk.f32.gmra.mxu1 %vm278_vm1, %v223_v36 }
  0xa6   :  { %3552 = vmatprep.mubr.msk.f32.mxu0 %vm278_vm1, %v96_v37  ;;  %3744 = vmatprep.mubr.msk.f32.mxu1 %vm278_vm1, %v224_v38 }
  0xa9   :  { %3553 = vmatmul.mubr.msk.f32.gmra.mxu0 %vm278_vm1, %v97_v39  ;;  %3745 = vmatmul.mubr.msk.f32.gmra.mxu1 %vm278_vm1, %v225_v40 }
  0xaa   :  { %3555 = vmatprep.mubr.msk.f32.mxu0 %vm278_vm1, %v98_v41  ;;  %3747 = vmatprep.mubr.msk.f32.mxu1 %vm278_vm1, %v226_v42 }
  0xad   :  { %3556 = vmatmul.mubr.msk.f32.gmra.mxu0 %vm278_vm1, %v99_v43  ;;  %3748 = vmatmul.mubr.msk.f32.gmra.mxu1 %vm278_vm1, %v227_v44  ;;  %v117_v44 = vld [vmem:[%s5904_s0 + $0x338] sm:$0xff] }
  0xae   :  { %3558 = vmatprep.mubr.msk.f32.mxu0 %vm278_vm1, %v100_v45  ;;  %3750 = vmatprep.mubr.msk.f32.mxu1 %vm278_vm1, %v228_v46  ;;  %v245_v45 = vld [vmem:[%s5904_s0 + $0x738] sm:$0xff] }
  0xb1   :  { %3559 = vmatmul.mubr.msk.f32.gmra.mxu0 %vm278_vm1, %v101_v47  ;;  %3751 = vmatmul.mubr.msk.f32.gmra.mxu1 %vm278_vm1, %v229_v48  ;;  %v118_v48 = vld [vmem:[%s5904_s0 + $0x340] sm:$0xff] }
  0xb2   :  { %3561 = vmatprep.mubr.msk.f32.mxu0 %vm278_vm1, %v102_v49  ;;  %3753 = vmatprep.mubr.msk.f32.mxu1 %vm278_vm1, %v230_v50  ;;  %v246_v49 = vld [vmem:[%s5904_s0 + $0x740] sm:$0xff] }
  0xb5   :  { %3562 = vmatmul.mubr.msk.f32.gmra.mxu0 %vm278_vm1, %v103_v51  ;;  %3754 = vmatmul.mubr.msk.f32.gmra.mxu1 %vm278_vm1, %v231_v52 }
  0xb6   :  { %3564 = vmatprep.mubr.msk.f32.mxu0 %vm278_vm1, %v104_v53  ;;  %3756 = vmatprep.mubr.msk.f32.mxu1 %vm278_vm1, %v232_v54 }
  0xb9   :  { %3565 = vmatmul.mubr.msk.f32.gmra.mxu0 %vm278_vm1, %v105_v55  ;;  %3757 = vmatmul.mubr.msk.f32.gmra.mxu1 %vm278_vm1, %v233_v56 }
  0xba   :  { %3567 = vmatprep.mubr.msk.f32.mxu0 %vm278_vm1, %v106_v57  ;;  %3759 = vmatprep.mubr.msk.f32.mxu1 %vm278_vm1, %v234_v58 }
  0xbd   :  { %3568 = vmatmul.mubr.msk.f32.gmra.mxu0 %vm278_vm1, %v107_v59  ;;  %3760 = vmatmul.mubr.msk.f32.gmra.mxu1 %vm278_vm1, %v235_v60  ;;  %v119_v60 = vld [vmem:[%s5904_s0 + $0x348] sm:$0xff] }
  0xbe   :  { %3570 = vmatprep.mubr.msk.f32.mxu0 %vm278_vm1, %v108_v61  ;;  %3762 = vmatprep.mubr.msk.f32.mxu1 %vm278_vm1, %v236_v62  ;;  %v247_v61 = vld [vmem:[%s5904_s0 + $0x748] sm:$0xff] }
  0xc1   :  { %3571 = vmatmul.mubr.msk.f32.gmra.mxu0 %vm278_vm1, %v109_v63  ;;  %3763 = vmatmul.mubr.msk.f32.gmra.mxu1 %vm278_vm1, %v237_v0  ;;  %v120_v0 = vld [vmem:[%s5904_s0 + $0x350] sm:$0xff] }
  0xc2   :  { %3573 = vmatprep.mubr.msk.f32.mxu0 %vm278_vm1, %v110_v1  ;;  %3765 = vmatprep.mubr.msk.f32.mxu1 %vm278_vm1, %v238_v2  ;;  %v248_v1 = vld [vmem:[%s5904_s0 + $0x750] sm:$0xff] }
  0xc5   :  { %v3431_v8 = vpop.f32.mrf.mxu0  ;;  %3574 = vmatmul.mubr.msk.f32.gmra.mxu0 %vm278_vm1, %v111_v3  ;;  %v3623_v9 = vpop.f32.mrf.mxu1  ;;  %3766 = vmatmul.mubr.msk.f32.gmra.mxu1 %vm278_vm1, %v239_v4 }
  0xc6   :  { %v1123_v10 = vadd.f32 %v3431_v8, %v4625_v5  ;;  %v1763_v11 = vadd.f32 %v3623_v9, %v4625_v5  ;;  %3576 = vmatprep.mubr.msk.f32.mxu0 %vm278_vm1, %v112_v6  ;;  %3768 = vmatprep.mubr.msk.f32.mxu1 %vm278_vm1, %v240_v7 }
  0xc7   :  { %v1117_v14 = vpop.f32.mrf.mxu0  ;;  %v1757_v15 = vpop.f32.mrf.mxu1 }
  0xc8   :  { %v2397_v18 = vmax.f32 %v1123_v10, 0.0  ;;  %v2525_v19 = vmax.f32 %v1763_v11, 0.0  ;;  %v1118_v20 = vadd.f32 %v4625_v5, %v1117_v14  ;;  %v1758_v21 = vadd.f32 %v4625_v5, %v1757_v15  ;;  %v249_v14 = vld [vmem:[%s5904_s0 + $0x758] sm:$0xff] }
  0xc9   :  { %v3434_v22 = vpop.f32.mrf.mxu0  ;;  %3577 = vmatmul.mubr.msk.f32.gmra.mxu0 %vm278_vm1, %v113_v12  ;;  %v3626_v23 = vpop.f32.mrf.mxu1  ;;  %3769 = vmatmul.mubr.msk.f32.gmra.mxu1 %vm278_vm1, %v241_v13  ;;  %v121_v13 = vld [vmem:[%s5904_s0 + $0x358] sm:$0xff] }
  0xca   :  { %2653 = vst [vmem:[%s5906_s3 + $0x8] sm:$0xff] %v2397_v18  ;;  %2781 = vst [vmem:[%s5906_s3 + $0x408] sm:$0xff] %v2525_v19  ;;  %v2396_v24 = vmax.f32 %v1118_v20, 0.0  ;;  %v2524_v25 = vmax.f32 %v1758_v21, 0.0  ;;  %v1133_v26 = vadd.f32 %v3434_v22, %v4625_v5  ;;  %v1773_v27 = vadd.f32 %v3626_v23, %v4625_v5  ;;  %3579 = vmatprep.mubr.msk.f32.mxu0 %vm278_vm1, %v114_v16  ;;  %v250_v18 = vld [vmem:[%s5904_s0 + $0x760] sm:$0xff] }
  0xcb   :  { %3771 = vmatprep.mubr.msk.f32.mxu1 %vm278_vm1, %v242_v17  ;;  %v1127_v30 = vpop.f32.mrf.mxu0  ;;  %v1767_v31 = vpop.f32.mrf.mxu1  ;;  %v122_v17 = vld [vmem:[%s5904_s0 + $0x360] sm:$0xff] }
  0xcc   :  { %2652 = vst [vmem:[%s5906_s3] sm:$0xff] %v2396_v24  ;;  %2780 = vst [vmem:[%s5906_s3 + $0x400] sm:$0xff] %v2524_v25  ;;  %v2399_v34 = vmax.f32 %v1133_v26, 0.0  ;;  %v2527_v35 = vmax.f32 %v1773_v27, 0.0  ;;  %v1128_v36 = vadd.f32 %v4625_v5, %v1127_v30  ;;  %v1768_v37 = vadd.f32 %v4625_v5, %v1767_v31  ;;  %v251_v30 = vld [vmem:[%s5904_s0 + $0x768] sm:$0xff] }
  0xcd   :  { %v3437_v38 = vpop.f32.mrf.mxu0  ;;  %3580 = vmatmul.mubr.msk.f32.gmra.mxu0 %vm278_vm1, %v115_v28  ;;  %v3629_v39 = vpop.f32.mrf.mxu1  ;;  %3772 = vmatmul.mubr.msk.f32.gmra.mxu1 %vm278_vm1, %v243_v29  ;;  %v123_v29 = vld [vmem:[%s5904_s0 + $0x368] sm:$0xff] }
  0xce   :  { %2655 = vst [vmem:[%s5906_s3 + $0x18] sm:$0xff] %v2399_v34  ;;  %2783 = vst [vmem:[%s5906_s3 + $0x418] sm:$0xff] %v2527_v35  ;;  %v2398_v40 = vmax.f32 %v1128_v36, 0.0  ;;  %v2526_v41 = vmax.f32 %v1768_v37, 0.0  ;;  %v1143_v42 = vadd.f32 %v3437_v38, %v4625_v5  ;;  %v1783_v43 = vadd.f32 %v3629_v39, %v4625_v5  ;;  %3582 = vmatprep.mubr.msk.f32.mxu0 %vm278_vm1, %v116_v32  ;;  %v252_v34 = vld [vmem:[%s5904_s0 + $0x770] sm:$0xff] }
  0xcf   :  { %3774 = vmatprep.mubr.msk.f32.mxu1 %vm278_vm1, %v244_v33  ;;  %v1137_v46 = vpop.f32.mrf.mxu0  ;;  %v1777_v47 = vpop.f32.mrf.mxu1  ;;  %v124_v33 = vld [vmem:[%s5904_s0 + $0x370] sm:$0xff] }
  0xd0   :  { %2654 = vst [vmem:[%s5906_s3 + $0x10] sm:$0xff] %v2398_v40  ;;  %2782 = vst [vmem:[%s5906_s3 + $0x410] sm:$0xff] %v2526_v41  ;;  %v2401_v50 = vmax.f32 %v1143_v42, 0.0  ;;  %v2529_v51 = vmax.f32 %v1783_v43, 0.0  ;;  %v1138_v52 = vadd.f32 %v4625_v5, %v1137_v46  ;;  %v1778_v53 = vadd.f32 %v4625_v5, %v1777_v47  ;;  %v253_v46 = vld [vmem:[%s5904_s0 + $0x778] sm:$0xff] }
  0xd1   :  { %v3440_v54 = vpop.f32.mrf.mxu0  ;;  %3583 = vmatmul.mubr.msk.f32.gmra.mxu0 %vm278_vm1, %v117_v44  ;;  %v3632_v55 = vpop.f32.mrf.mxu1  ;;  %3775 = vmatmul.mubr.msk.f32.gmra.mxu1 %vm278_vm1, %v245_v45  ;;  %v125_v45 = vld [vmem:[%s5904_s0 + $0x378] sm:$0xff] }
  0xd2   :  { %2657 = vst [vmem:[%s5906_s3 + $0x28] sm:$0xff] %v2401_v50  ;;  %2785 = vst [vmem:[%s5906_s3 + $0x428] sm:$0xff] %v2529_v51  ;;  %v2400_v56 = vmax.f32 %v1138_v52, 0.0  ;;  %v2528_v57 = vmax.f32 %v1778_v53, 0.0  ;;  %v1153_v58 = vadd.f32 %v3440_v54, %v4625_v5  ;;  %v1793_v59 = vadd.f32 %v3632_v55, %v4625_v5  ;;  %3585 = vmatprep.mubr.msk.f32.mxu0 %vm278_vm1, %v118_v48  ;;  %v254_v50 = vld [vmem:[%s5904_s0 + $0x780] sm:$0xff] }
  0xd3   :  { %3777 = vmatprep.mubr.msk.f32.mxu1 %vm278_vm1, %v246_v49  ;;  %v1147_v62 = vpop.f32.mrf.mxu0  ;;  %v1787_v63 = vpop.f32.mrf.mxu1  ;;  %v126_v49 = vld [vmem:[%s5904_s0 + $0x380] sm:$0xff] }
  0xd4   :  { %2656 = vst [vmem:[%s5906_s3 + $0x20] sm:$0xff] %v2400_v56  ;;  %2784 = vst [vmem:[%s5906_s3 + $0x420] sm:$0xff] %v2528_v57  ;;  %v2403_v2 = vmax.f32 %v1153_v58, 0.0  ;;  %v2531_v3 = vmax.f32 %v1793_v59, 0.0  ;;  %v1148_v4 = vadd.f32 %v4625_v5, %v1147_v62  ;;  %v1788_v6 = vadd.f32 %v4625_v5, %v1787_v63  ;;  %v255_v62 = vld [vmem:[%s5904_s0 + $0x788] sm:$0xff] }
  0xd5   :  { %v3443_v7 = vpop.f32.mrf.mxu0  ;;  %3586 = vmatmul.mubr.msk.f32.gmra.mxu0 %vm278_vm1, %v119_v60  ;;  %v3635_v8 = vpop.f32.mrf.mxu1  ;;  %3778 = vmatmul.mubr.msk.f32.gmra.mxu1 %vm278_vm1, %v247_v61  ;;  %v127_v61 = vld [vmem:[%s5904_s0 + $0x388] sm:$0xff] }
  0xd6   :  { %2659 = vst [vmem:[%s5906_s3 + $0x38] sm:$0xff] %v2403_v2  ;;  %2787 = vst [vmem:[%s5906_s3 + $0x438] sm:$0xff] %v2531_v3  ;;  %v2402_v9 = vmax.f32 %v1148_v4, 0.0  ;;  %v2530_v10 = vmax.f32 %v1788_v6, 0.0  ;;  %v1163_v11 = vadd.f32 %v3443_v7, %v4625_v5  ;;  %v1803_v12 = vadd.f32 %v3635_v8, %v4625_v5  ;;  %3588 = vmatprep.mubr.msk.f32.mxu0 %vm278_vm1, %v120_v0  ;;  %v256_v2 = vld [vmem:[%s5904_s0 + $0x790] sm:$0xff] }
  0xd7   :  { %3780 = vmatprep.mubr.msk.f32.mxu1 %vm278_vm1, %v248_v1  ;;  %v1157_v15 = vpop.f32.mrf.mxu0  ;;  %v1797_v16 = vpop.f32.mrf.mxu1  ;;  %v128_v1 = vld [vmem:[%s5904_s0 + $0x390] sm:$0xff] }
  0xd8   :  { %2658 = vst [vmem:[%s5906_s3 + $0x30] sm:$0xff] %v2402_v9  ;;  %2786 = vst [vmem:[%s5906_s3 + $0x430] sm:$0xff] %v2530_v10  ;;  %v2405_v19 = vmax.f32 %v1163_v11, 0.0  ;;  %v2533_v20 = vmax.f32 %v1803_v12, 0.0  ;;  %v1158_v21 = vadd.f32 %v4625_v5, %v1157_v15  ;;  %v1798_v22 = vadd.f32 %v4625_v5, %v1797_v16  ;;  %v257_v15 = vld [vmem:[%s5904_s0 + $0x798] sm:$0xff] }
  0xd9   :  { %v3446_v23 = vpop.f32.mrf.mxu0  ;;  %3589 = vmatmul.mubr.msk.f32.gmra.mxu0 %vm278_vm1, %v121_v13  ;;  %v3638_v24 = vpop.f32.mrf.mxu1  ;;  %3781 = vmatmul.mubr.msk.f32.gmra.mxu1 %vm278_vm1, %v249_v14  ;;  %v129_v14 = vld [vmem:[%s5904_s0 + $0x398] sm:$0xff] }
  0xda   :  { %2661 = vst [vmem:[%s5906_s3 + $0x48] sm:$0xff] %v2405_v19  ;;  %2789 = vst [vmem:[%s5906_s3 + $0x448] sm:$0xff] %v2533_v20  ;;  %v2404_v25 = vmax.f32 %v1158_v21, 0.0  ;;  %v2532_v26 = vmax.f32 %v1798_v22, 0.0  ;;  %v1173_v27 = vadd.f32 %v3446_v23, %v4625_v5  ;;  %v1813_v28 = vadd.f32 %v3638_v24, %v4625_v5  ;;  %3591 = vmatprep.mubr.msk.f32.mxu0 %vm278_vm1, %v122_v17  ;;  %v258_v19 = vld [vmem:[%s5904_s0 + $0x7a0] sm:$0xff] }
  0xdb   :  { %3783 = vmatprep.mubr.msk.f32.mxu1 %vm278_vm1, %v250_v18  ;;  %v1167_v31 = vpop.f32.mrf.mxu0  ;;  %v1807_v32 = vpop.f32.mrf.mxu1  ;;  %v130_v18 = vld [vmem:[%s5904_s0 + $0x3a0] sm:$0xff] }
  0xdc   :  { %2660 = vst [vmem:[%s5906_s3 + $0x40] sm:$0xff] %v2404_v25  ;;  %2788 = vst [vmem:[%s5906_s3 + $0x440] sm:$0xff] %v2532_v26  ;;  %v2407_v35 = vmax.f32 %v1173_v27, 0.0  ;;  %v2535_v36 = vmax.f32 %v1813_v28, 0.0  ;;  %v1168_v37 = vadd.f32 %v4625_v5, %v1167_v31  ;;  %v1808_v38 = vadd.f32 %v4625_v5, %v1807_v32  ;;  %v259_v31 = vld [vmem:[%s5904_s0 + $0x7a8] sm:$0xff] }
  0xdd   :  { %v3449_v39 = vpop.f32.mrf.mxu0  ;;  %3592 = vmatmul.mubr.msk.f32.gmra.mxu0 %vm278_vm1, %v123_v29  ;;  %v3641_v40 = vpop.f32.mrf.mxu1  ;;  %3784 = vmatmul.mubr.msk.f32.gmra.mxu1 %vm278_vm1, %v251_v30  ;;  %v131_v30 = vld [vmem:[%s5904_s0 + $0x3a8] sm:$0xff] }
  0xde   :  { %2663 = vst [vmem:[%s5906_s3 + $0x58] sm:$0xff] %v2407_v35  ;;  %2791 = vst [vmem:[%s5906_s3 + $0x458] sm:$0xff] %v2535_v36  ;;  %v2406_v41 = vmax.f32 %v1168_v37, 0.0  ;;  %v2534_v42 = vmax.f32 %v1808_v38, 0.0  ;;  %v1183_v43 = vadd.f32 %v3449_v39, %v4625_v5  ;;  %v1823_v44 = vadd.f32 %v3641_v40, %v4625_v5  ;;  %3594 = vmatprep.mubr.msk.f32.mxu0 %vm278_vm1, %v124_v33  ;;  %v260_v35 = vld [vmem:[%s5904_s0 + $0x7b0] sm:$0xff] }
  0xdf   :  { %3786 = vmatprep.mubr.msk.f32.mxu1 %vm278_vm1, %v252_v34  ;;  %v1177_v47 = vpop.f32.mrf.mxu0  ;;  %v1817_v48 = vpop.f32.mrf.mxu1  ;;  %v132_v34 = vld [vmem:[%s5904_s0 + $0x3b0] sm:$0xff] }
  0xe0   :  { %2662 = vst [vmem:[%s5906_s3 + $0x50] sm:$0xff] %v2406_v41  ;;  %2790 = vst [vmem:[%s5906_s3 + $0x450] sm:$0xff] %v2534_v42  ;;  %v2409_v51 = vmax.f32 %v1183_v43, 0.0  ;;  %v2537_v52 = vmax.f32 %v1823_v44, 0.0  ;;  %v1178_v53 = vadd.f32 %v4625_v5, %v1177_v47  ;;  %v1818_v54 = vadd.f32 %v4625_v5, %v1817_v48  ;;  %v261_v47 = vld [vmem:[%s5904_s0 + $0x7b8] sm:$0xff] }
  0xe1   :  { %v3452_v55 = vpop.f32.mrf.mxu0  ;;  %3595 = vmatmul.mubr.msk.f32.gmra.mxu0 %vm278_vm1, %v125_v45  ;;  %v3644_v56 = vpop.f32.mrf.mxu1  ;;  %3787 = vmatmul.mubr.msk.f32.gmra.mxu1 %vm278_vm1, %v253_v46  ;;  %v133_v46 = vld [vmem:[%s5904_s0 + $0x3b8] sm:$0xff] }
  0xe2   :  { %2665 = vst [vmem:[%s5906_s3 + $0x68] sm:$0xff] %v2409_v51  ;;  %2793 = vst [vmem:[%s5906_s3 + $0x468] sm:$0xff] %v2537_v52  ;;  %v2408_v57 = vmax.f32 %v1178_v53, 0.0  ;;  %v2536_v58 = vmax.f32 %v1818_v54, 0.0  ;;  %v1193_v59 = vadd.f32 %v3452_v55, %v4625_v5  ;;  %v1833_v60 = vadd.f32 %v3644_v56, %v4625_v5  ;;  %3597 = vmatprep.mubr.msk.f32.mxu0 %vm278_vm1, %v126_v49  ;;  %v262_v51 = vld [vmem:[%s5904_s0 + $0x7c0] sm:$0xff] }
  0xe3   :  { %3789 = vmatprep.mubr.msk.f32.mxu1 %vm278_vm1, %v254_v50  ;;  %v1187_v63 = vpop.f32.mrf.mxu0  ;;  %v1827_v0 = vpop.f32.mrf.mxu1  ;;  %v134_v50 = vld [vmem:[%s5904_s0 + $0x3c0] sm:$0xff] }
  0xe4   :  { %2664 = vst [vmem:[%s5906_s3 + $0x60] sm:$0xff] %v2408_v57  ;;  %2792 = vst [vmem:[%s5906_s3 + $0x460] sm:$0xff] %v2536_v58  ;;  %v2411_v3 = vmax.f32 %v1193_v59, 0.0  ;;  %v2539_v4 = vmax.f32 %v1833_v60, 0.0  ;;  %v1188_v6 = vadd.f32 %v4625_v5, %v1187_v63  ;;  %v1828_v7 = vadd.f32 %v4625_v5, %v1827_v0  ;;  %v263_v63 = vld [vmem:[%s5904_s0 + $0x7c8] sm:$0xff] }
  0xe5   :  { %v3455_v8 = vpop.f32.mrf.mxu0  ;;  %3598 = vmatmul.mubr.msk.f32.gmra.mxu0 %vm278_vm1, %v127_v61  ;;  %v3647_v9 = vpop.f32.mrf.mxu1  ;;  %3790 = vmatmul.mubr.msk.f32.gmra.mxu1 %vm278_vm1, %v255_v62  ;;  %v135_v62 = vld [vmem:[%s5904_s0 + $0x3c8] sm:$0xff] }
  0xe6   :  { %2667 = vst [vmem:[%s5906_s3 + $0x78] sm:$0xff] %v2411_v3  ;;  %2795 = vst [vmem:[%s5906_s3 + $0x478] sm:$0xff] %v2539_v4  ;;  %v2410_v10 = vmax.f32 %v1188_v6, 0.0  ;;  %v2538_v11 = vmax.f32 %v1828_v7, 0.0  ;;  %v1203_v12 = vadd.f32 %v3455_v8, %v4625_v5  ;;  %v1843_v13 = vadd.f32 %v3647_v9, %v4625_v5  ;;  %3600 = vmatprep.mubr.msk.f32.mxu0 %vm278_vm1, %v128_v1  ;;  %v264_v3 = vld [vmem:[%s5904_s0 + $0x7d0] sm:$0xff] }
  0xe7   :  { %3792 = vmatprep.mubr.msk.f32.mxu1 %vm278_vm1, %v256_v2  ;;  %v1197_v16 = vpop.f32.mrf.mxu0  ;;  %v1837_v17 = vpop.f32.mrf.mxu1  ;;  %v136_v2 = vld [vmem:[%s5904_s0 + $0x3d0] sm:$0xff] }
  0xe8   :  { %2666 = vst [vmem:[%s5906_s3 + $0x70] sm:$0xff] %v2410_v10  ;;  %2794 = vst [vmem:[%s5906_s3 + $0x470] sm:$0xff] %v2538_v11  ;;  %v2413_v20 = vmax.f32 %v1203_v12, 0.0  ;;  %v2541_v21 = vmax.f32 %v1843_v13, 0.0  ;;  %v1198_v22 = vadd.f32 %v4625_v5, %v1197_v16  ;;  %v1838_v23 = vadd.f32 %v4625_v5, %v1837_v17  ;;  %v265_v16 = vld [vmem:[%s5904_s0 + $0x7d8] sm:$0xff] }
  0xe9   :  { %v3458_v24 = vpop.f32.mrf.mxu0  ;;  %3601 = vmatmul.mubr.msk.f32.gmra.mxu0 %vm278_vm1, %v129_v14  ;;  %v3650_v25 = vpop.f32.mrf.mxu1  ;;  %3793 = vmatmul.mubr.msk.f32.gmra.mxu1 %vm278_vm1, %v257_v15  ;;  %v137_v15 = vld [vmem:[%s5904_s0 + $0x3d8] sm:$0xff] }
  0xea   :  { %2669 = vst [vmem:[%s5906_s3 + $0x88] sm:$0xff] %v2413_v20  ;;  %2797 = vst [vmem:[%s5906_s3 + $0x488] sm:$0xff] %v2541_v21  ;;  %v2412_v26 = vmax.f32 %v1198_v22, 0.0  ;;  %v2540_v27 = vmax.f32 %v1838_v23, 0.0  ;;  %v1213_v28 = vadd.f32 %v3458_v24, %v4625_v5  ;;  %v1853_v29 = vadd.f32 %v3650_v25, %v4625_v5  ;;  %3603 = vmatprep.mubr.msk.f32.mxu0 %vm278_vm1, %v130_v18  ;;  %v266_v20 = vld [vmem:[%s5904_s0 + $0x7e0] sm:$0xff] }
  0xeb   :  { %3795 = vmatprep.mubr.msk.f32.mxu1 %vm278_vm1, %v258_v19  ;;  %v1207_v32 = vpop.f32.mrf.mxu0  ;;  %v1847_v33 = vpop.f32.mrf.mxu1  ;;  %v138_v19 = vld [vmem:[%s5904_s0 + $0x3e0] sm:$0xff] }
  0xec   :  { %2668 = vst [vmem:[%s5906_s3 + $0x80] sm:$0xff] %v2412_v26  ;;  %2796 = vst [vmem:[%s5906_s3 + $0x480] sm:$0xff] %v2540_v27  ;;  %v2415_v36 = vmax.f32 %v1213_v28, 0.0  ;;  %v2543_v37 = vmax.f32 %v1853_v29, 0.0  ;;  %v1208_v38 = vadd.f32 %v4625_v5, %v1207_v32  ;;  %v1848_v39 = vadd.f32 %v4625_v5, %v1847_v33  ;;  %v267_v32 = vld [vmem:[%s5904_s0 + $0x7e8] sm:$0xff] }
  0xed   :  { %v3461_v40 = vpop.f32.mrf.mxu0  ;;  %3604 = vmatmul.mubr.msk.f32.gmra.mxu0 %vm278_vm1, %v131_v30  ;;  %v3653_v41 = vpop.f32.mrf.mxu1  ;;  %3796 = vmatmul.mubr.msk.f32.gmra.mxu1 %vm278_vm1, %v259_v31  ;;  %v139_v31 = vld [vmem:[%s5904_s0 + $0x3e8] sm:$0xff] }
  0xee   :  { %2671 = vst [vmem:[%s5906_s3 + $0x98] sm:$0xff] %v2415_v36  ;;  %2799 = vst [vmem:[%s5906_s3 + $0x498] sm:$0xff] %v2543_v37  ;;  %v2414_v42 = vmax.f32 %v1208_v38, 0.0  ;;  %v2542_v43 = vmax.f32 %v1848_v39, 0.0  ;;  %v1223_v44 = vadd.f32 %v3461_v40, %v4625_v5  ;;  %v1863_v45 = vadd.f32 %v3653_v41, %v4625_v5  ;;  %3606 = vmatprep.mubr.msk.f32.mxu0 %vm278_vm1, %v132_v34  ;;  %v268_v36 = vld [vmem:[%s5904_s0 + $0x7f0] sm:$0xff] }
  0xef   :  { %3798 = vmatprep.mubr.msk.f32.mxu1 %vm278_vm1, %v260_v35  ;;  %v1217_v48 = vpop.f32.mrf.mxu0  ;;  %v1857_v49 = vpop.f32.mrf.mxu1  ;;  %v140_v35 = vld [vmem:[%s5904_s0 + $0x3f0] sm:$0xff] }
  0xf0   :  { %2670 = vst [vmem:[%s5906_s3 + $0x90] sm:$0xff] %v2414_v42  ;;  %2798 = vst [vmem:[%s5906_s3 + $0x490] sm:$0xff] %v2542_v43  ;;  %v2417_v52 = vmax.f32 %v1223_v44, 0.0  ;;  %v2545_v53 = vmax.f32 %v1863_v45, 0.0  ;;  %v1218_v54 = vadd.f32 %v4625_v5, %v1217_v48  ;;  %v1858_v55 = vadd.f32 %v4625_v5, %v1857_v49  ;;  %v269_v48 = vld [vmem:[%s5904_s0 + $0x7f8] sm:$0xff] }
  0xf1   :  { %v3464_v56 = vpop.f32.mrf.mxu0  ;;  %3607 = vmatmul.mubr.msk.f32.gmra.mxu0 %vm278_vm1, %v133_v46  ;;  %v3656_v57 = vpop.f32.mrf.mxu1  ;;  %3799 = vmatmul.mubr.msk.f32.gmra.mxu1 %vm278_vm1, %v261_v47  ;;  %v141_v47 = vld [vmem:[%s5904_s0 + $0x3f8] sm:$0xff] }
  0xf2   :  { %2673 = vst [vmem:[%s5906_s3 + $0xa8] sm:$0xff] %v2417_v52  ;;  %2801 = vst [vmem:[%s5906_s3 + $0x4a8] sm:$0xff] %v2545_v53  ;;  %v2416_v58 = vmax.f32 %v1218_v54, 0.0  ;;  %v2544_v59 = vmax.f32 %v1858_v55, 0.0  ;;  %v1233_v60 = vadd.f32 %v3464_v56, %v4625_v5  ;;  %v1873_v61 = vadd.f32 %v3656_v57, %v4625_v5  ;;  %3609 = vmatprep.mubr.msk.f32.mxu0 %vm278_vm1, %v134_v50 }
  0xf3   :  { %3801 = vmatprep.mubr.msk.f32.mxu1 %vm278_vm1, %v262_v51  ;;  %v1227_v0 = vpop.f32.mrf.mxu0  ;;  %v1867_v1 = vpop.f32.mrf.mxu1 }
  0xf4   :  { %2672 = vst [vmem:[%s5906_s3 + $0xa0] sm:$0xff] %v2416_v58  ;;  %2800 = vst [vmem:[%s5906_s3 + $0x4a0] sm:$0xff] %v2544_v59  ;;  %v2419_v4 = vmax.f32 %v1233_v60, 0.0  ;;  %v2547_v6 = vmax.f32 %v1873_v61, 0.0  ;;  %v1228_v7 = vadd.f32 %v4625_v5, %v1227_v0  ;;  %v1868_v8 = vadd.f32 %v4625_v5, %v1867_v1 }
  0xf5   :  { %v3467_v9 = vpop.f32.mrf.mxu0  ;;  %3610 = vmatmul.mubr.msk.f32.gmra.mxu0 %vm278_vm1, %v135_v62  ;;  %v3659_v10 = vpop.f32.mrf.mxu1  ;;  %3802 = vmatmul.mubr.msk.f32.gmra.mxu1 %vm278_vm1, %v263_v63 }
  0xf6   :  { %2675 = vst [vmem:[%s5906_s3 + $0xb8] sm:$0xff] %v2419_v4  ;;  %2803 = vst [vmem:[%s5906_s3 + $0x4b8] sm:$0xff] %v2547_v6  ;;  %v2418_v11 = vmax.f32 %v1228_v7, 0.0  ;;  %v2546_v12 = vmax.f32 %v1868_v8, 0.0  ;;  %v1243_v13 = vadd.f32 %v3467_v9, %v4625_v5  ;;  %v1883_v14 = vadd.f32 %v3659_v10, %v4625_v5  ;;  %3612 = vmatprep.mubr.msk.f32.mxu0 %vm278_vm1, %v136_v2 }
  0xf7   :  { %3804 = vmatprep.mubr.msk.f32.mxu1 %vm278_vm1, %v264_v3  ;;  %v1237_v17 = vpop.f32.mrf.mxu0  ;;  %v1877_v18 = vpop.f32.mrf.mxu1 }
  0xf8   :  { %2674 = vst [vmem:[%s5906_s3 + $0xb0] sm:$0xff] %v2418_v11  ;;  %2802 = vst [vmem:[%s5906_s3 + $0x4b0] sm:$0xff] %v2546_v12  ;;  %v2421_v21 = vmax.f32 %v1243_v13, 0.0  ;;  %v2549_v22 = vmax.f32 %v1883_v14, 0.0  ;;  %v1238_v23 = vadd.f32 %v4625_v5, %v1237_v17  ;;  %v1878_v24 = vadd.f32 %v4625_v5, %v1877_v18 }
  0xf9   :  { %v3470_v25 = vpop.f32.mrf.mxu0  ;;  %3613 = vmatmul.mubr.msk.f32.gmra.mxu0 %vm278_vm1, %v137_v15  ;;  %v3662_v26 = vpop.f32.mrf.mxu1  ;;  %3805 = vmatmul.mubr.msk.f32.gmra.mxu1 %vm278_vm1, %v265_v16 }
  0xfa   :  { %2677 = vst [vmem:[%s5906_s3 + $0xc8] sm:$0xff] %v2421_v21  ;;  %2805 = vst [vmem:[%s5906_s3 + $0x4c8] sm:$0xff] %v2549_v22  ;;  %v2420_v27 = vmax.f32 %v1238_v23, 0.0  ;;  %v2548_v28 = vmax.f32 %v1878_v24, 0.0  ;;  %v1253_v29 = vadd.f32 %v3470_v25, %v4625_v5  ;;  %v1893_v30 = vadd.f32 %v3662_v26, %v4625_v5  ;;  %3615 = vmatprep.mubr.msk.f32.mxu0 %vm278_vm1, %v138_v19 }
  0xfb   :  { %3807 = vmatprep.mubr.msk.f32.mxu1 %vm278_vm1, %v266_v20  ;;  %v1247_v33 = vpop.f32.mrf.mxu0  ;;  %v1887_v34 = vpop.f32.mrf.mxu1 }
  0xfc   :  { %2676 = vst [vmem:[%s5906_s3 + $0xc0] sm:$0xff] %v2420_v27  ;;  %2804 = vst [vmem:[%s5906_s3 + $0x4c0] sm:$0xff] %v2548_v28  ;;  %v2423_v37 = vmax.f32 %v1253_v29, 0.0  ;;  %v2551_v38 = vmax.f32 %v1893_v30, 0.0  ;;  %v1248_v39 = vadd.f32 %v4625_v5, %v1247_v33  ;;  %v1888_v40 = vadd.f32 %v4625_v5, %v1887_v34 }
  0xfd   :  { %v3473_v41 = vpop.f32.mrf.mxu0  ;;  %3616 = vmatmul.mubr.msk.f32.gmra.mxu0 %vm278_vm1, %v139_v31  ;;  %v3665_v42 = vpop.f32.mrf.mxu1  ;;  %3808 = vmatmul.mubr.msk.f32.gmra.mxu1 %vm278_vm1, %v267_v32 }
  0xfe   :  { %2679 = vst [vmem:[%s5906_s3 + $0xd8] sm:$0xff] %v2423_v37  ;;  %2807 = vst [vmem:[%s5906_s3 + $0x4d8] sm:$0xff] %v2551_v38  ;;  %v2422_v43 = vmax.f32 %v1248_v39, 0.0  ;;  %v2550_v44 = vmax.f32 %v1888_v40, 0.0  ;;  %v1263_v45 = vadd.f32 %v3473_v41, %v4625_v5  ;;  %v1903_v46 = vadd.f32 %v3665_v42, %v4625_v5  ;;  %3618 = vmatprep.mubr.msk.f32.mxu0 %vm278_vm1, %v140_v35 }
  0xff   :  { %3810 = vmatprep.mubr.msk.f32.mxu1 %vm278_vm1, %v268_v36  ;;  %v1257_v49 = vpop.f32.mrf.mxu0  ;;  %v1897_v50 = vpop.f32.mrf.mxu1 }
 0x100   :  { %2678 = vst [vmem:[%s5906_s3 + $0xd0] sm:$0xff] %v2422_v43  ;;  %2806 = vst [vmem:[%s5906_s3 + $0x4d0] sm:$0xff] %v2550_v44  ;;  %v2425_v51 = vmax.f32 %v1263_v45, 0.0  ;;  %v2553_v52 = vmax.f32 %v1903_v46, 0.0  ;;  %v1258_v53 = vadd.f32 %v4625_v5, %v1257_v49  ;;  %v1898_v54 = vadd.f32 %v4625_v5, %v1897_v50 }
 0x101   :  { %v3476_v55 = vpop.f32.mrf.mxu0  ;;  %3619 = vmatmul.mubr.msk.f32.gmra.mxu0 %vm278_vm1, %v141_v47  ;;  %v3668_v56 = vpop.f32.mrf.mxu1  ;;  %3811 = vmatmul.mubr.msk.f32.gmra.mxu1 %vm278_vm1, %v269_v48 }
 0x102   :  { %2681 = vst [vmem:[%s5906_s3 + $0xe8] sm:$0xff] %v2425_v51  ;;  %2809 = vst [vmem:[%s5906_s3 + $0x4e8] sm:$0xff] %v2553_v52  ;;  %v2424_v57 = vmax.f32 %v1258_v53, 0.0  ;;  %v2552_v58 = vmax.f32 %v1898_v54, 0.0  ;;  %v1273_v59 = vadd.f32 %v3476_v55, %v4625_v5  ;;  %v1913_v60 = vadd.f32 %v3668_v56, %v4625_v5 }
 0x103   :  { %v1267_v61 = vpop.f32.mrf.mxu0  ;;  %v1907_v62 = vpop.f32.mrf.mxu1 }
 0x104   :  { %2680 = vst [vmem:[%s5906_s3 + $0xe0] sm:$0xff] %v2424_v57  ;;  %2808 = vst [vmem:[%s5906_s3 + $0x4e0] sm:$0xff] %v2552_v58  ;;  %v2427_v63 = vmax.f32 %v1273_v59, 0.0  ;;  %v2555_v0 = vmax.f32 %v1913_v60, 0.0  ;;  %v1268_v1 = vadd.f32 %v4625_v5, %v1267_v61  ;;  %v1908_v2 = vadd.f32 %v4625_v5, %v1907_v62 }
 0x105   :  { %v3479_v3 = vpop.f32.mrf.mxu0  ;;  %v3671_v4 = vpop.f32.mrf.mxu1 }
 0x106   :  { %2683 = vst [vmem:[%s5906_s3 + $0xf8] sm:$0xff] %v2427_v63  ;;  %2811 = vst [vmem:[%s5906_s3 + $0x4f8] sm:$0xff] %v2555_v0  ;;  %v2426_v6 = vmax.f32 %v1268_v1, 0.0  ;;  %v2554_v7 = vmax.f32 %v1908_v2, 0.0  ;;  %v1283_v8 = vadd.f32 %v3479_v3, %v4625_v5  ;;  %v1923_v9 = vadd.f32 %v3671_v4, %v4625_v5 }
 0x107   :  { %v1277_v10 = vpop.f32.mrf.mxu0  ;;  %v1917_v11 = vpop.f32.mrf.mxu1 }
 0x108   :  { %2682 = vst [vmem:[%s5906_s3 + $0xf0] sm:$0xff] %v2426_v6  ;;  %2810 = vst [vmem:[%s5906_s3 + $0x4f0] sm:$0xff] %v2554_v7  ;;  %v2429_v12 = vmax.f32 %v1283_v8, 0.0  ;;  %v2557_v13 = vmax.f32 %v1923_v9, 0.0  ;;  %v1278_v14 = vadd.f32 %v4625_v5, %v1277_v10  ;;  %v1918_v15 = vadd.f32 %v4625_v5, %v1917_v11 }
 0x109   :  { %v3482_v16 = vpop.f32.mrf.mxu0  ;;  %v3674_v17 = vpop.f32.mrf.mxu1 }
 0x10a   :  { %2685 = vst [vmem:[%s5906_s3 + $0x108] sm:$0xff] %v2429_v12  ;;  %2813 = vst [vmem:[%s5906_s3 + $0x508] sm:$0xff] %v2557_v13  ;;  %v2428_v18 = vmax.f32 %v1278_v14, 0.0  ;;  %v2556_v19 = vmax.f32 %v1918_v15, 0.0  ;;  %v1293_v20 = vadd.f32 %v3482_v16, %v4625_v5  ;;  %v1933_v21 = vadd.f32 %v3674_v17, %v4625_v5 }
 0x10b   :  { %v1287_v22 = vpop.f32.mrf.mxu0  ;;  %v1927_v23 = vpop.f32.mrf.mxu1 }
 0x10c   :  { %2684 = vst [vmem:[%s5906_s3 + $0x100] sm:$0xff] %v2428_v18  ;;  %2812 = vst [vmem:[%s5906_s3 + $0x500] sm:$0xff] %v2556_v19  ;;  %v2431_v24 = vmax.f32 %v1293_v20, 0.0  ;;  %v2559_v25 = vmax.f32 %v1933_v21, 0.0  ;;  %v1288_v26 = vadd.f32 %v4625_v5, %v1287_v22  ;;  %v1928_v27 = vadd.f32 %v4625_v5, %v1927_v23 }
 0x10d   :  { %v3485_v28 = vpop.f32.mrf.mxu0  ;;  %v3677_v29 = vpop.f32.mrf.mxu1 }
 0x10e   :  { %2687 = vst [vmem:[%s5906_s3 + $0x118] sm:$0xff] %v2431_v24  ;;  %2815 = vst [vmem:[%s5906_s3 + $0x518] sm:$0xff] %v2559_v25  ;;  %v2430_v30 = vmax.f32 %v1288_v26, 0.0  ;;  %v2558_v31 = vmax.f32 %v1928_v27, 0.0  ;;  %v1303_v32 = vadd.f32 %v3485_v28, %v4625_v5  ;;  %v1943_v33 = vadd.f32 %v3677_v29, %v4625_v5 }
 0x10f   :  { %v1297_v34 = vpop.f32.mrf.mxu0  ;;  %v1937_v35 = vpop.f32.mrf.mxu1 }
 0x110   :  { %2686 = vst [vmem:[%s5906_s3 + $0x110] sm:$0xff] %v2430_v30  ;;  %2814 = vst [vmem:[%s5906_s3 + $0x510] sm:$0xff] %v2558_v31  ;;  %v2433_v36 = vmax.f32 %v1303_v32, 0.0  ;;  %v2561_v37 = vmax.f32 %v1943_v33, 0.0  ;;  %v1298_v38 = vadd.f32 %v4625_v5, %v1297_v34  ;;  %v1938_v39 = vadd.f32 %v4625_v5, %v1937_v35 }
 0x111   :  { %v3488_v40 = vpop.f32.mrf.mxu0  ;;  %v3680_v41 = vpop.f32.mrf.mxu1 }
 0x112   :  { %2689 = vst [vmem:[%s5906_s3 + $0x128] sm:$0xff] %v2433_v36  ;;  %2817 = vst [vmem:[%s5906_s3 + $0x528] sm:$0xff] %v2561_v37  ;;  %v2432_v42 = vmax.f32 %v1298_v38, 0.0  ;;  %v2560_v43 = vmax.f32 %v1938_v39, 0.0  ;;  %v1313_v44 = vadd.f32 %v3488_v40, %v4625_v5  ;;  %v1953_v45 = vadd.f32 %v3680_v41, %v4625_v5 }
 0x113   :  { %v1307_v46 = vpop.f32.mrf.mxu0  ;;  %v1947_v47 = vpop.f32.mrf.mxu1 }
 0x114   :  { %2688 = vst [vmem:[%s5906_s3 + $0x120] sm:$0xff] %v2432_v42  ;;  %2816 = vst [vmem:[%s5906_s3 + $0x520] sm:$0xff] %v2560_v43  ;;  %v2435_v48 = vmax.f32 %v1313_v44, 0.0  ;;  %v2563_v49 = vmax.f32 %v1953_v45, 0.0  ;;  %v1308_v50 = vadd.f32 %v4625_v5, %v1307_v46  ;;  %v1948_v51 = vadd.f32 %v4625_v5, %v1947_v47  ;;  %v5258_v47 = vld [vmem:[%s5905_s2] ss:$0 sm:$0xff] }
 0x115   :  { %v3491_v52 = vpop.f32.mrf.mxu0  ;;  %v3683_v53 = vpop.f32.mrf.mxu1 }
 0x116   :  { %2691 = vst [vmem:[%s5906_s3 + $0x138] sm:$0xff] %v2435_v48  ;;  %2819 = vst [vmem:[%s5906_s3 + $0x538] sm:$0xff] %v2563_v49  ;;  %v2434_v54 = vmax.f32 %v1308_v50, 0.0  ;;  %v2562_v55 = vmax.f32 %v1948_v51, 0.0  ;;  %v1323_v56 = vadd.f32 %v3491_v52, %v4625_v5  ;;  %v1963_v57 = vadd.f32 %v3683_v53, %v4625_v5 }
 0x117   :  { %v1317_v58 = vpop.f32.mrf.mxu0  ;;  %v1957_v59 = vpop.f32.mrf.mxu1 }
 0x118   :  { %2690 = vst [vmem:[%s5906_s3 + $0x130] sm:$0xff] %v2434_v54  ;;  %2818 = vst [vmem:[%s5906_s3 + $0x530] sm:$0xff] %v2562_v55  ;;  %v2437_v60 = vmax.f32 %v1323_v56, 0.0  ;;  %v2565_v61 = vmax.f32 %v1963_v57, 0.0  ;;  %v1318_v62 = vadd.f32 %v4625_v5, %v1317_v58  ;;  %v1958_v63 = vadd.f32 %v4625_v5, %v1957_v59 }
 0x119   :  { %v3494_v0 = vpop.f32.mrf.mxu0  ;;  %v3686_v1 = vpop.f32.mrf.mxu1 }
 0x11a   :  { %2693 = vst [vmem:[%s5906_s3 + $0x148] sm:$0xff] %v2437_v60  ;;  %2821 = vst [vmem:[%s5906_s3 + $0x548] sm:$0xff] %v2565_v61  ;;  %v2436_v2 = vmax.f32 %v1318_v62, 0.0  ;;  %v2564_v3 = vmax.f32 %v1958_v63, 0.0  ;;  %v1333_v4 = vadd.f32 %v3494_v0, %v4625_v5  ;;  %v1973_v6 = vadd.f32 %v3686_v1, %v4625_v5 }
 0x11b   :  { %v1327_v7 = vpop.f32.mrf.mxu0  ;;  %v1967_v8 = vpop.f32.mrf.mxu1 }
 0x11c   :  { %2692 = vst [vmem:[%s5906_s3 + $0x140] sm:$0xff] %v2436_v2  ;;  %2820 = vst [vmem:[%s5906_s3 + $0x540] sm:$0xff] %v2564_v3  ;;  %v2439_v9 = vmax.f32 %v1333_v4, 0.0  ;;  %v2567_v10 = vmax.f32 %v1973_v6, 0.0  ;;  %v1328_v11 = vadd.f32 %v4625_v5, %v1327_v7  ;;  %v1968_v12 = vadd.f32 %v4625_v5, %v1967_v8 }
 0x11d   :  { %v3497_v13 = vpop.f32.mrf.mxu0  ;;  %v3689_v14 = vpop.f32.mrf.mxu1 }
 0x11e   :  { %2695 = vst [vmem:[%s5906_s3 + $0x158] sm:$0xff] %v2439_v9  ;;  %2823 = vst [vmem:[%s5906_s3 + $0x558] sm:$0xff] %v2567_v10  ;;  %v2438_v15 = vmax.f32 %v1328_v11, 0.0  ;;  %v2566_v16 = vmax.f32 %v1968_v12, 0.0  ;;  %v1343_v17 = vadd.f32 %v3497_v13, %v4625_v5  ;;  %v1983_v18 = vadd.f32 %v3689_v14, %v4625_v5 }
 0x11f   :  { %v1337_v19 = vpop.f32.mrf.mxu0  ;;  %v1977_v20 = vpop.f32.mrf.mxu1 }
 0x120   :  { %2694 = vst [vmem:[%s5906_s3 + $0x150] sm:$0xff] %v2438_v15  ;;  %2822 = vst [vmem:[%s5906_s3 + $0x550] sm:$0xff] %v2566_v16  ;;  %v2441_v21 = vmax.f32 %v1343_v17, 0.0  ;;  %v2569_v22 = vmax.f32 %v1983_v18, 0.0  ;;  %v1338_v23 = vadd.f32 %v4625_v5, %v1337_v19  ;;  %v1978_v24 = vadd.f32 %v4625_v5, %v1977_v20 }
 0x121   :  { %v3500_v25 = vpop.f32.mrf.mxu0  ;;  %v3692_v26 = vpop.f32.mrf.mxu1 }
 0x122   :  { %2697 = vst [vmem:[%s5906_s3 + $0x168] sm:$0xff] %v2441_v21  ;;  %2825 = vst [vmem:[%s5906_s3 + $0x568] sm:$0xff] %v2569_v22  ;;  %v2440_v27 = vmax.f32 %v1338_v23, 0.0  ;;  %v2568_v28 = vmax.f32 %v1978_v24, 0.0  ;;  %v1353_v29 = vadd.f32 %v3500_v25, %v4625_v5  ;;  %v1993_v30 = vadd.f32 %v3692_v26, %v4625_v5 }
 0x123   :  { %v1347_v31 = vpop.f32.mrf.mxu0  ;;  %v1987_v32 = vpop.f32.mrf.mxu1 }
 0x124   :  { %2696 = vst [vmem:[%s5906_s3 + $0x160] sm:$0xff] %v2440_v27  ;;  %2824 = vst [vmem:[%s5906_s3 + $0x560] sm:$0xff] %v2568_v28  ;;  %v2443_v33 = vmax.f32 %v1353_v29, 0.0  ;;  %v2571_v34 = vmax.f32 %v1993_v30, 0.0  ;;  %v1348_v35 = vadd.f32 %v4625_v5, %v1347_v31  ;;  %v1988_v36 = vadd.f32 %v4625_v5, %v1987_v32 }
 0x125   :  { %v3503_v37 = vpop.f32.mrf.mxu0  ;;  %v3695_v38 = vpop.f32.mrf.mxu1 }
 0x126   :  { %2699 = vst [vmem:[%s5906_s3 + $0x178] sm:$0xff] %v2443_v33  ;;  %2827 = vst [vmem:[%s5906_s3 + $0x578] sm:$0xff] %v2571_v34  ;;  %v2442_v39 = vmax.f32 %v1348_v35, 0.0  ;;  %v2570_v40 = vmax.f32 %v1988_v36, 0.0  ;;  %v1363_v41 = vadd.f32 %v3503_v37, %v4625_v5  ;;  %v2003_v42 = vadd.f32 %v3695_v38, %v4625_v5 }
 0x127   :  { %v1357_v43 = vpop.f32.mrf.mxu0  ;;  %v1997_v44 = vpop.f32.mrf.mxu1 }
 0x128   :  { %2698 = vst [vmem:[%s5906_s3 + $0x170] sm:$0xff] %v2442_v39  ;;  %2826 = vst [vmem:[%s5906_s3 + $0x570] sm:$0xff] %v2570_v40  ;;  %v2445_v45 = vmax.f32 %v1363_v41, 0.0  ;;  %v2573_v46 = vmax.f32 %v2003_v42, 0.0  ;;  %v1358_v48 = vadd.f32 %v5258_v47, %v1357_v43  ;;  %v1998_v5 = vadd.f32 %v5258_v47, %v1997_v44 }
 0x129   :  { %v3506_v49 = vpop.f32.mrf.mxu0  ;;  %v3698_v50 = vpop.f32.mrf.mxu1 }
 0x12a   :  { %2701 = vst [vmem:[%s5906_s3 + $0x188] sm:$0xff] %v2445_v45  ;;  %2829 = vst [vmem:[%s5906_s3 + $0x588] sm:$0xff] %v2573_v46  ;;  %v2444_v51 = vmax.f32 %v1358_v48, 0.0  ;;  %v2572_v52 = vmax.f32 %v1998_v5, 0.0  ;;  %v1373_v53 = vadd.f32 %v5258_v47, %v3506_v49  ;;  %v2013_v54 = vadd.f32 %v5258_v47, %v3698_v50 }
 0x12b   :  { %v1367_v55 = vpop.f32.mrf.mxu0  ;;  %v2007_v56 = vpop.f32.mrf.mxu1 }
 0x12c   :  { %2700 = vst [vmem:[%s5906_s3 + $0x180] sm:$0xff] %v2444_v51  ;;  %2828 = vst [vmem:[%s5906_s3 + $0x580] sm:$0xff] %v2572_v52  ;;  %v2447_v57 = vmax.f32 %v1373_v53, 0.0  ;;  %v2575_v58 = vmax.f32 %v2013_v54, 0.0  ;;  %v1368_v59 = vadd.f32 %v5258_v47, %v1367_v55  ;;  %v2008_v60 = vadd.f32 %v5258_v47, %v2007_v56 }
 0x12d   :  { %v3509_v61 = vpop.f32.mrf.mxu0  ;;  %v3701_v62 = vpop.f32.mrf.mxu1 }
 0x12e   :  { %2703 = vst [vmem:[%s5906_s3 + $0x198] sm:$0xff] %v2447_v57  ;;  %2831 = vst [vmem:[%s5906_s3 + $0x598] sm:$0xff] %v2575_v58  ;;  %v2446_v63 = vmax.f32 %v1368_v59, 0.0  ;;  %v2574_v0 = vmax.f32 %v2008_v60, 0.0  ;;  %v1383_v1 = vadd.f32 %v5258_v47, %v3509_v61  ;;  %v2023_v2 = vadd.f32 %v5258_v47, %v3701_v62 }
 0x12f   :  { %v1377_v3 = vpop.f32.mrf.mxu0  ;;  %v2017_v4 = vpop.f32.mrf.mxu1 }
 0x130   :  { %2702 = vst [vmem:[%s5906_s3 + $0x190] sm:$0xff] %v2446_v63  ;;  %2830 = vst [vmem:[%s5906_s3 + $0x590] sm:$0xff] %v2574_v0  ;;  %v2449_v6 = vmax.f32 %v1383_v1, 0.0  ;;  %v2577_v7 = vmax.f32 %v2023_v2, 0.0  ;;  %v1378_v8 = vadd.f32 %v5258_v47, %v1377_v3  ;;  %v2018_v9 = vadd.f32 %v5258_v47, %v2017_v4 }
 0x131   :  { %v3512_v10 = vpop.f32.mrf.mxu0  ;;  %v3704_v11 = vpop.f32.mrf.mxu1 }
 0x132   :  { %2705 = vst [vmem:[%s5906_s3 + $0x1a8] sm:$0xff] %v2449_v6  ;;  %2833 = vst [vmem:[%s5906_s3 + $0x5a8] sm:$0xff] %v2577_v7  ;;  %v2448_v12 = vmax.f32 %v1378_v8, 0.0  ;;  %v2576_v13 = vmax.f32 %v2018_v9, 0.0  ;;  %v1393_v14 = vadd.f32 %v5258_v47, %v3512_v10  ;;  %v2033_v15 = vadd.f32 %v5258_v47, %v3704_v11 }
 0x133   :  { %v1387_v16 = vpop.f32.mrf.mxu0  ;;  %v2027_v17 = vpop.f32.mrf.mxu1 }
 0x134   :  { %2704 = vst [vmem:[%s5906_s3 + $0x1a0] sm:$0xff] %v2448_v12  ;;  %2832 = vst [vmem:[%s5906_s3 + $0x5a0] sm:$0xff] %v2576_v13  ;;  %v2451_v18 = vmax.f32 %v1393_v14, 0.0  ;;  %v2579_v19 = vmax.f32 %v2033_v15, 0.0  ;;  %v1388_v20 = vadd.f32 %v5258_v47, %v1387_v16  ;;  %v2028_v21 = vadd.f32 %v5258_v47, %v2027_v17 }
 0x135   :  { %v3515_v22 = vpop.f32.mrf.mxu0  ;;  %v3707_v23 = vpop.f32.mrf.mxu1 }
 0x136   :  { %2707 = vst [vmem:[%s5906_s3 + $0x1b8] sm:$0xff] %v2451_v18  ;;  %2835 = vst [vmem:[%s5906_s3 + $0x5b8] sm:$0xff] %v2579_v19  ;;  %v2450_v24 = vmax.f32 %v1388_v20, 0.0  ;;  %v2578_v25 = vmax.f32 %v2028_v21, 0.0  ;;  %v1403_v26 = vadd.f32 %v5258_v47, %v3515_v22  ;;  %v2043_v27 = vadd.f32 %v5258_v47, %v3707_v23 }
 0x137   :  { %v1397_v28 = vpop.f32.mrf.mxu0  ;;  %v2037_v29 = vpop.f32.mrf.mxu1 }
 0x138   :  { %2706 = vst [vmem:[%s5906_s3 + $0x1b0] sm:$0xff] %v2450_v24  ;;  %2834 = vst [vmem:[%s5906_s3 + $0x5b0] sm:$0xff] %v2578_v25  ;;  %v2453_v30 = vmax.f32 %v1403_v26, 0.0  ;;  %v2581_v31 = vmax.f32 %v2043_v27, 0.0  ;;  %v1398_v32 = vadd.f32 %v5258_v47, %v1397_v28  ;;  %v2038_v33 = vadd.f32 %v5258_v47, %v2037_v29 }
 0x139   :  { %v3518_v34 = vpop.f32.mrf.mxu0  ;;  %v3710_v35 = vpop.f32.mrf.mxu1 }
 0x13a   :  { %2709 = vst [vmem:[%s5906_s3 + $0x1c8] sm:$0xff] %v2453_v30  ;;  %2837 = vst [vmem:[%s5906_s3 + $0x5c8] sm:$0xff] %v2581_v31  ;;  %v2452_v36 = vmax.f32 %v1398_v32, 0.0  ;;  %v2580_v37 = vmax.f32 %v2038_v33, 0.0  ;;  %v1413_v38 = vadd.f32 %v5258_v47, %v3518_v34  ;;  %v2053_v39 = vadd.f32 %v5258_v47, %v3710_v35 }
 0x13b   :  { %v1407_v40 = vpop.f32.mrf.mxu0  ;;  %v2047_v41 = vpop.f32.mrf.mxu1 }
 0x13c   :  { %2708 = vst [vmem:[%s5906_s3 + $0x1c0] sm:$0xff] %v2452_v36  ;;  %2836 = vst [vmem:[%s5906_s3 + $0x5c0] sm:$0xff] %v2580_v37  ;;  %v2455_v42 = vmax.f32 %v1413_v38, 0.0  ;;  %v2583_v43 = vmax.f32 %v2053_v39, 0.0  ;;  %v1408_v44 = vadd.f32 %v5258_v47, %v1407_v40  ;;  %v2048_v45 = vadd.f32 %v5258_v47, %v2047_v41 }
 0x13d   :  { %v3521_v46 = vpop.f32.mrf.mxu0  ;;  %v3713_v48 = vpop.f32.mrf.mxu1 }
 0x13e   :  { %2711 = vst [vmem:[%s5906_s3 + $0x1d8] sm:$0xff] %v2455_v42  ;;  %2839 = vst [vmem:[%s5906_s3 + $0x5d8] sm:$0xff] %v2583_v43  ;;  %v2454_v5 = vmax.f32 %v1408_v44, 0.0  ;;  %v2582_v49 = vmax.f32 %v2048_v45, 0.0  ;;  %v1423_v50 = vadd.f32 %v5258_v47, %v3521_v46  ;;  %v2063_v51 = vadd.f32 %v5258_v47, %v3713_v48 }
 0x13f   :  { %v1417_v52 = vpop.f32.mrf.mxu0  ;;  %v2057_v53 = vpop.f32.mrf.mxu1 }
 0x140   :  { %2710 = vst [vmem:[%s5906_s3 + $0x1d0] sm:$0xff] %v2454_v5  ;;  %2838 = vst [vmem:[%s5906_s3 + $0x5d0] sm:$0xff] %v2582_v49  ;;  %v2457_v54 = vmax.f32 %v1423_v50, 0.0  ;;  %v2585_v55 = vmax.f32 %v2063_v51, 0.0  ;;  %v1418_v56 = vadd.f32 %v5258_v47, %v1417_v52  ;;  %v2058_v57 = vadd.f32 %v5258_v47, %v2057_v53 }
 0x141   :  { %v3524_v58 = vpop.f32.mrf.mxu0  ;;  %v3716_v59 = vpop.f32.mrf.mxu1 }
 0x142   :  { %2713 = vst [vmem:[%s5906_s3 + $0x1e8] sm:$0xff] %v2457_v54  ;;  %2841 = vst [vmem:[%s5906_s3 + $0x5e8] sm:$0xff] %v2585_v55  ;;  %v2456_v60 = vmax.f32 %v1418_v56, 0.0  ;;  %v2584_v61 = vmax.f32 %v2058_v57, 0.0  ;;  %v1433_v62 = vadd.f32 %v5258_v47, %v3524_v58  ;;  %v2073_v63 = vadd.f32 %v5258_v47, %v3716_v59 }
 0x143   :  { %v1427_v0 = vpop.f32.mrf.mxu0  ;;  %v2067_v1 = vpop.f32.mrf.mxu1 }
 0x144   :  { %2712 = vst [vmem:[%s5906_s3 + $0x1e0] sm:$0xff] %v2456_v60  ;;  %2840 = vst [vmem:[%s5906_s3 + $0x5e0] sm:$0xff] %v2584_v61  ;;  %v2459_v2 = vmax.f32 %v1433_v62, 0.0  ;;  %v2587_v3 = vmax.f32 %v2073_v63, 0.0  ;;  %v1428_v4 = vadd.f32 %v5258_v47, %v1427_v0  ;;  %v2068_v6 = vadd.f32 %v5258_v47, %v2067_v1 }
 0x145   :  { %v3527_v7 = vpop.f32.mrf.mxu0  ;;  %v3719_v8 = vpop.f32.mrf.mxu1 }
 0x146   :  { %2715 = vst [vmem:[%s5906_s3 + $0x1f8] sm:$0xff] %v2459_v2  ;;  %2843 = vst [vmem:[%s5906_s3 + $0x5f8] sm:$0xff] %v2587_v3  ;;  %v2458_v9 = vmax.f32 %v1428_v4, 0.0  ;;  %v2586_v10 = vmax.f32 %v2068_v6, 0.0  ;;  %v1443_v11 = vadd.f32 %v5258_v47, %v3527_v7  ;;  %v2083_v12 = vadd.f32 %v5258_v47, %v3719_v8 }
 0x147   :  { %v1437_v13 = vpop.f32.mrf.mxu0  ;;  %v2077_v14 = vpop.f32.mrf.mxu1 }
 0x148   :  { %2714 = vst [vmem:[%s5906_s3 + $0x1f0] sm:$0xff] %v2458_v9  ;;  %2842 = vst [vmem:[%s5906_s3 + $0x5f0] sm:$0xff] %v2586_v10  ;;  %v2461_v15 = vmax.f32 %v1443_v11, 0.0  ;;  %v2589_v16 = vmax.f32 %v2083_v12, 0.0  ;;  %v1438_v17 = vadd.f32 %v5258_v47, %v1437_v13  ;;  %v2078_v18 = vadd.f32 %v5258_v47, %v2077_v14 }
 0x149   :  { %v3530_v19 = vpop.f32.mrf.mxu0  ;;  %v3722_v20 = vpop.f32.mrf.mxu1 }
 0x14a   :  { %2717 = vst [vmem:[%s5906_s3 + $0x208] sm:$0xff] %v2461_v15  ;;  %2845 = vst [vmem:[%s5906_s3 + $0x608] sm:$0xff] %v2589_v16  ;;  %v2460_v21 = vmax.f32 %v1438_v17, 0.0  ;;  %v2588_v22 = vmax.f32 %v2078_v18, 0.0  ;;  %v1453_v23 = vadd.f32 %v5258_v47, %v3530_v19  ;;  %v2093_v24 = vadd.f32 %v5258_v47, %v3722_v20 }
 0x14b   :  { %v1447_v25 = vpop.f32.mrf.mxu0  ;;  %v2087_v26 = vpop.f32.mrf.mxu1 }
 0x14c   :  { %2716 = vst [vmem:[%s5906_s3 + $0x200] sm:$0xff] %v2460_v21  ;;  %2844 = vst [vmem:[%s5906_s3 + $0x600] sm:$0xff] %v2588_v22  ;;  %v2463_v27 = vmax.f32 %v1453_v23, 0.0  ;;  %v2591_v28 = vmax.f32 %v2093_v24, 0.0  ;;  %v1448_v29 = vadd.f32 %v5258_v47, %v1447_v25  ;;  %v2088_v30 = vadd.f32 %v5258_v47, %v2087_v26 }
 0x14d   :  { %v3533_v31 = vpop.f32.mrf.mxu0  ;;  %v3725_v32 = vpop.f32.mrf.mxu1 }
 0x14e   :  { %2719 = vst [vmem:[%s5906_s3 + $0x218] sm:$0xff] %v2463_v27  ;;  %2847 = vst [vmem:[%s5906_s3 + $0x618] sm:$0xff] %v2591_v28  ;;  %v2462_v33 = vmax.f32 %v1448_v29, 0.0  ;;  %v2590_v34 = vmax.f32 %v2088_v30, 0.0  ;;  %v1463_v35 = vadd.f32 %v5258_v47, %v3533_v31  ;;  %v2103_v36 = vadd.f32 %v5258_v47, %v3725_v32 }
 0x14f   :  { %v1457_v37 = vpop.f32.mrf.mxu0  ;;  %v2097_v38 = vpop.f32.mrf.mxu1 }
 0x150   :  { %2718 = vst [vmem:[%s5906_s3 + $0x210] sm:$0xff] %v2462_v33  ;;  %2846 = vst [vmem:[%s5906_s3 + $0x610] sm:$0xff] %v2590_v34  ;;  %v2465_v39 = vmax.f32 %v1463_v35, 0.0  ;;  %v2593_v40 = vmax.f32 %v2103_v36, 0.0  ;;  %v1458_v41 = vadd.f32 %v5258_v47, %v1457_v37  ;;  %v2098_v42 = vadd.f32 %v5258_v47, %v2097_v38 }
 0x151   :  { %v3536_v43 = vpop.f32.mrf.mxu0  ;;  %v3728_v44 = vpop.f32.mrf.mxu1 }
 0x152   :  { %2721 = vst [vmem:[%s5906_s3 + $0x228] sm:$0xff] %v2465_v39  ;;  %2849 = vst [vmem:[%s5906_s3 + $0x628] sm:$0xff] %v2593_v40  ;;  %v2464_v45 = vmax.f32 %v1458_v41, 0.0  ;;  %v2592_v46 = vmax.f32 %v2098_v42, 0.0  ;;  %v1473_v48 = vadd.f32 %v5258_v47, %v3536_v43  ;;  %v2113_v5 = vadd.f32 %v5258_v47, %v3728_v44 }
 0x153   :  { %v1467_v49 = vpop.f32.mrf.mxu0  ;;  %v2107_v50 = vpop.f32.mrf.mxu1 }
 0x154   :  { %2720 = vst [vmem:[%s5906_s3 + $0x220] sm:$0xff] %v2464_v45  ;;  %2848 = vst [vmem:[%s5906_s3 + $0x620] sm:$0xff] %v2592_v46  ;;  %v2467_v51 = vmax.f32 %v1473_v48, 0.0  ;;  %v2595_v52 = vmax.f32 %v2113_v5, 0.0  ;;  %v1468_v53 = vadd.f32 %v5258_v47, %v1467_v49  ;;  %v2108_v54 = vadd.f32 %v5258_v47, %v2107_v50 }
 0x155   :  { %v3539_v55 = vpop.f32.mrf.mxu0  ;;  %v3731_v56 = vpop.f32.mrf.mxu1 }
 0x156   :  { %2723 = vst [vmem:[%s5906_s3 + $0x238] sm:$0xff] %v2467_v51  ;;  %2851 = vst [vmem:[%s5906_s3 + $0x638] sm:$0xff] %v2595_v52  ;;  %v2466_v57 = vmax.f32 %v1468_v53, 0.0  ;;  %v2594_v58 = vmax.f32 %v2108_v54, 0.0  ;;  %v1483_v59 = vadd.f32 %v5258_v47, %v3539_v55  ;;  %v2123_v60 = vadd.f32 %v5258_v47, %v3731_v56 }
 0x157   :  { %v1477_v61 = vpop.f32.mrf.mxu0  ;;  %v2117_v62 = vpop.f32.mrf.mxu1 }
 0x158   :  { %2722 = vst [vmem:[%s5906_s3 + $0x230] sm:$0xff] %v2466_v57  ;;  %2850 = vst [vmem:[%s5906_s3 + $0x630] sm:$0xff] %v2594_v58  ;;  %v2469_v63 = vmax.f32 %v1483_v59, 0.0  ;;  %v2597_v0 = vmax.f32 %v2123_v60, 0.0  ;;  %v1478_v1 = vadd.f32 %v5258_v47, %v1477_v61  ;;  %v2118_v2 = vadd.f32 %v5258_v47, %v2117_v62 }
 0x159   :  { %v3542_v3 = vpop.f32.mrf.mxu0  ;;  %v3734_v4 = vpop.f32.mrf.mxu1 }
 0x15a   :  { %2725 = vst [vmem:[%s5906_s3 + $0x248] sm:$0xff] %v2469_v63  ;;  %2853 = vst [vmem:[%s5906_s3 + $0x648] sm:$0xff] %v2597_v0  ;;  %v2468_v6 = vmax.f32 %v1478_v1, 0.0  ;;  %v2596_v7 = vmax.f32 %v2118_v2, 0.0  ;;  %v1493_v8 = vadd.f32 %v5258_v47, %v3542_v3  ;;  %v2133_v9 = vadd.f32 %v5258_v47, %v3734_v4 }
 0x15b   :  { %v1487_v10 = vpop.f32.mrf.mxu0  ;;  %v2127_v11 = vpop.f32.mrf.mxu1 }
 0x15c   :  { %2724 = vst [vmem:[%s5906_s3 + $0x240] sm:$0xff] %v2468_v6  ;;  %2852 = vst [vmem:[%s5906_s3 + $0x640] sm:$0xff] %v2596_v7  ;;  %v2471_v12 = vmax.f32 %v1493_v8, 0.0  ;;  %v2599_v13 = vmax.f32 %v2133_v9, 0.0  ;;  %v1488_v14 = vadd.f32 %v5258_v47, %v1487_v10  ;;  %v2128_v15 = vadd.f32 %v5258_v47, %v2127_v11 }
 0x15d   :  { %v3545_v16 = vpop.f32.mrf.mxu0  ;;  %v3737_v17 = vpop.f32.mrf.mxu1 }
 0x15e   :  { %2727 = vst [vmem:[%s5906_s3 + $0x258] sm:$0xff] %v2471_v12  ;;  %2855 = vst [vmem:[%s5906_s3 + $0x658] sm:$0xff] %v2599_v13  ;;  %v2470_v18 = vmax.f32 %v1488_v14, 0.0  ;;  %v2598_v19 = vmax.f32 %v2128_v15, 0.0  ;;  %v1503_v20 = vadd.f32 %v5258_v47, %v3545_v16  ;;  %v2143_v21 = vadd.f32 %v5258_v47, %v3737_v17 }
 0x15f   :  { %v1497_v22 = vpop.f32.mrf.mxu0  ;;  %v2137_v23 = vpop.f32.mrf.mxu1 }
 0x160   :  { %2726 = vst [vmem:[%s5906_s3 + $0x250] sm:$0xff] %v2470_v18  ;;  %2854 = vst [vmem:[%s5906_s3 + $0x650] sm:$0xff] %v2598_v19  ;;  %v2473_v24 = vmax.f32 %v1503_v20, 0.0  ;;  %v2601_v25 = vmax.f32 %v2143_v21, 0.0  ;;  %v1498_v26 = vadd.f32 %v5258_v47, %v1497_v22  ;;  %v2138_v27 = vadd.f32 %v5258_v47, %v2137_v23 }
 0x161   :  { %v3548_v28 = vpop.f32.mrf.mxu0  ;;  %v3740_v29 = vpop.f32.mrf.mxu1 }
 0x162   :  { %2729 = vst [vmem:[%s5906_s3 + $0x268] sm:$0xff] %v2473_v24  ;;  %2857 = vst [vmem:[%s5906_s3 + $0x668] sm:$0xff] %v2601_v25  ;;  %v2472_v30 = vmax.f32 %v1498_v26, 0.0  ;;  %v2600_v31 = vmax.f32 %v2138_v27, 0.0  ;;  %v1513_v32 = vadd.f32 %v5258_v47, %v3548_v28  ;;  %v2153_v33 = vadd.f32 %v5258_v47, %v3740_v29 }
 0x163   :  { %v1507_v34 = vpop.f32.mrf.mxu0  ;;  %v2147_v35 = vpop.f32.mrf.mxu1 }
 0x164   :  { %2728 = vst [vmem:[%s5906_s3 + $0x260] sm:$0xff] %v2472_v30  ;;  %2856 = vst [vmem:[%s5906_s3 + $0x660] sm:$0xff] %v2600_v31  ;;  %v2475_v36 = vmax.f32 %v1513_v32, 0.0  ;;  %v2603_v37 = vmax.f32 %v2153_v33, 0.0  ;;  %v1508_v38 = vadd.f32 %v5258_v47, %v1507_v34  ;;  %v2148_v39 = vadd.f32 %v5258_v47, %v2147_v35 }
 0x165   :  { %v3551_v40 = vpop.f32.mrf.mxu0  ;;  %v3743_v41 = vpop.f32.mrf.mxu1 }
 0x166   :  { %2731 = vst [vmem:[%s5906_s3 + $0x278] sm:$0xff] %v2475_v36  ;;  %2859 = vst [vmem:[%s5906_s3 + $0x678] sm:$0xff] %v2603_v37  ;;  %v2474_v42 = vmax.f32 %v1508_v38, 0.0  ;;  %v2602_v43 = vmax.f32 %v2148_v39, 0.0  ;;  %v1523_v44 = vadd.f32 %v5258_v47, %v3551_v40  ;;  %v2163_v45 = vadd.f32 %v5258_v47, %v3743_v41 }
 0x167   :  { %v1517_v46 = vpop.f32.mrf.mxu0  ;;  %v2157_v48 = vpop.f32.mrf.mxu1 }
 0x168   :  { %2730 = vst [vmem:[%s5906_s3 + $0x270] sm:$0xff] %v2474_v42  ;;  %2858 = vst [vmem:[%s5906_s3 + $0x670] sm:$0xff] %v2602_v43  ;;  %v2477_v5 = vmax.f32 %v1523_v44, 0.0  ;;  %v2605_v49 = vmax.f32 %v2163_v45, 0.0  ;;  %v1518_v50 = vadd.f32 %v5258_v47, %v1517_v46  ;;  %v2158_v51 = vadd.f32 %v5258_v47, %v2157_v48 }
 0x169   :  { %v3554_v52 = vpop.f32.mrf.mxu0  ;;  %v3746_v53 = vpop.f32.mrf.mxu1 }
 0x16a   :  { %2733 = vst [vmem:[%s5906_s3 + $0x288] sm:$0xff] %v2477_v5  ;;  %2861 = vst [vmem:[%s5906_s3 + $0x688] sm:$0xff] %v2605_v49  ;;  %v2476_v54 = vmax.f32 %v1518_v50, 0.0  ;;  %v2604_v55 = vmax.f32 %v2158_v51, 0.0  ;;  %v1533_v56 = vadd.f32 %v5258_v47, %v3554_v52  ;;  %v2173_v57 = vadd.f32 %v5258_v47, %v3746_v53 }
 0x16b   :  { %v1527_v58 = vpop.f32.mrf.mxu0  ;;  %v2167_v59 = vpop.f32.mrf.mxu1 }
 0x16c   :  { %2732 = vst [vmem:[%s5906_s3 + $0x280] sm:$0xff] %v2476_v54  ;;  %2860 = vst [vmem:[%s5906_s3 + $0x680] sm:$0xff] %v2604_v55  ;;  %v2479_v60 = vmax.f32 %v1533_v56, 0.0  ;;  %v2607_v61 = vmax.f32 %v2173_v57, 0.0  ;;  %v1528_v62 = vadd.f32 %v5258_v47, %v1527_v58  ;;  %v2168_v63 = vadd.f32 %v5258_v47, %v2167_v59 }
 0x16d   :  { %v3557_v0 = vpop.f32.mrf.mxu0  ;;  %v3749_v1 = vpop.f32.mrf.mxu1 }
 0x16e   :  { %2735 = vst [vmem:[%s5906_s3 + $0x298] sm:$0xff] %v2479_v60  ;;  %2863 = vst [vmem:[%s5906_s3 + $0x698] sm:$0xff] %v2607_v61  ;;  %v2478_v2 = vmax.f32 %v1528_v62, 0.0  ;;  %v2606_v3 = vmax.f32 %v2168_v63, 0.0  ;;  %v1543_v4 = vadd.f32 %v5258_v47, %v3557_v0  ;;  %v2183_v6 = vadd.f32 %v5258_v47, %v3749_v1 }
 0x16f   :  { %v1537_v7 = vpop.f32.mrf.mxu0  ;;  %v2177_v8 = vpop.f32.mrf.mxu1 }
 0x170   :  { %2734 = vst [vmem:[%s5906_s3 + $0x290] sm:$0xff] %v2478_v2  ;;  %2862 = vst [vmem:[%s5906_s3 + $0x690] sm:$0xff] %v2606_v3  ;;  %v2481_v9 = vmax.f32 %v1543_v4, 0.0  ;;  %v2609_v10 = vmax.f32 %v2183_v6, 0.0  ;;  %v1538_v11 = vadd.f32 %v5258_v47, %v1537_v7  ;;  %v2178_v12 = vadd.f32 %v5258_v47, %v2177_v8 }
 0x171   :  { %v3560_v13 = vpop.f32.mrf.mxu0  ;;  %v3752_v14 = vpop.f32.mrf.mxu1 }
 0x172   :  { %2737 = vst [vmem:[%s5906_s3 + $0x2a8] sm:$0xff] %v2481_v9  ;;  %2865 = vst [vmem:[%s5906_s3 + $0x6a8] sm:$0xff] %v2609_v10  ;;  %v2480_v15 = vmax.f32 %v1538_v11, 0.0  ;;  %v2608_v16 = vmax.f32 %v2178_v12, 0.0  ;;  %v1553_v17 = vadd.f32 %v5258_v47, %v3560_v13  ;;  %v2193_v18 = vadd.f32 %v5258_v47, %v3752_v14 }
 0x173   :  { %v1547_v19 = vpop.f32.mrf.mxu0  ;;  %v2187_v20 = vpop.f32.mrf.mxu1 }
 0x174   :  { %2736 = vst [vmem:[%s5906_s3 + $0x2a0] sm:$0xff] %v2480_v15  ;;  %2864 = vst [vmem:[%s5906_s3 + $0x6a0] sm:$0xff] %v2608_v16  ;;  %v2483_v21 = vmax.f32 %v1553_v17, 0.0  ;;  %v2611_v22 = vmax.f32 %v2193_v18, 0.0  ;;  %v1548_v23 = vadd.f32 %v5258_v47, %v1547_v19  ;;  %v2188_v24 = vadd.f32 %v5258_v47, %v2187_v20 }
 0x175   :  { %v3563_v25 = vpop.f32.mrf.mxu0  ;;  %v3755_v26 = vpop.f32.mrf.mxu1 }
 0x176   :  { %2739 = vst [vmem:[%s5906_s3 + $0x2b8] sm:$0xff] %v2483_v21  ;;  %2867 = vst [vmem:[%s5906_s3 + $0x6b8] sm:$0xff] %v2611_v22  ;;  %v2482_v27 = vmax.f32 %v1548_v23, 0.0  ;;  %v2610_v28 = vmax.f32 %v2188_v24, 0.0  ;;  %v1563_v29 = vadd.f32 %v5258_v47, %v3563_v25  ;;  %v2203_v30 = vadd.f32 %v5258_v47, %v3755_v26 }
 0x177   :  { %v1557_v31 = vpop.f32.mrf.mxu0  ;;  %v2197_v32 = vpop.f32.mrf.mxu1 }
 0x178   :  { %2738 = vst [vmem:[%s5906_s3 + $0x2b0] sm:$0xff] %v2482_v27  ;;  %2866 = vst [vmem:[%s5906_s3 + $0x6b0] sm:$0xff] %v2610_v28  ;;  %v2485_v33 = vmax.f32 %v1563_v29, 0.0  ;;  %v2613_v34 = vmax.f32 %v2203_v30, 0.0  ;;  %v1558_v35 = vadd.f32 %v5258_v47, %v1557_v31  ;;  %v2198_v36 = vadd.f32 %v5258_v47, %v2197_v32 }
 0x179   :  { %v3566_v37 = vpop.f32.mrf.mxu0  ;;  %v3758_v38 = vpop.f32.mrf.mxu1 }
 0x17a   :  { %2741 = vst [vmem:[%s5906_s3 + $0x2c8] sm:$0xff] %v2485_v33  ;;  %2869 = vst [vmem:[%s5906_s3 + $0x6c8] sm:$0xff] %v2613_v34  ;;  %v2484_v39 = vmax.f32 %v1558_v35, 0.0  ;;  %v2612_v40 = vmax.f32 %v2198_v36, 0.0  ;;  %v1573_v41 = vadd.f32 %v5258_v47, %v3566_v37  ;;  %v2213_v42 = vadd.f32 %v5258_v47, %v3758_v38 }
 0x17b   :  { %v1567_v43 = vpop.f32.mrf.mxu0  ;;  %v2207_v44 = vpop.f32.mrf.mxu1 }
 0x17c   :  { %2740 = vst [vmem:[%s5906_s3 + $0x2c0] sm:$0xff] %v2484_v39  ;;  %2868 = vst [vmem:[%s5906_s3 + $0x6c0] sm:$0xff] %v2612_v40  ;;  %v2487_v45 = vmax.f32 %v1573_v41, 0.0  ;;  %v2615_v46 = vmax.f32 %v2213_v42, 0.0  ;;  %v1568_v48 = vadd.f32 %v5258_v47, %v1567_v43  ;;  %v2208_v5 = vadd.f32 %v5258_v47, %v2207_v44 }
 0x17d   :  { %v3569_v49 = vpop.f32.mrf.mxu0  ;;  %v3761_v50 = vpop.f32.mrf.mxu1 }
 0x17e   :  { %2743 = vst [vmem:[%s5906_s3 + $0x2d8] sm:$0xff] %v2487_v45  ;;  %2871 = vst [vmem:[%s5906_s3 + $0x6d8] sm:$0xff] %v2615_v46  ;;  %v2486_v51 = vmax.f32 %v1568_v48, 0.0  ;;  %v2614_v52 = vmax.f32 %v2208_v5, 0.0  ;;  %v1583_v53 = vadd.f32 %v5258_v47, %v3569_v49  ;;  %v2223_v54 = vadd.f32 %v5258_v47, %v3761_v50 }
 0x17f   :  { %v1577_v55 = vpop.f32.mrf.mxu0  ;;  %v2217_v56 = vpop.f32.mrf.mxu1 }
 0x180   :  { %2742 = vst [vmem:[%s5906_s3 + $0x2d0] sm:$0xff] %v2486_v51  ;;  %2870 = vst [vmem:[%s5906_s3 + $0x6d0] sm:$0xff] %v2614_v52  ;;  %v2489_v57 = vmax.f32 %v1583_v53, 0.0  ;;  %v2617_v58 = vmax.f32 %v2223_v54, 0.0  ;;  %v1578_v59 = vadd.f32 %v5258_v47, %v1577_v55  ;;  %v2218_v60 = vadd.f32 %v5258_v47, %v2217_v56 }
 0x181   :  { %v3572_v61 = vpop.f32.mrf.mxu0  ;;  %v3764_v62 = vpop.f32.mrf.mxu1 }
 0x182   :  { %2745 = vst [vmem:[%s5906_s3 + $0x2e8] sm:$0xff] %v2489_v57  ;;  %2873 = vst [vmem:[%s5906_s3 + $0x6e8] sm:$0xff] %v2617_v58  ;;  %v2488_v63 = vmax.f32 %v1578_v59, 0.0  ;;  %v2616_v0 = vmax.f32 %v2218_v60, 0.0  ;;  %v1593_v1 = vadd.f32 %v5258_v47, %v3572_v61  ;;  %v2233_v2 = vadd.f32 %v5258_v47, %v3764_v62 }
 0x183   :  { %v1587_v3 = vpop.f32.mrf.mxu0  ;;  %v2227_v4 = vpop.f32.mrf.mxu1 }
 0x184   :  { %2744 = vst [vmem:[%s5906_s3 + $0x2e0] sm:$0xff] %v2488_v63  ;;  %2872 = vst [vmem:[%s5906_s3 + $0x6e0] sm:$0xff] %v2616_v0  ;;  %v2491_v6 = vmax.f32 %v1593_v1, 0.0  ;;  %v2619_v7 = vmax.f32 %v2233_v2, 0.0  ;;  %v1588_v8 = vadd.f32 %v5258_v47, %v1587_v3  ;;  %v2228_v9 = vadd.f32 %v5258_v47, %v2227_v4 }
 0x185   :  { %v3575_v10 = vpop.f32.mrf.mxu0  ;;  %v3767_v11 = vpop.f32.mrf.mxu1 }
 0x186   :  { %2747 = vst [vmem:[%s5906_s3 + $0x2f8] sm:$0xff] %v2491_v6  ;;  %2875 = vst [vmem:[%s5906_s3 + $0x6f8] sm:$0xff] %v2619_v7  ;;  %v2490_v12 = vmax.f32 %v1588_v8, 0.0  ;;  %v2618_v13 = vmax.f32 %v2228_v9, 0.0  ;;  %v1603_v14 = vadd.f32 %v5258_v47, %v3575_v10  ;;  %v2243_v15 = vadd.f32 %v5258_v47, %v3767_v11 }
 0x187   :  { %v1597_v16 = vpop.f32.mrf.mxu0  ;;  %v2237_v17 = vpop.f32.mrf.mxu1 }
 0x188   :  { %2746 = vst [vmem:[%s5906_s3 + $0x2f0] sm:$0xff] %v2490_v12  ;;  %2874 = vst [vmem:[%s5906_s3 + $0x6f0] sm:$0xff] %v2618_v13  ;;  %v2493_v18 = vmax.f32 %v1603_v14, 0.0  ;;  %v2621_v19 = vmax.f32 %v2243_v15, 0.0  ;;  %v1598_v20 = vadd.f32 %v5258_v47, %v1597_v16  ;;  %v2238_v21 = vadd.f32 %v5258_v47, %v2237_v17 }
 0x189   :  { %v3578_v22 = vpop.f32.mrf.mxu0  ;;  %v3770_v23 = vpop.f32.mrf.mxu1 }
 0x18a   :  { %2749 = vst [vmem:[%s5906_s3 + $0x308] sm:$0xff] %v2493_v18  ;;  %2877 = vst [vmem:[%s5906_s3 + $0x708] sm:$0xff] %v2621_v19  ;;  %v2492_v24 = vmax.f32 %v1598_v20, 0.0  ;;  %v2620_v25 = vmax.f32 %v2238_v21, 0.0  ;;  %v1613_v26 = vadd.f32 %v5258_v47, %v3578_v22  ;;  %v2253_v27 = vadd.f32 %v5258_v47, %v3770_v23 }
 0x18b   :  { %v1607_v28 = vpop.f32.mrf.mxu0  ;;  %v2247_v29 = vpop.f32.mrf.mxu1 }
 0x18c   :  { %2748 = vst [vmem:[%s5906_s3 + $0x300] sm:$0xff] %v2492_v24  ;;  %2876 = vst [vmem:[%s5906_s3 + $0x700] sm:$0xff] %v2620_v25  ;;  %v2495_v30 = vmax.f32 %v1613_v26, 0.0  ;;  %v2623_v31 = vmax.f32 %v2253_v27, 0.0  ;;  %v1608_v32 = vadd.f32 %v5258_v47, %v1607_v28  ;;  %v2248_v33 = vadd.f32 %v5258_v47, %v2247_v29 }
 0x18d   :  { %v3581_v34 = vpop.f32.mrf.mxu0  ;;  %v3773_v35 = vpop.f32.mrf.mxu1 }
 0x18e   :  { %2751 = vst [vmem:[%s5906_s3 + $0x318] sm:$0xff] %v2495_v30  ;;  %2879 = vst [vmem:[%s5906_s3 + $0x718] sm:$0xff] %v2623_v31  ;;  %v2494_v36 = vmax.f32 %v1608_v32, 0.0  ;;  %v2622_v37 = vmax.f32 %v2248_v33, 0.0  ;;  %v1623_v38 = vadd.f32 %v5258_v47, %v3581_v34  ;;  %v2263_v39 = vadd.f32 %v5258_v47, %v3773_v35 }
 0x18f   :  { %v1617_v40 = vpop.f32.mrf.mxu0  ;;  %v2257_v41 = vpop.f32.mrf.mxu1 }
 0x190   :  { %2750 = vst [vmem:[%s5906_s3 + $0x310] sm:$0xff] %v2494_v36  ;;  %2878 = vst [vmem:[%s5906_s3 + $0x710] sm:$0xff] %v2622_v37  ;;  %v2497_v42 = vmax.f32 %v1623_v38, 0.0  ;;  %v2625_v43 = vmax.f32 %v2263_v39, 0.0  ;;  %v1618_v44 = vadd.f32 %v5258_v47, %v1617_v40  ;;  %v2258_v45 = vadd.f32 %v5258_v47, %v2257_v41 }
 0x191   :  { %v3584_v46 = vpop.f32.mrf.mxu0  ;;  %v3776_v48 = vpop.f32.mrf.mxu1 }
 0x192   :  { %2753 = vst [vmem:[%s5906_s3 + $0x328] sm:$0xff] %v2497_v42  ;;  %2881 = vst [vmem:[%s5906_s3 + $0x728] sm:$0xff] %v2625_v43  ;;  %v2496_v5 = vmax.f32 %v1618_v44, 0.0  ;;  %v2624_v49 = vmax.f32 %v2258_v45, 0.0  ;;  %v1633_v50 = vadd.f32 %v5258_v47, %v3584_v46  ;;  %v2273_v51 = vadd.f32 %v5258_v47, %v3776_v48 }
 0x193   :  { %v1627_v52 = vpop.f32.mrf.mxu0  ;;  %v2267_v53 = vpop.f32.mrf.mxu1 }
 0x194   :  { %2752 = vst [vmem:[%s5906_s3 + $0x320] sm:$0xff] %v2496_v5  ;;  %2880 = vst [vmem:[%s5906_s3 + $0x720] sm:$0xff] %v2624_v49  ;;  %v2499_v54 = vmax.f32 %v1633_v50, 0.0  ;;  %v2627_v55 = vmax.f32 %v2273_v51, 0.0  ;;  %v1628_v56 = vadd.f32 %v5258_v47, %v1627_v52  ;;  %v2268_v57 = vadd.f32 %v5258_v47, %v2267_v53  ;;  %v5775_v53 = vld [vmem:[%s5905_s2] ss:$0 sm:$0xff] }
 0x195   :  { %v3587_v58 = vpop.f32.mrf.mxu0  ;;  %v3779_v59 = vpop.f32.mrf.mxu1 }
 0x196   :  { %2755 = vst [vmem:[%s5906_s3 + $0x338] sm:$0xff] %v2499_v54  ;;  %2883 = vst [vmem:[%s5906_s3 + $0x738] sm:$0xff] %v2627_v55  ;;  %v2498_v60 = vmax.f32 %v1628_v56, 0.0  ;;  %v2626_v61 = vmax.f32 %v2268_v57, 0.0  ;;  %v1643_v62 = vadd.f32 %v5258_v47, %v3587_v58  ;;  %v2283_v63 = vadd.f32 %v5258_v47, %v3779_v59 }
 0x197   :  { %v1637_v0 = vpop.f32.mrf.mxu0  ;;  %v2277_v1 = vpop.f32.mrf.mxu1 }
 0x198   :  { %2754 = vst [vmem:[%s5906_s3 + $0x330] sm:$0xff] %v2498_v60  ;;  %2882 = vst [vmem:[%s5906_s3 + $0x730] sm:$0xff] %v2626_v61  ;;  %v2501_v2 = vmax.f32 %v1643_v62, 0.0  ;;  %v2629_v3 = vmax.f32 %v2283_v63, 0.0  ;;  %v1638_v4 = vadd.f32 %v5258_v47, %v1637_v0  ;;  %v2278_v6 = vadd.f32 %v5258_v47, %v2277_v1 }
 0x199   :  { %v3590_v7 = vpop.f32.mrf.mxu0  ;;  %v3782_v8 = vpop.f32.mrf.mxu1 }
 0x19a   :  { %2757 = vst [vmem:[%s5906_s3 + $0x348] sm:$0xff] %v2501_v2  ;;  %2885 = vst [vmem:[%s5906_s3 + $0x748] sm:$0xff] %v2629_v3  ;;  %v2500_v9 = vmax.f32 %v1638_v4, 0.0  ;;  %v2628_v10 = vmax.f32 %v2278_v6, 0.0  ;;  %v1653_v11 = vadd.f32 %v5258_v47, %v3590_v7  ;;  %v2293_v12 = vadd.f32 %v5258_v47, %v3782_v8 }
 0x19b   :  { %v1647_v13 = vpop.f32.mrf.mxu0  ;;  %v2287_v14 = vpop.f32.mrf.mxu1 }
 0x19c   :  { %2756 = vst [vmem:[%s5906_s3 + $0x340] sm:$0xff] %v2500_v9  ;;  %2884 = vst [vmem:[%s5906_s3 + $0x740] sm:$0xff] %v2628_v10  ;;  %v2503_v15 = vmax.f32 %v1653_v11, 0.0  ;;  %v2631_v16 = vmax.f32 %v2293_v12, 0.0  ;;  %v1648_v17 = vadd.f32 %v5258_v47, %v1647_v13  ;;  %v2288_v18 = vadd.f32 %v5258_v47, %v2287_v14 }
 0x19d   :  { %v3593_v19 = vpop.f32.mrf.mxu0  ;;  %v3785_v20 = vpop.f32.mrf.mxu1 }
 0x19e   :  { %2759 = vst [vmem:[%s5906_s3 + $0x358] sm:$0xff] %v2503_v15  ;;  %2887 = vst [vmem:[%s5906_s3 + $0x758] sm:$0xff] %v2631_v16  ;;  %v2502_v21 = vmax.f32 %v1648_v17, 0.0  ;;  %v2630_v22 = vmax.f32 %v2288_v18, 0.0  ;;  %v1663_v23 = vadd.f32 %v5258_v47, %v3593_v19  ;;  %v2303_v24 = vadd.f32 %v5258_v47, %v3785_v20 }
 0x19f   :  { %v1657_v25 = vpop.f32.mrf.mxu0  ;;  %v2297_v26 = vpop.f32.mrf.mxu1 }
 0x1a0   :  { %2758 = vst [vmem:[%s5906_s3 + $0x350] sm:$0xff] %v2502_v21  ;;  %2886 = vst [vmem:[%s5906_s3 + $0x750] sm:$0xff] %v2630_v22  ;;  %v2505_v27 = vmax.f32 %v1663_v23, 0.0  ;;  %v2633_v28 = vmax.f32 %v2303_v24, 0.0  ;;  %v1658_v29 = vadd.f32 %v5258_v47, %v1657_v25  ;;  %v2298_v30 = vadd.f32 %v5258_v47, %v2297_v26 }
 0x1a1   :  { %v3596_v31 = vpop.f32.mrf.mxu0  ;;  %v3788_v32 = vpop.f32.mrf.mxu1 }
 0x1a2   :  { %2761 = vst [vmem:[%s5906_s3 + $0x368] sm:$0xff] %v2505_v27  ;;  %2889 = vst [vmem:[%s5906_s3 + $0x768] sm:$0xff] %v2633_v28  ;;  %v2504_v33 = vmax.f32 %v1658_v29, 0.0  ;;  %v2632_v34 = vmax.f32 %v2298_v30, 0.0  ;;  %v1673_v35 = vadd.f32 %v5258_v47, %v3596_v31  ;;  %v2313_v36 = vadd.f32 %v5258_v47, %v3788_v32 }
 0x1a3   :  { %v1667_v37 = vpop.f32.mrf.mxu0  ;;  %v2307_v38 = vpop.f32.mrf.mxu1 }
 0x1a4   :  { %2760 = vst [vmem:[%s5906_s3 + $0x360] sm:$0xff] %v2504_v33  ;;  %2888 = vst [vmem:[%s5906_s3 + $0x760] sm:$0xff] %v2632_v34  ;;  %v2507_v39 = vmax.f32 %v1673_v35, 0.0  ;;  %v2635_v40 = vmax.f32 %v2313_v36, 0.0  ;;  %v1668_v41 = vadd.f32 %v5258_v47, %v1667_v37  ;;  %v2308_v42 = vadd.f32 %v5258_v47, %v2307_v38 }
 0x1a5   :  { %v3599_v43 = vpop.f32.mrf.mxu0  ;;  %v3791_v44 = vpop.f32.mrf.mxu1 }
 0x1a6   :  { %2763 = vst [vmem:[%s5906_s3 + $0x378] sm:$0xff] %v2507_v39  ;;  %2891 = vst [vmem:[%s5906_s3 + $0x778] sm:$0xff] %v2635_v40  ;;  %v2506_v45 = vmax.f32 %v1668_v41, 0.0  ;;  %v2634_v46 = vmax.f32 %v2308_v42, 0.0  ;;  %v1683_v48 = vadd.f32 %v5258_v47, %v3599_v43  ;;  %v2323_v5 = vadd.f32 %v5258_v47, %v3791_v44 }
 0x1a7   :  { %v1677_v49 = vpop.f32.mrf.mxu0  ;;  %v2317_v50 = vpop.f32.mrf.mxu1 }
 0x1a8   :  { %2762 = vst [vmem:[%s5906_s3 + $0x370] sm:$0xff] %v2506_v45  ;;  %2890 = vst [vmem:[%s5906_s3 + $0x770] sm:$0xff] %v2634_v46  ;;  %v2509_v51 = vmax.f32 %v1683_v48, 0.0  ;;  %v2637_v52 = vmax.f32 %v2323_v5, 0.0  ;;  %v1678_v54 = vadd.f32 %v5775_v53, %v1677_v49  ;;  %v2318_v47 = vadd.f32 %v5775_v53, %v2317_v50 }
 0x1a9   :  { %v3602_v55 = vpop.f32.mrf.mxu0  ;;  %v3794_v56 = vpop.f32.mrf.mxu1 }
 0x1aa   :  { %2765 = vst [vmem:[%s5906_s3 + $0x388] sm:$0xff] %v2509_v51  ;;  %2893 = vst [vmem:[%s5906_s3 + $0x788] sm:$0xff] %v2637_v52  ;;  %v2508_v57 = vmax.f32 %v1678_v54, 0.0  ;;  %v2636_v58 = vmax.f32 %v2318_v47, 0.0  ;;  %v1693_v59 = vadd.f32 %v5775_v53, %v3602_v55  ;;  %v2333_v60 = vadd.f32 %v5775_v53, %v3794_v56 }
 0x1ab   :  { %v1687_v61 = vpop.f32.mrf.mxu0  ;;  %v2327_v62 = vpop.f32.mrf.mxu1 }
 0x1ac   :  { %2764 = vst [vmem:[%s5906_s3 + $0x380] sm:$0xff] %v2508_v57  ;;  %2892 = vst [vmem:[%s5906_s3 + $0x780] sm:$0xff] %v2636_v58  ;;  %v2511_v63 = vmax.f32 %v1693_v59, 0.0  ;;  %v2639_v0 = vmax.f32 %v2333_v60, 0.0  ;;  %v1688_v1 = vadd.f32 %v5775_v53, %v1687_v61  ;;  %v2328_v2 = vadd.f32 %v5775_v53, %v2327_v62 }
 0x1ad   :  { %v3605_v3 = vpop.f32.mrf.mxu0  ;;  %v3797_v4 = vpop.f32.mrf.mxu1 }
 0x1ae   :  { %2767 = vst [vmem:[%s5906_s3 + $0x398] sm:$0xff] %v2511_v63  ;;  %2895 = vst [vmem:[%s5906_s3 + $0x798] sm:$0xff] %v2639_v0  ;;  %v2510_v6 = vmax.f32 %v1688_v1, 0.0  ;;  %v2638_v7 = vmax.f32 %v2328_v2, 0.0  ;;  %v1703_v8 = vadd.f32 %v5775_v53, %v3605_v3  ;;  %v2343_v9 = vadd.f32 %v5775_v53, %v3797_v4 }
 0x1af   :  { %v1697_v10 = vpop.f32.mrf.mxu0  ;;  %v2337_v11 = vpop.f32.mrf.mxu1 }
 0x1b0   :  { %2766 = vst [vmem:[%s5906_s3 + $0x390] sm:$0xff] %v2510_v6  ;;  %2894 = vst [vmem:[%s5906_s3 + $0x790] sm:$0xff] %v2638_v7  ;;  %v2513_v12 = vmax.f32 %v1703_v8, 0.0  ;;  %v2641_v13 = vmax.f32 %v2343_v9, 0.0  ;;  %v1698_v14 = vadd.f32 %v5775_v53, %v1697_v10  ;;  %v2338_v15 = vadd.f32 %v5775_v53, %v2337_v11 }
 0x1b1   :  { %v3608_v16 = vpop.f32.mrf.mxu0  ;;  %v3800_v17 = vpop.f32.mrf.mxu1 }
 0x1b2   :  { %2769 = vst [vmem:[%s5906_s3 + $0x3a8] sm:$0xff] %v2513_v12  ;;  %2897 = vst [vmem:[%s5906_s3 + $0x7a8] sm:$0xff] %v2641_v13  ;;  %v2512_v18 = vmax.f32 %v1698_v14, 0.0  ;;  %v2640_v19 = vmax.f32 %v2338_v15, 0.0  ;;  %v1713_v20 = vadd.f32 %v5775_v53, %v3608_v16  ;;  %v2353_v21 = vadd.f32 %v5775_v53, %v3800_v17 }
 0x1b3   :  { %v1707_v22 = vpop.f32.mrf.mxu0  ;;  %v2347_v23 = vpop.f32.mrf.mxu1 }
 0x1b4   :  { %2768 = vst [vmem:[%s5906_s3 + $0x3a0] sm:$0xff] %v2512_v18  ;;  %2896 = vst [vmem:[%s5906_s3 + $0x7a0] sm:$0xff] %v2640_v19  ;;  %v2515_v24 = vmax.f32 %v1713_v20, 0.0  ;;  %v2643_v25 = vmax.f32 %v2353_v21, 0.0  ;;  %v1708_v26 = vadd.f32 %v5775_v53, %v1707_v22  ;;  %v2348_v27 = vadd.f32 %v5775_v53, %v2347_v23 }
 0x1b5   :  { %v3611_v28 = vpop.f32.mrf.mxu0  ;;  %v3803_v29 = vpop.f32.mrf.mxu1 }
 0x1b6   :  { %2771 = vst [vmem:[%s5906_s3 + $0x3b8] sm:$0xff] %v2515_v24  ;;  %2899 = vst [vmem:[%s5906_s3 + $0x7b8] sm:$0xff] %v2643_v25  ;;  %v2514_v30 = vmax.f32 %v1708_v26, 0.0  ;;  %v2642_v31 = vmax.f32 %v2348_v27, 0.0  ;;  %v1723_v32 = vadd.f32 %v5775_v53, %v3611_v28  ;;  %v2363_v33 = vadd.f32 %v5775_v53, %v3803_v29 }
 0x1b7   :  { %v1717_v34 = vpop.f32.mrf.mxu0  ;;  %v2357_v35 = vpop.f32.mrf.mxu1 }
 0x1b8   :  { %2770 = vst [vmem:[%s5906_s3 + $0x3b0] sm:$0xff] %v2514_v30  ;;  %2898 = vst [vmem:[%s5906_s3 + $0x7b0] sm:$0xff] %v2642_v31  ;;  %v2517_v36 = vmax.f32 %v1723_v32, 0.0  ;;  %v2645_v37 = vmax.f32 %v2363_v33, 0.0  ;;  %v1718_v38 = vadd.f32 %v5775_v53, %v1717_v34  ;;  %v2358_v39 = vadd.f32 %v5775_v53, %v2357_v35 }
 0x1b9   :  { %v3614_v40 = vpop.f32.mrf.mxu0  ;;  %v3806_v41 = vpop.f32.mrf.mxu1 }
 0x1ba   :  { %2773 = vst [vmem:[%s5906_s3 + $0x3c8] sm:$0xff] %v2517_v36  ;;  %2901 = vst [vmem:[%s5906_s3 + $0x7c8] sm:$0xff] %v2645_v37  ;;  %v2516_v42 = vmax.f32 %v1718_v38, 0.0  ;;  %v2644_v43 = vmax.f32 %v2358_v39, 0.0  ;;  %v1733_v44 = vadd.f32 %v5775_v53, %v3614_v40  ;;  %v2373_v45 = vadd.f32 %v5775_v53, %v3806_v41 }
 0x1bb   :  { %v1727_v46 = vpop.f32.mrf.mxu0  ;;  %v2367_v48 = vpop.f32.mrf.mxu1 }
 0x1bc   :  { %2772 = vst [vmem:[%s5906_s3 + $0x3c0] sm:$0xff] %v2516_v42  ;;  %2900 = vst [vmem:[%s5906_s3 + $0x7c0] sm:$0xff] %v2644_v43  ;;  %v2519_v5 = vmax.f32 %v1733_v44, 0.0  ;;  %v2647_v49 = vmax.f32 %v2373_v45, 0.0  ;;  %v1728_v50 = vadd.f32 %v5775_v53, %v1727_v46  ;;  %v2368_v51 = vadd.f32 %v5775_v53, %v2367_v48 }
 0x1bd   :  { %v3617_v52 = vpop.f32.mrf.mxu0  ;;  %v3809_v54 = vpop.f32.mrf.mxu1 }
 0x1be   :  { %2775 = vst [vmem:[%s5906_s3 + $0x3d8] sm:$0xff] %v2519_v5  ;;  %2903 = vst [vmem:[%s5906_s3 + $0x7d8] sm:$0xff] %v2647_v49  ;;  %v2518_v47 = vmax.f32 %v1728_v50, 0.0  ;;  %v2646_v55 = vmax.f32 %v2368_v51, 0.0  ;;  %v1743_v56 = vadd.f32 %v5775_v53, %v3617_v52  ;;  %v2383_v57 = vadd.f32 %v5775_v53, %v3809_v54 }
 0x1bf   :  { %v1737_v58 = vpop.f32.mrf.mxu0  ;;  %v2377_v59 = vpop.f32.mrf.mxu1 }
 0x1c0   :  { %2774 = vst [vmem:[%s5906_s3 + $0x3d0] sm:$0xff] %v2518_v47  ;;  %2902 = vst [vmem:[%s5906_s3 + $0x7d0] sm:$0xff] %v2646_v55  ;;  %v2521_v60 = vmax.f32 %v1743_v56, 0.0  ;;  %v2649_v61 = vmax.f32 %v2383_v57, 0.0  ;;  %v1738_v62 = vadd.f32 %v5775_v53, %v1737_v58  ;;  %v2378_v63 = vadd.f32 %v5775_v53, %v2377_v59 }
 0x1c1   :  { %v3620_v0 = vpop.f32.mrf.mxu0  ;;  %v3812_v1 = vpop.f32.mrf.mxu1 }
 0x1c2   :  { %2777 = vst [vmem:[%s5906_s3 + $0x3e8] sm:$0xff] %v2521_v60  ;;  %2905 = vst [vmem:[%s5906_s3 + $0x7e8] sm:$0xff] %v2649_v61  ;;  %v2520_v2 = vmax.f32 %v1738_v62, 0.0  ;;  %v2648_v3 = vmax.f32 %v2378_v63, 0.0  ;;  %v1753_v4 = vadd.f32 %v5775_v53, %v3620_v0  ;;  %v2393_v6 = vadd.f32 %v5775_v53, %v3812_v1 }
 0x1c3   :  { %v1747_v7 = vpop.f32.mrf.mxu0  ;;  %v2387_v8 = vpop.f32.mrf.mxu1 }
 0x1c4   :  { %2776 = vst [vmem:[%s5906_s3 + $0x3e0] sm:$0xff] %v2520_v2  ;;  %2904 = vst [vmem:[%s5906_s3 + $0x7e0] sm:$0xff] %v2648_v3  ;;  %v2523_v9 = vmax.f32 %v1753_v4, 0.0  ;;  %v2651_v10 = vmax.f32 %v2393_v6, 0.0  ;;  %v1748_v11 = vadd.f32 %v5775_v53, %v1747_v7  ;;  %v2388_v12 = vadd.f32 %v5775_v53, %v2387_v8 }
 0x1c6   :  { %2779 = vst [vmem:[%s5906_s3 + $0x3f8] sm:$0xff] %v2523_v9  ;;  %2907 = vst [vmem:[%s5906_s3 + $0x7f8] sm:$0xff] %v2651_v10  ;;  %v2522_v13 = vmax.f32 %v1748_v11, 0.0  ;;  %v2650_v14 = vmax.f32 %v2388_v12, 0.0 }
 0x1c8   :  { %2778 = vst [vmem:[%s5906_s3 + $0x3f0] sm:$0xff] %v2522_v13  ;;  %2906 = vst [vmem:[%s5906_s3 + $0x7f0] sm:$0xff] %v2650_v14 }

</bundles_post_ra>
